<compile_context>
chip_gen: v7x
topology: tpu7x:2x2x1
jax: 0.10.0
libtpu: 0.0.40
codegen_flags: <defaults>
</compile_context>

<pallas_src>
import functools

import jax
import jax.numpy as jnp
from jax import lax
from jax.experimental import pallas as pl
from jax.experimental.pallas import tpu as pltpu

_BN_EPS = 1e-5
CPAD = 128                                   # lane padding for block 3's Cout=1 path
_BLOCK_KEYS = ('w1', 'g1', 'be1',
               'w2', 'g2', 'be2',
               'w3', 'g3', 'be3',
               'wsc', 'bsc')


# ---------------- kernel 1: embedding Linear + ReLU ----------------
def _embedding_kernel(x_ref, w_ref, b_ref, o_ref):
    # x: [B, E] f32, w: [E, L*64] bf16 (column-permuted to channels-last), b: [1, L*64] f32.
    y = jnp.dot(x_ref[...].astype(jnp.bfloat16), w_ref[...],
                preferred_element_type=jnp.float32)
    o_ref[...] = jnp.maximum(y + b_ref[...], 0.0)


# ---------------- kernel 2 helpers ----------------
def _conv1d_im2col(h3, w_ref, K, col_ref, B, L, Cin):
    """Conv1d(padding='same') as one im2col MXU matmul.

    h3:      [B, L, Cin] f32 activation (value).
    w_ref:   [K*Cin, Cout] bf16 im2col weight.
    col_ref: [B, L, 8*64] f32 VMEM scratch, reused by every conv.
    Returns  [B*L, Cout] f32.
    """
    left = (K - 1) // 2                      # PyTorch 'same': left=(K-1)//2, right=K-1-left
    for j in range(K):                       # static taps: fill the im2col scratch
        s = j - left                         # source shift for this tap
        lo = max(0, -s)
        hi = min(L, L - s)
        c0 = j * Cin
        if lo > 0:
            col_ref[:, :lo, c0:c0 + Cin] = jnp.zeros((B, lo, Cin), jnp.float32)
        if hi < L:
            col_ref[:, hi:, c0:c0 + Cin] = jnp.zeros((B, L - hi, Cin), jnp.float32)
        col_ref[:, lo:hi, c0:c0 + Cin] = h3[:, lo + s:hi + s, :]
    xc = col_ref[:, :, :K * Cin].reshape(B * L, K * Cin).astype(jnp.bfloat16)
    return jnp.dot(xc, w_ref[...], preferred_element_type=jnp.float32)


def _batchnorm(y, g_ref, be_ref, inv_n, relu):
    """Training-mode BatchNorm1d (stats over batch+length, biased var) + optional ReLU. f32."""
    mean = jnp.sum(y, axis=0, keepdims=True) * inv_n
    var = jnp.maximum(jnp.sum(y * y, axis=0, keepdims=True) * inv_n - mean * mean, 0.0)
    scale = g_ref[...] * lax.rsqrt(var + _BN_EPS)
    out = (y - mean) * scale + be_ref[...]
    return jnp.maximum(out, 0.0) if relu else out


def _residual_block(h, p, col_ref, B, L):
    """h: [B*L, 64] f32 -> [B*L, Cout] f32 (Cout = 64, or CPAD for the last block)."""
    inv_n = 1.0 / float(B * L)
    # Conv biases are omitted for conv1/2/3: they cancel exactly in training-mode BatchNorm.
    y = _conv1d_im2col(h.reshape(B, L, 64), p['w1'], 8, col_ref, B, L, 64)
    y = _batchnorm(y, p['g1'], p['be1'], inv_n, relu=True)
    y = _conv1d_im2col(y.reshape(B, L, 64), p['w2'], 5, col_ref, B, L, 64)
    y = _batchnorm(y, p['g2'], p['be2'], inv_n, relu=True)
    y = _conv1d_im2col(y.reshape(B, L, 64), p['w3'], 3, col_ref, B, L, 64)
    y = _batchnorm(y, p['g3'], p['be3'], inv_n, relu=False)
    sc = jnp.dot(h.astype(jnp.bfloat16), p['wsc'][...],
                 preferred_element_type=jnp.float32) + p['bsc'][...]
    return jnp.maximum(sc + y, 0.0)


def _blocks_kernel(*refs, B, L):
    h_ref = refs[0]
    nb = len(_BLOCK_KEYS)
    param_refs = refs[1:1 + 3 * nb]
    o_ref = refs[1 + 3 * nb]
    col_ref = refs[1 + 3 * nb + 1]
    blocks = [dict(zip(_BLOCK_KEYS, param_refs[i * nb:(i + 1) * nb])) for i in range(3)]

    h = h_ref[...]                           # [B*L, 64] channels-last slab
    for p in blocks:
        h = _residual_block(h, p, col_ref, B, L)

    # h: [B*L, CPAD]; only channel 0 is real.  One-hot selector matmul (NT dot_general)
    # extracts it and lays the result out lane-dense as [1, B*L] in a single row.
    sel = (lax.broadcasted_iota(jnp.int32, (1, CPAD), 1) == 0).astype(jnp.float32)
    o_ref[...] = lax.dot_general(sel, h, dimension_numbers=(((1,), (1,)), ((), ())),
                                 preferred_element_type=jnp.float32)


# ---------------- parameters ----------------
def init_params(key, seq_len, embedding_dim):
    """Synthetic parameters in PyTorch layout (Linear [out,in]; Conv1d [Cout,Cin,K]; BN [C])."""
    def nrm(k, shape, scale=0.05):
        return scale * jax.random.normal(k, shape, jnp.float32)

    keys = iter(jax.random.split(key, 64))
    params = {
        'emb_w': nrm(next(keys), (64 * seq_len, embedding_dim)),
        'emb_b': nrm(next(keys), (64 * seq_len,)),
        'blocks': [],
    }
    block_cfgs = [
        (64, [64, 64, 64], [8, 5, 3]),
        (64, [64, 64, 64], [8, 5, 3]),
        (64, [64, 64, 1], [8, 5, 3]),
    ]
    for cin, (f0, f1, f2), (k0, k1, k2) in block_cfgs:
        blk = {
            'w1': nrm(next(keys), (f0, cin, k0)), 'b1': nrm(next(keys), (f0,)),
            'g1': jnp.ones((f0,), jnp.float32), 'be1': jnp.zeros((f0,), jnp.float32),
            'w2': nrm(next(keys), (f1, f0, k1)), 'b2': nrm(next(keys), (f1,)),
            'g2': jnp.ones((f1,), jnp.float32), 'be2': jnp.zeros((f1,), jnp.float32),
            'w3': nrm(next(keys), (f2, f1, k2)), 'b3': nrm(next(keys), (f2,)),
            'g3': jnp.ones((f2,), jnp.float32), 'be3': jnp.zeros((f2,), jnp.float32),
            'wsc': nrm(next(keys), (f2, cin, 1)), 'bsc': nrm(next(keys), (f2,)),
        }
        params['blocks'].append(blk)
    return params


def prepare_params(params, seq_len):
    """Convert PyTorch-layout params into kernel layout (channels-last / im2col / padded)."""
    L = seq_len

    def conv_im2col_w(w, cout_pad=None):
        cout, cin, k = w.shape
        wc = jnp.transpose(w, (2, 1, 0)).reshape(k * cin, cout)     # [K*Cin, Cout]
        if cout_pad is not None and cout_pad > cout:
            wc = jnp.pad(wc, ((0, 0), (0, cout_pad - cout)))
        return wc.astype(jnp.bfloat16)

    def row(v, cout_pad=None, pad_value=0.0):
        if cout_pad is not None and cout_pad > v.shape[0]:
            v = jnp.pad(v, (0, cout_pad - v.shape[0]), constant_values=pad_value)
        return v.reshape(1, -1).astype(jnp.float32)

    # Embedding: transpose to [E, 64*L] and permute columns so that the kernel's [B, L*64]
    # output, reshaped row-major to [B*L, 64], is channels-last (== PyTorch reshape(B,64,L)).
    emb_w = params['emb_w'].T.reshape(-1, 64, L).transpose(0, 2, 1).reshape(-1, L * 64)
    emb_b = params['emb_b'].reshape(64, L).T.reshape(1, L * 64)

    kp = {'emb_w': emb_w.astype(jnp.bfloat16),
          'emb_b': emb_b.astype(jnp.float32),
          'blocks': []}
    for blk in params['blocks']:
        cpad = CPAD if blk['w3'].shape[0] == 1 else None            # block 3: pad Cout 1 -> 128
        # NOTE: conv biases b1/b2/b3 cancel exactly in training-mode BatchNorm -> dropped.
        kp['blocks'].append({
            'w1': conv_im2col_w(blk['w1']),
            'g1': row(blk['g1']), 'be1': row(blk['be1']),
            'w2': conv_im2col_w(blk['w2']),
            'g2': row(blk['g2']), 'be2': row(blk['be2']),
            'w3': conv_im2col_w(blk['w3'], cpad),
            'g3': row(blk['g3'], cpad, 1.0), 'be3': row(blk['be3'], cpad),
            'wsc': conv_im2col_w(blk['wsc'], cpad),                  # K=1 -> [Cin, Cout]
            'bsc': row(blk['bsc'], cpad),
        })
    return kp


# ---------------- wrapper ----------------
@functools.partial(jax.jit, static_argnames=('seq_len',))
def resnet_decoder_forward(x, kparams, *, seq_len):
    B = x.shape[0]
    L = seq_len
    vmem = pl.BlockSpec(memory_space=pltpu.MemorySpace.VMEM)
    cparams = pltpu.CompilerParams(vmem_limit_bytes=32 * 1024 * 1024)

    # Kernel 1: embedding Linear + ReLU (weights pre-permuted -> output already channels-last).
    # TODO(synk): for large seq_len/embedding_dim, tile emb_w over a parallel column grid and
    # add a parallel split of the blocks kernel for v7x's second TensorCore.
    emb = pl.pallas_call(
        _embedding_kernel,
        out_shape=jax.ShapeDtypeStruct((B, 64 * L), jnp.float32),
        in_specs=[vmem] * 3,
        out_specs=vmem,
        compiler_params=cparams,
    )(x, kparams['emb_w'], kparams['emb_b'])
    h0 = emb.reshape(B * L, 64)              # pure row-major reshape: no transpose / relayout

    # Kernel 2: three residual blocks on the stacked [B*L, 64] slab.
    flat = [blk[k] for blk in kparams['blocks'] for k in _BLOCK_KEYS]
    out = pl.pallas_call(
        functools.partial(_blocks_kernel, B=B, L=L),
        out_shape=jax.ShapeDtypeStruct((1, B * L), jnp.float32),
        in_specs=[vmem] * (1 + len(flat)),
        out_specs=vmem,
        scratch_shapes=[pltpu.VMEM((B, L, 8 * 64), jnp.float32)],   # reused im2col scratch
        compiler_params=cparams,
    )(h0, *flat)

    return out.reshape(B, 1, L)              # PyTorch NCL output [B, 1, seq_len]


if __name__ == "__main__":
    batch, embedding_dim, seq_len = 2, 32, 16
    key = jax.random.PRNGKey(0)
    kx, kp = jax.random.split(key)
    x = jax.random.normal(kx, (batch, embedding_dim), jnp.float32)
    params = init_params(kp, seq_len=seq_len, embedding_dim=embedding_dim)
    kparams = prepare_params(params, seq_len)

    y = resnet_decoder_forward(x, kparams, seq_len=seq_len)
    jax.block_until_ready(y)

    assert y.shape == (batch, 1, seq_len), y.shape
    assert bool(jnp.all(jnp.isfinite(y)))
    print("KERNEL_OK")
</pallas_src>

<mosaic_0001>
module attributes {stable_mosaic.version = 11 : i64} {
  func.func @_embedding_kernel(%arg0: memref<2x32xf32, #tpu.memory_space<vmem>>, %arg1: memref<32x1024xbf16, #tpu.memory_space<vmem>>, %arg2: memref<1x1024xf32, #tpu.memory_space<vmem>>, %arg3: memref<2x1024xf32, #tpu.memory_space<vmem>>) attributes {dimension_semantics = [], scalar_prefetch = 0 : i64, scratch_operands = 0 : i64, tpu.core_type = #tpu.core_type<tc>} {
    %c0 = arith.constant 0 : index
    %c0_0 = arith.constant 0 : index
    %0 = vector.load %arg0[%c0, %c0_0] : memref<2x32xf32, #tpu.memory_space<vmem>>, vector<2x32xf32>
    %1 = arith.truncf %0 : vector<2x32xf32> to vector<2x32xbf16>
    %c0_1 = arith.constant 0 : index
    %c0_2 = arith.constant 0 : index
    %2 = vector.load %arg1[%c0_1, %c0_2] : memref<32x1024xbf16, #tpu.memory_space<vmem>>, vector<32x1024xbf16>
    %cst = arith.constant dense<0.000000e+00> : vector<2x1024xf32>
    %3 = tpu.matmul %1, %2, %cst {dimension_numbers = #tpu.dot_dimension_numbers<[1], [0], [0], [1], [0, 0, 1, 1], [], []>} : vector<2x32xbf16>, vector<32x1024xbf16>, vector<2x1024xf32> -> vector<2x1024xf32>
    %c0_3 = arith.constant 0 : index
    %c0_4 = arith.constant 0 : index
    %4 = vector.load %arg2[%c0_3, %c0_4] : memref<1x1024xf32, #tpu.memory_space<vmem>>, vector<1x1024xf32>
    %5 = vector.broadcast %4 : vector<1x1024xf32> to vector<2x1024xf32>
    %6 = arith.addf %3, %5 : vector<2x1024xf32>
    %cst_5 = arith.constant 0.000000e+00 : f32
    %7 = vector.broadcast %cst_5 : f32 to vector<2x1024xf32>
    %8 = arith.maximumf %6, %7 : vector<2x1024xf32>
    %c0_6 = arith.constant 0 : index
    %c0_7 = arith.constant 0 : index
    %9 = vector.load %arg3[%c0_6, %c0_7] : memref<2x1024xf32, #tpu.memory_space<vmem>>, vector<2x1024xf32>
    tpu.vector_store %arg3[%c0_6, %c0_7], %8 {strides = array<i32>} : memref<2x1024xf32, #tpu.memory_space<vmem>>, vector<2x1024xf32>,
    return
  }
}

module attributes {stable_mosaic.version = 11 : i64} {
  func.func @_blocks_kernel(%arg0: memref<32x64xf32, #tpu.memory_space<vmem>>, %arg1: memref<512x64xbf16, #tpu.memory_space<vmem>>, %arg2: memref<1x64xf32, #tpu.memory_space<vmem>>, %arg3: memref<1x64xf32, #tpu.memory_space<vmem>>, %arg4: memref<320x64xbf16, #tpu.memory_space<vmem>>, %arg5: memref<1x64xf32, #tpu.memory_space<vmem>>, %arg6: memref<1x64xf32, #tpu.memory_space<vmem>>, %arg7: memref<192x64xbf16, #tpu.memory_space<vmem>>, %arg8: memref<1x64xf32, #tpu.memory_space<vmem>>, %arg9: memref<1x64xf32, #tpu.memory_space<vmem>>, %arg10: memref<64x64xbf16, #tpu.memory_space<vmem>>, %arg11: memref<1x64xf32, #tpu.memory_space<vmem>>, %arg12: memref<512x64xbf16, #tpu.memory_space<vmem>>, %arg13: memref<1x64xf32, #tpu.memory_space<vmem>>, %arg14: memref<1x64xf32, #tpu.memory_space<vmem>>, %arg15: memref<320x64xbf16, #tpu.memory_space<vmem>>, %arg16: memref<1x64xf32, #tpu.memory_space<vmem>>, %arg17: memref<1x64xf32, #tpu.memory_space<vmem>>, %arg18: memref<192x64xbf16, #tpu.memory_space<vmem>>, %arg19: memref<1x64xf32, #tpu.memory_space<vmem>>, %arg20: memref<1x64xf32, #tpu.memory_space<vmem>>, %arg21: memref<64x64xbf16, #tpu.memory_space<vmem>>, %arg22: memref<1x64xf32, #tpu.memory_space<vmem>>, %arg23: memref<512x64xbf16, #tpu.memory_space<vmem>>, %arg24: memref<1x64xf32, #tpu.memory_space<vmem>>, %arg25: memref<1x64xf32, #tpu.memory_space<vmem>>, %arg26: memref<320x64xbf16, #tpu.memory_space<vmem>>, %arg27: memref<1x64xf32, #tpu.memory_space<vmem>>, %arg28: memref<1x64xf32, #tpu.memory_space<vmem>>, %arg29: memref<192x128xbf16, #tpu.memory_space<vmem>>, %arg30: memref<1x128xf32, #tpu.memory_space<vmem>>, %arg31: memref<1x128xf32, #tpu.memory_space<vmem>>, %arg32: memref<64x128xbf16, #tpu.memory_space<vmem>>, %arg33: memref<1x128xf32, #tpu.memory_space<vmem>>, %arg34: memref<1x32xf32, #tpu.memory_space<vmem>>, %arg35: memref<2x16x512xf32, #tpu.memory_space<vmem>>) attributes {dimension_semantics = [], scalar_prefetch = 0 : i64, scratch_operands = 1 : i64, tpu.core_type = #tpu.core_type<tc>} {
    %c0 = arith.constant 0 : index
    %c0_0 = arith.constant 0 : index
    %0 = vector.load %arg0[%c0, %c0_0] : memref<32x64xf32, #tpu.memory_space<vmem>>, vector<32x64xf32>
    %1 = vector.shape_cast %0 : vector<32x64xf32> to vector<2x16x64xf32>
    %cst = arith.constant 0.000000e+00 : f32
    %2 = vector.broadcast %cst : f32 to vector<2x3x64xf32>
    %c0_1 = arith.constant 0 : index
    %c0_2 = arith.constant 0 : index
    %c0_3 = arith.constant 0 : index
    %3 = vector.load %arg35[%c0_1, %c0_2, %c0_3] : memref<2x16x512xf32, #tpu.memory_space<vmem>>, vector<2x3x64xf32>
    tpu.vector_store %arg35[%c0_1, %c0_2, %c0_3], %2 {strides = array<i32>} : memref<2x16x512xf32, #tpu.memory_space<vmem>>, vector<2x3x64xf32>,
    %4 = vector.extract_strided_slice %1 {offsets = [0, 0, 0], sizes = [2, 13, 64], strides = [1, 1, 1]} : vector<2x16x64xf32> to vector<2x13x64xf32>
    %c0_4 = arith.constant 0 : index
    %c3 = arith.constant 3 : index
    %c0_5 = arith.constant 0 : index
    %5 = vector.load %arg35[%c0_4, %c3, %c0_5] : memref<2x16x512xf32, #tpu.memory_space<vmem>>, vector<2x13x64xf32>
    tpu.vector_store %arg35[%c0_4, %c3, %c0_5], %4 {strides = array<i32>} : memref<2x16x512xf32, #tpu.memory_space<vmem>>, vector<2x13x64xf32>,
    %cst_6 = arith.constant 0.000000e+00 : f32
    %6 = vector.broadcast %cst_6 : f32 to vector<2x2x64xf32>
    %c0_7 = arith.constant 0 : index
    %c0_8 = arith.constant 0 : index
    %c64 = arith.constant 64 : index
    %7 = vector.load %arg35[%c0_7, %c0_8, %c64] : memref<2x16x512xf32, #tpu.memory_space<vmem>>, vector<2x2x64xf32>
    tpu.vector_store %arg35[%c0_7, %c0_8, %c64], %6 {strides = array<i32>} : memref<2x16x512xf32, #tpu.memory_space<vmem>>, vector<2x2x64xf32>,
    %8 = vector.extract_strided_slice %1 {offsets = [0, 0, 0], sizes = [2, 14, 64], strides = [1, 1, 1]} : vector<2x16x64xf32> to vector<2x14x64xf32>
    %c0_9 = arith.constant 0 : index
    %c2 = arith.constant 2 : index
    %c64_10 = arith.constant 64 : index
    %9 = vector.load %arg35[%c0_9, %c2, %c64_10] : memref<2x16x512xf32, #tpu.memory_space<vmem>>, vector<2x14x64xf32>
    tpu.vector_store %arg35[%c0_9, %c2, %c64_10], %8 {strides = array<i32>} : memref<2x16x512xf32, #tpu.memory_space<vmem>>, vector<2x14x64xf32>,
    %cst_11 = arith.constant 0.000000e+00 : f32
    %10 = vector.broadcast %cst_11 : f32 to vector<2x1x64xf32>
    %c0_12 = arith.constant 0 : index
    %c0_13 = arith.constant 0 : index
    %c128 = arith.constant 128 : index
    %11 = vector.load %arg35[%c0_12, %c0_13, %c128] : memref<2x16x512xf32, #tpu.memory_space<vmem>>, vector<2x1x64xf32>
    tpu.vector_store %arg35[%c0_12, %c0_13, %c128], %10 {strides = array<i32>} : memref<2x16x512xf32, #tpu.memory_space<vmem>>, vector<2x1x64xf32>,
    %12 = vector.extract_strided_slice %1 {offsets = [0, 0, 0], sizes = [2, 15, 64], strides = [1, 1, 1]} : vector<2x16x64xf32> to vector<2x15x64xf32>
    %c0_14 = arith.constant 0 : index
    %c1 = arith.constant 1 : index
    %c128_15 = arith.constant 128 : index
    %13 = vector.load %arg35[%c0_14, %c1, %c128_15] : memref<2x16x512xf32, #tpu.memory_space<vmem>>, vector<2x15x64xf32>
    tpu.vector_store %arg35[%c0_14, %c1, %c128_15], %12 {strides = array<i32>} : memref<2x16x512xf32, #tpu.memory_space<vmem>>, vector<2x15x64xf32>,
    %c0_16 = arith.constant 0 : index
    %c0_17 = arith.constant 0 : index
    %c192 = arith.constant 192 : index
    %14 = vector.load %arg35[%c0_16, %c0_17, %c192] : memref<2x16x512xf32, #tpu.memory_space<vmem>>, vector<2x16x64xf32>
    tpu.vector_store %arg35[%c0_16, %c0_17, %c192], %1 {strides = array<i32>} : memref<2x16x512xf32, #tpu.memory_space<vmem>>, vector<2x16x64xf32>,
    %cst_18 = arith.constant 0.000000e+00 : f32
    %15 = vector.broadcast %cst_18 : f32 to vector<2x1x64xf32>
    %c0_19 = arith.constant 0 : index
    %c15 = arith.constant 15 : index
    %c256 = arith.constant 256 : index
    %16 = vector.load %arg35[%c0_19, %c15, %c256] : memref<2x16x512xf32, #tpu.memory_space<vmem>>, vector<2x1x64xf32>
    tpu.vector_store %arg35[%c0_19, %c15, %c256], %15 {strides = array<i32>} : memref<2x16x512xf32, #tpu.memory_space<vmem>>, vector<2x1x64xf32>,
    %17 = vector.extract_strided_slice %1 {offsets = [0, 1, 0], sizes = [2, 15, 64], strides = [1, 1, 1]} : vector<2x16x64xf32> to vector<2x15x64xf32>
    %c0_20 = arith.constant 0 : index
    %c0_21 = arith.constant 0 : index
    %c256_22 = arith.constant 256 : index
    %18 = vector.load %arg35[%c0_20, %c0_21, %c256_22] : memref<2x16x512xf32, #tpu.memory_space<vmem>>, vector<2x15x64xf32>
    tpu.vector_store %arg35[%c0_20, %c0_21, %c256_22], %17 {strides = array<i32>} : memref<2x16x512xf32, #tpu.memory_space<vmem>>, vector<2x15x64xf32>,
    %cst_23 = arith.constant 0.000000e+00 : f32
    %19 = vector.broadcast %cst_23 : f32 to vector<2x2x64xf32>
    %c0_24 = arith.constant 0 : index
    %c14 = arith.constant 14 : index
    %c320 = arith.constant 320 : index
    %20 = vector.load %arg35[%c0_24, %c14, %c320] : memref<2x16x512xf32, #tpu.memory_space<vmem>>, vector<2x2x64xf32>
    tpu.vector_store %arg35[%c0_24, %c14, %c320], %19 {strides = array<i32>} : memref<2x16x512xf32, #tpu.memory_space<vmem>>, vector<2x2x64xf32>,
    %21 = vector.extract_strided_slice %1 {offsets = [0, 2, 0], sizes = [2, 14, 64], strides = [1, 1, 1]} : vector<2x16x64xf32> to vector<2x14x64xf32>
    %c0_25 = arith.constant 0 : index
    %c0_26 = arith.constant 0 : index
    %c320_27 = arith.constant 320 : index
    %22 = vector.load %arg35[%c0_25, %c0_26, %c320_27] : memref<2x16x512xf32, #tpu.memory_space<vmem>>, vector<2x14x64xf32>
    tpu.vector_store %arg35[%c0_25, %c0_26, %c320_27], %21 {strides = array<i32>} : memref<2x16x512xf32, #tpu.memory_space<vmem>>, vector<2x14x64xf32>,
    %cst_28 = arith.constant 0.000000e+00 : f32
    %23 = vector.broadcast %cst_28 : f32 to vector<2x3x64xf32>
    %c0_29 = arith.constant 0 : index
    %c13 = arith.constant 13 : index
    %c384 = arith.constant 384 : index
    %24 = vector.load %arg35[%c0_29, %c13, %c384] : memref<2x16x512xf32, #tpu.memory_space<vmem>>, vector<2x3x64xf32>
    tpu.vector_store %arg35[%c0_29, %c13, %c384], %23 {strides = array<i32>} : memref<2x16x512xf32, #tpu.memory_space<vmem>>, vector<2x3x64xf32>,
    %25 = vector.extract_strided_slice %1 {offsets = [0, 3, 0], sizes = [2, 13, 64], strides = [1, 1, 1]} : vector<2x16x64xf32> to vector<2x13x64xf32>
    %c0_30 = arith.constant 0 : index
    %c0_31 = arith.constant 0 : index
    %c384_32 = arith.constant 384 : index
    %26 = vector.load %arg35[%c0_30, %c0_31, %c384_32] : memref<2x16x512xf32, #tpu.memory_space<vmem>>, vector<2x13x64xf32>
    tpu.vector_store %arg35[%c0_30, %c0_31, %c384_32], %25 {strides = array<i32>} : memref<2x16x512xf32, #tpu.memory_space<vmem>>, vector<2x13x64xf32>,
    %cst_33 = arith.constant 0.000000e+00 : f32
    %27 = vector.broadcast %cst_33 : f32 to vector<2x4x64xf32>
    %c0_34 = arith.constant 0 : index
    %c12 = arith.constant 12 : index
    %c448 = arith.constant 448 : index
    %28 = vector.load %arg35[%c0_34, %c12, %c448] : memref<2x16x512xf32, #tpu.memory_space<vmem>>, vector<2x4x64xf32>
    tpu.vector_store %arg35[%c0_34, %c12, %c448], %27 {strides = array<i32>} : memref<2x16x512xf32, #tpu.memory_space<vmem>>, vector<2x4x64xf32>,
    %29 = vector.extract_strided_slice %1 {offsets = [0, 4, 0], sizes = [2, 12, 64], strides = [1, 1, 1]} : vector<2x16x64xf32> to vector<2x12x64xf32>
    %c0_35 = arith.constant 0 : index
    %c0_36 = arith.constant 0 : index
    %c448_37 = arith.constant 448 : index
    %30 = vector.load %arg35[%c0_35, %c0_36, %c448_37] : memref<2x16x512xf32, #tpu.memory_space<vmem>>, vector<2x12x64xf32>
    tpu.vector_store %arg35[%c0_35, %c0_36, %c448_37], %29 {strides = array<i32>} : memref<2x16x512xf32, #tpu.memory_space<vmem>>, vector<2x12x64xf32>,
    %c0_38 = arith.constant 0 : index
    %c0_39 = arith.constant 0 : index
    %c0_40 = arith.constant 0 : index
    %31 = vector.load %arg35[%c0_38, %c0_39, %c0_40] : memref<2x16x512xf32, #tpu.memory_space<vmem>>, vector<2x16x512xf32>
    %32 = vector.shape_cast %31 : vector<2x16x512xf32> to vector<32x512xf32>
    %33 = arith.truncf %32 : vector<32x512xf32> to vector<32x512xbf16>
    %c0_41 = arith.constant 0 : index
    %c0_42 = arith.constant 0 : index
    %34 = vector.load %arg1[%c0_41, %c0_42] : memref<512x64xbf16, #tpu.memory_space<vmem>>, vector<512x64xbf16>
    %cst_43 = arith.constant dense<0.000000e+00> : vector<32x64xf32>
    %35 = tpu.matmul %33, %34, %cst_43 {dimension_numbers = #tpu.dot_dimension_numbers<[1], [0], [0], [1], [0, 0, 1, 1], [], []>} : vector<32x512xbf16>, vector<512x64xbf16>, vector<32x64xf32> -> vector<32x64xf32>
    %cst_44 = arith.constant dense<0.000000e+00> : vector<64xf32>
    %36 = vector.multi_reduction <add>, %35, %cst_44 [0] : vector<32x64xf32> to vector<64xf32>
    %37 = vector.shape_cast %36 : vector<64xf32> to vector<1x64xf32>
    %cst_45 = arith.constant 3.125000e-02 : f32
    %38 = vector.broadcast %cst_45 : f32 to vector<1x64xf32>
    %39 = arith.mulf %37, %38 : vector<1x64xf32>
    %40 = arith.mulf %35, %35 : vector<32x64xf32>
    %cst_46 = arith.constant dense<0.000000e+00> : vector<64xf32>
    %41 = vector.multi_reduction <add>, %40, %cst_46 [0] : vector<32x64xf32> to vector<64xf32>
    %42 = vector.shape_cast %41 : vector<64xf32> to vector<1x64xf32>
    %cst_47 = arith.constant 3.125000e-02 : f32
    %43 = vector.broadcast %cst_47 : f32 to vector<1x64xf32>
    %44 = arith.mulf %42, %43 : vector<1x64xf32>
    %45 = arith.mulf %39, %39 : vector<1x64xf32>
    %46 = arith.subf %44, %45 : vector<1x64xf32>
    %cst_48 = arith.constant 0.000000e+00 : f32
    %47 = vector.broadcast %cst_48 : f32 to vector<1x64xf32>
    %48 = arith.maximumf %46, %47 : vector<1x64xf32>
    %c0_49 = arith.constant 0 : index
    %c0_50 = arith.constant 0 : index
    %49 = vector.load %arg2[%c0_49, %c0_50] : memref<1x64xf32, #tpu.memory_space<vmem>>, vector<1x64xf32>
    %cst_51 = arith.constant 9.99999974E-6 : f32
    %50 = vector.broadcast %cst_51 : f32 to vector<1x64xf32>
    %51 = arith.addf %48, %50 : vector<1x64xf32>
    %52 = math.rsqrt %51 : vector<1x64xf32>
    %53 = arith.mulf %49, %52 : vector<1x64xf32>
    %54 = vector.broadcast %39 : vector<1x64xf32> to vector<32x64xf32>
    %55 = arith.subf %35, %54 : vector<32x64xf32>
    %56 = vector.broadcast %53 : vector<1x64xf32> to vector<32x64xf32>
    %57 = arith.mulf %55, %56 : vector<32x64xf32>
    %c0_52 = arith.constant 0 : index
    %c0_53 = arith.constant 0 : index
    %58 = vector.load %arg3[%c0_52, %c0_53] : memref<1x64xf32, #tpu.memory_space<vmem>>, vector<1x64xf32>
    %59 = vector.broadcast %58 : vector<1x64xf32> to vector<32x64xf32>
    %60 = arith.addf %57, %59 : vector<32x64xf32>
    %cst_54 = arith.constant 0.000000e+00 : f32
    %61 = vector.broadcast %cst_54 : f32 to vector<32x64xf32>
    %62 = arith.maximumf %60, %61 : vector<32x64xf32>
    %63 = vector.shape_cast %62 : vector<32x64xf32> to vector<2x16x64xf32>
    %cst_55 = arith.constant 0.000000e+00 : f32
    %64 = vector.broadcast %cst_55 : f32 to vector<2x2x64xf32>
    %c0_56 = arith.constant 0 : index
    %c0_57 = arith.constant 0 : index
    %c0_58 = arith.constant 0 : index
    %65 = vector.load %arg35[%c0_56, %c0_57, %c0_58] : memref<2x16x512xf32, #tpu.memory_space<vmem>>, vector<2x2x64xf32>
    tpu.vector_store %arg35[%c0_56, %c0_57, %c0_58], %64 {strides = array<i32>} : memref<2x16x512xf32, #tpu.memory_space<vmem>>, vector<2x2x64xf32>,
    %66 = vector.extract_strided_slice %63 {offsets = [0, 0, 0], sizes = [2, 14, 64], strides = [1, 1, 1]} : vector<2x16x64xf32> to vector<2x14x64xf32>
    %c0_59 = arith.constant 0 : index
    %c2_60 = arith.constant 2 : index
    %c0_61 = arith.constant 0 : index
    %67 = vector.load %arg35[%c0_59, %c2_60, %c0_61] : memref<2x16x512xf32, #tpu.memory_space<vmem>>, vector<2x14x64xf32>
    tpu.vector_store %arg35[%c0_59, %c2_60, %c0_61], %66 {strides = array<i32>} : memref<2x16x512xf32, #tpu.memory_space<vmem>>, vector<2x14x64xf32>,
    %cst_62 = arith.constant 0.000000e+00 : f32
    %68 = vector.broadcast %cst_62 : f32 to vector<2x1x64xf32>
    %c0_63 = arith.constant 0 : index
    %c0_64 = arith.constant 0 : index
    %c64_65 = arith.constant 64 : index
    %69 = vector.load %arg35[%c0_63, %c0_64, %c64_65] : memref<2x16x512xf32, #tpu.memory_space<vmem>>, vector<2x1x64xf32>
    tpu.vector_store %arg35[%c0_63, %c0_64, %c64_65], %68 {strides = array<i32>} : memref<2x16x512xf32, #tpu.memory_space<vmem>>, vector<2x1x64xf32>,
    %70 = vector.extract_strided_slice %63 {offsets = [0, 0, 0], sizes = [2, 15, 64], strides = [1, 1, 1]} : vector<2x16x64xf32> to vector<2x15x64xf32>
    %c0_66 = arith.constant 0 : index
    %c1_67 = arith.constant 1 : index
    %c64_68 = arith.constant 64 : index
    %71 = vector.load %arg35[%c0_66, %c1_67, %c64_68] : memref<2x16x512xf32, #tpu.memory_space<vmem>>, vector<2x15x64xf32>
    tpu.vector_store %arg35[%c0_66, %c1_67, %c64_68], %70 {strides = array<i32>} : memref<2x16x512xf32, #tpu.memory_space<vmem>>, vector<2x15x64xf32>,
    %c0_69 = arith.constant 0 : index
    %c0_70 = arith.constant 0 : index
    %c128_71 = arith.constant 128 : index
    %72 = vector.load %arg35[%c0_69, %c0_70, %c128_71] : memref<2x16x512xf32, #tpu.memory_space<vmem>>, vector<2x16x64xf32>
    tpu.vector_store %arg35[%c0_69, %c0_70, %c128_71], %63 {strides = array<i32>} : memref<2x16x512xf32, #tpu.memory_space<vmem>>, vector<2x16x64xf32>,
    %cst_72 = arith.constant 0.000000e+00 : f32
    %73 = vector.broadcast %cst_72 : f32 to vector<2x1x64xf32>
    %c0_73 = arith.constant 0 : index
    %c15_74 = arith.constant 15 : index
    %c192_75 = arith.constant 192 : index
    %74 = vector.load %arg35[%c0_73, %c15_74, %c192_75] : memref<2x16x512xf32, #tpu.memory_space<vmem>>, vector<2x1x64xf32>
    tpu.vector_store %arg35[%c0_73, %c15_74, %c192_75], %73 {strides = array<i32>} : memref<2x16x512xf32, #tpu.memory_space<vmem>>, vector<2x1x64xf32>,
    %75 = vector.extract_strided_slice %63 {offsets = [0, 1, 0], sizes = [2, 15, 64], strides = [1, 1, 1]} : vector<2x16x64xf32> to vector<2x15x64xf32>
    %c0_76 = arith.constant 0 : index
    %c0_77 = arith.constant 0 : index
    %c192_78 = arith.constant 192 : index
    %76 = vector.load %arg35[%c0_76, %c0_77, %c192_78] : memref<2x16x512xf32, #tpu.memory_space<vmem>>, vector<2x15x64xf32>
    tpu.vector_store %arg35[%c0_76, %c0_77, %c192_78], %75 {strides = array<i32>} : memref<2x16x512xf32, #tpu.memory_space<vmem>>, vector<2x15x64xf32>,
    %cst_79 = arith.constant 0.000000e+00 : f32
    %77 = vector.broadcast %cst_79 : f32 to vector<2x2x64xf32>
    %c0_80 = arith.constant 0 : index
    %c14_81 = arith.constant 14 : index
    %c256_82 = arith.constant 256 : index
    %78 = vector.load %arg35[%c0_80, %c14_81, %c256_82] : memref<2x16x512xf32, #tpu.memory_space<vmem>>, vector<2x2x64xf32>
    tpu.vector_store %arg35[%c0_80, %c14_81, %c256_82], %77 {strides = array<i32>} : memref<2x16x512xf32, #tpu.memory_space<vmem>>, vector<2x2x64xf32>,
    %79 = vector.extract_strided_slice %63 {offsets = [0, 2, 0], sizes = [2, 14, 64], strides = [1, 1, 1]} : vector<2x16x64xf32> to vector<2x14x64xf32>
    %c0_83 = arith.constant 0 : index
    %c0_84 = arith.constant 0 : index
    %c256_85 = arith.constant 256 : index
    %80 = vector.load %arg35[%c0_83, %c0_84, %c256_85] : memref<2x16x512xf32, #tpu.memory_space<vmem>>, vector<2x14x64xf32>
    tpu.vector_store %arg35[%c0_83, %c0_84, %c256_85], %79 {strides = array<i32>} : memref<2x16x512xf32, #tpu.memory_space<vmem>>, vector<2x14x64xf32>,
    %c0_86 = arith.constant 0 : index
    %c0_87 = arith.constant 0 : index
    %c0_88 = arith.constant 0 : index
    %81 = vector.load %arg35[%c0_86, %c0_87, %c0_88] : memref<2x16x512xf32, #tpu.memory_space<vmem>>, vector<2x16x320xf32>
    %82 = vector.shape_cast %81 : vector<2x16x320xf32> to vector<32x320xf32>
    %83 = arith.truncf %82 : vector<32x320xf32> to vector<32x320xbf16>
    %c0_89 = arith.constant 0 : index
    %c0_90 = arith.constant 0 : index
    %84 = vector.load %arg4[%c0_89, %c0_90] : memref<320x64xbf16, #tpu.memory_space<vmem>>, vector<320x64xbf16>
    %cst_91 = arith.constant dense<0.000000e+00> : vector<32x64xf32>
    %85 = tpu.matmul %83, %84, %cst_91 {dimension_numbers = #tpu.dot_dimension_numbers<[1], [0], [0], [1], [0, 0, 1, 1], [], []>} : vector<32x320xbf16>, vector<320x64xbf16>, vector<32x64xf32> -> vector<32x64xf32>
    %cst_92 = arith.constant dense<0.000000e+00> : vector<64xf32>
    %86 = vector.multi_reduction <add>, %85, %cst_92 [0] : vector<32x64xf32> to vector<64xf32>
    %87 = vector.shape_cast %86 : vector<64xf32> to vector<1x64xf32>
    %cst_93 = arith.constant 3.125000e-02 : f32
    %88 = vector.broadcast %cst_93 : f32 to vector<1x64xf32>
    %89 = arith.mulf %87, %88 : vector<1x64xf32>
    %90 = arith.mulf %85, %85 : vector<32x64xf32>
    %cst_94 = arith.constant dense<0.000000e+00> : vector<64xf32>
    %91 = vector.multi_reduction <add>, %90, %cst_94 [0] : vector<32x64xf32> to vector<64xf32>
    %92 = vector.shape_cast %91 : vector<64xf32> to vector<1x64xf32>
    %cst_95 = arith.constant 3.125000e-02 : f32
    %93 = vector.broadcast %cst_95 : f32 to vector<1x64xf32>
    %94 = arith.mulf %92, %93 : vector<1x64xf32>
    %95 = arith.mulf %89, %89 : vector<1x64xf32>
    %96 = arith.subf %94, %95 : vector<1x64xf32>
    %cst_96 = arith.constant 0.000000e+00 : f32
    %97 = vector.broadcast %cst_96 : f32 to vector<1x64xf32>
    %98 = arith.maximumf %96, %97 : vector<1x64xf32>
    %c0_97 = arith.constant 0 : index
    %c0_98 = arith.constant 0 : index
    %99 = vector.load %arg5[%c0_97, %c0_98] : memref<1x64xf32, #tpu.memory_space<vmem>>, vector<1x64xf32>
    %cst_99 = arith.constant 9.99999974E-6 : f32
    %100 = vector.broadcast %cst_99 : f32 to vector<1x64xf32>
    %101 = arith.addf %98, %100 : vector<1x64xf32>
    %102 = math.rsqrt %101 : vector<1x64xf32>
    %103 = arith.mulf %99, %102 : vector<1x64xf32>
    %104 = vector.broadcast %89 : vector<1x64xf32> to vector<32x64xf32>
    %105 = arith.subf %85, %104 : vector<32x64xf32>
    %106 = vector.broadcast %103 : vector<1x64xf32> to vector<32x64xf32>
    %107 = arith.mulf %105, %106 : vector<32x64xf32>
    %c0_100 = arith.constant 0 : index
    %c0_101 = arith.constant 0 : index
    %108 = vector.load %arg6[%c0_100, %c0_101] : memref<1x64xf32, #tpu.memory_space<vmem>>, vector<1x64xf32>
    %109 = vector.broadcast %108 : vector<1x64xf32> to vector<32x64xf32>
    %110 = arith.addf %107, %109 : vector<32x64xf32>
    %cst_102 = arith.constant 0.000000e+00 : f32
    %111 = vector.broadcast %cst_102 : f32 to vector<32x64xf32>
    %112 = arith.maximumf %110, %111 : vector<32x64xf32>
    %113 = vector.shape_cast %112 : vector<32x64xf32> to vector<2x16x64xf32>
    %cst_103 = arith.constant 0.000000e+00 : f32
    %114 = vector.broadcast %cst_103 : f32 to vector<2x1x64xf32>
    %c0_104 = arith.constant 0 : index
    %c0_105 = arith.constant 0 : index
    %c0_106 = arith.constant 0 : index
    %115 = vector.load %arg35[%c0_104, %c0_105, %c0_106] : memref<2x16x512xf32, #tpu.memory_space<vmem>>, vector<2x1x64xf32>
    tpu.vector_store %arg35[%c0_104, %c0_105, %c0_106], %114 {strides = array<i32>} : memref<2x16x512xf32, #tpu.memory_space<vmem>>, vector<2x1x64xf32>,
    %116 = vector.extract_strided_slice %113 {offsets = [0, 0, 0], sizes = [2, 15, 64], strides = [1, 1, 1]} : vector<2x16x64xf32> to vector<2x15x64xf32>
    %c0_107 = arith.constant 0 : index
    %c1_108 = arith.constant 1 : index
    %c0_109 = arith.constant 0 : index
    %117 = vector.load %arg35[%c0_107, %c1_108, %c0_109] : memref<2x16x512xf32, #tpu.memory_space<vmem>>, vector<2x15x64xf32>
    tpu.vector_store %arg35[%c0_107, %c1_108, %c0_109], %116 {strides = array<i32>} : memref<2x16x512xf32, #tpu.memory_space<vmem>>, vector<2x15x64xf32>,
    %c0_110 = arith.constant 0 : index
    %c0_111 = arith.constant 0 : index
    %c64_112 = arith.constant 64 : index
    %118 = vector.load %arg35[%c0_110, %c0_111, %c64_112] : memref<2x16x512xf32, #tpu.memory_space<vmem>>, vector<2x16x64xf32>
    tpu.vector_store %arg35[%c0_110, %c0_111, %c64_112], %113 {strides = array<i32>} : memref<2x16x512xf32, #tpu.memory_space<vmem>>, vector<2x16x64xf32>,
    %cst_113 = arith.constant 0.000000e+00 : f32
    %119 = vector.broadcast %cst_113 : f32 to vector<2x1x64xf32>
    %c0_114 = arith.constant 0 : index
    %c15_115 = arith.constant 15 : index
    %c128_116 = arith.constant 128 : index
    %120 = vector.load %arg35[%c0_114, %c15_115, %c128_116] : memref<2x16x512xf32, #tpu.memory_space<vmem>>, vector<2x1x64xf32>
    tpu.vector_store %arg35[%c0_114, %c15_115, %c128_116], %119 {strides = array<i32>} : memref<2x16x512xf32, #tpu.memory_space<vmem>>, vector<2x1x64xf32>,
    %121 = vector.extract_strided_slice %113 {offsets = [0, 1, 0], sizes = [2, 15, 64], strides = [1, 1, 1]} : vector<2x16x64xf32> to vector<2x15x64xf32>
    %c0_117 = arith.constant 0 : index
    %c0_118 = arith.constant 0 : index
    %c128_119 = arith.constant 128 : index
    %122 = vector.load %arg35[%c0_117, %c0_118, %c128_119] : memref<2x16x512xf32, #tpu.memory_space<vmem>>, vector<2x15x64xf32>
    tpu.vector_store %arg35[%c0_117, %c0_118, %c128_119], %121 {strides = array<i32>} : memref<2x16x512xf32, #tpu.memory_space<vmem>>, vector<2x15x64xf32>,
    %c0_120 = arith.constant 0 : index
    %c0_121 = arith.constant 0 : index
    %c0_122 = arith.constant 0 : index
    %123 = vector.load %arg35[%c0_120, %c0_121, %c0_122] : memref<2x16x512xf32, #tpu.memory_space<vmem>>, vector<2x16x192xf32>
    %124 = vector.shape_cast %123 : vector<2x16x192xf32> to vector<32x192xf32>
    %125 = arith.truncf %124 : vector<32x192xf32> to vector<32x192xbf16>
    %c0_123 = arith.constant 0 : index
    %c0_124 = arith.constant 0 : index
    %126 = vector.load %arg7[%c0_123, %c0_124] : memref<192x64xbf16, #tpu.memory_space<vmem>>, vector<192x64xbf16>
    %cst_125 = arith.constant dense<0.000000e+00> : vector<32x64xf32>
    %127 = tpu.matmul %125, %126, %cst_125 {dimension_numbers = #tpu.dot_dimension_numbers<[1], [0], [0], [1], [0, 0, 1, 1], [], []>} : vector<32x192xbf16>, vector<192x64xbf16>, vector<32x64xf32> -> vector<32x64xf32>
    %cst_126 = arith.constant dense<0.000000e+00> : vector<64xf32>
    %128 = vector.multi_reduction <add>, %127, %cst_126 [0] : vector<32x64xf32> to vector<64xf32>
    %129 = vector.shape_cast %128 : vector<64xf32> to vector<1x64xf32>
    %cst_127 = arith.constant 3.125000e-02 : f32
    %130 = vector.broadcast %cst_127 : f32 to vector<1x64xf32>
    %131 = arith.mulf %129, %130 : vector<1x64xf32>
    %132 = arith.mulf %127, %127 : vector<32x64xf32>
    %cst_128 = arith.constant dense<0.000000e+00> : vector<64xf32>
    %133 = vector.multi_reduction <add>, %132, %cst_128 [0] : vector<32x64xf32> to vector<64xf32>
    %134 = vector.shape_cast %133 : vector<64xf32> to vector<1x64xf32>
    %cst_129 = arith.constant 3.125000e-02 : f32
    %135 = vector.broadcast %cst_129 : f32 to vector<1x64xf32>
    %136 = arith.mulf %134, %135 : vector<1x64xf32>
    %137 = arith.mulf %131, %131 : vector<1x64xf32>
    %138 = arith.subf %136, %137 : vector<1x64xf32>
    %cst_130 = arith.constant 0.000000e+00 : f32
    %139 = vector.broadcast %cst_130 : f32 to vector<1x64xf32>
    %140 = arith.maximumf %138, %139 : vector<1x64xf32>
    %c0_131 = arith.constant 0 : index
    %c0_132 = arith.constant 0 : index
    %141 = vector.load %arg8[%c0_131, %c0_132] : memref<1x64xf32, #tpu.memory_space<vmem>>, vector<1x64xf32>
    %cst_133 = arith.constant 9.99999974E-6 : f32
    %142 = vector.broadcast %cst_133 : f32 to vector<1x64xf32>
    %143 = arith.addf %140, %142 : vector<1x64xf32>
    %144 = math.rsqrt %143 : vector<1x64xf32>
    %145 = arith.mulf %141, %144 : vector<1x64xf32>
    %146 = vector.broadcast %131 : vector<1x64xf32> to vector<32x64xf32>
    %147 = arith.subf %127, %146 : vector<32x64xf32>
    %148 = vector.broadcast %145 : vector<1x64xf32> to vector<32x64xf32>
    %149 = arith.mulf %147, %148 : vector<32x64xf32>
    %c0_134 = arith.constant 0 : index
    %c0_135 = arith.constant 0 : index
    %150 = vector.load %arg9[%c0_134, %c0_135] : memref<1x64xf32, #tpu.memory_space<vmem>>, vector<1x64xf32>
    %151 = vector.broadcast %150 : vector<1x64xf32> to vector<32x64xf32>
    %152 = arith.addf %149, %151 : vector<32x64xf32>
    %153 = arith.truncf %0 : vector<32x64xf32> to vector<32x64xbf16>
    %c0_136 = arith.constant 0 : index
    %c0_137 = arith.constant 0 : index
    %154 = vector.load %arg10[%c0_136, %c0_137] : memref<64x64xbf16, #tpu.memory_space<vmem>>, vector<64x64xbf16>
    %cst_138 = arith.constant dense<0.000000e+00> : vector<32x64xf32>
    %155 = tpu.matmul %153, %154, %cst_138 {dimension_numbers = #tpu.dot_dimension_numbers<[1], [0], [0], [1], [0, 0, 1, 1], [], []>} : vector<32x64xbf16>, vector<64x64xbf16>, vector<32x64xf32> -> vector<32x64xf32>
    %c0_139 = arith.constant 0 : index
    %c0_140 = arith.constant 0 : index
    %156 = vector.load %arg11[%c0_139, %c0_140] : memref<1x64xf32, #tpu.memory_space<vmem>>, vector<1x64xf32>
    %157 = vector.broadcast %156 : vector<1x64xf32> to vector<32x64xf32>
    %158 = arith.addf %155, %157 : vector<32x64xf32>
    %159 = arith.addf %158, %152 : vector<32x64xf32>
    %cst_141 = arith.constant 0.000000e+00 : f32
    %160 = vector.broadcast %cst_141 : f32 to vector<32x64xf32>
    %161 = arith.maximumf %159, %160 : vector<32x64xf32>
    %162 = vector.shape_cast %161 : vector<32x64xf32> to vector<2x16x64xf32>
    %cst_142 = arith.constant 0.000000e+00 : f32
    %163 = vector.broadcast %cst_142 : f32 to vector<2x3x64xf32>
    %c0_143 = arith.constant 0 : index
    %c0_144 = arith.constant 0 : index
    %c0_145 = arith.constant 0 : index
    %164 = vector.load %arg35[%c0_143, %c0_144, %c0_145] : memref<2x16x512xf32, #tpu.memory_space<vmem>>, vector<2x3x64xf32>
    tpu.vector_store %arg35[%c0_143, %c0_144, %c0_145], %163 {strides = array<i32>} : memref<2x16x512xf32, #tpu.memory_space<vmem>>, vector<2x3x64xf32>,
    %165 = vector.extract_strided_slice %162 {offsets = [0, 0, 0], sizes = [2, 13, 64], strides = [1, 1, 1]} : vector<2x16x64xf32> to vector<2x13x64xf32>
    %c0_146 = arith.constant 0 : index
    %c3_147 = arith.constant 3 : index
    %c0_148 = arith.constant 0 : index
    %166 = vector.load %arg35[%c0_146, %c3_147, %c0_148] : memref<2x16x512xf32, #tpu.memory_space<vmem>>, vector<2x13x64xf32>
    tpu.vector_store %arg35[%c0_146, %c3_147, %c0_148], %165 {strides = array<i32>} : memref<2x16x512xf32, #tpu.memory_space<vmem>>, vector<2x13x64xf32>,
    %cst_149 = arith.constant 0.000000e+00 : f32
    %167 = vector.broadcast %cst_149 : f32 to vector<2x2x64xf32>
    %c0_150 = arith.constant 0 : index
    %c0_151 = arith.constant 0 : index
    %c64_152 = arith.constant 64 : index
    %168 = vector.load %arg35[%c0_150, %c0_151, %c64_152] : memref<2x16x512xf32, #tpu.memory_space<vmem>>, vector<2x2x64xf32>
    tpu.vector_store %arg35[%c0_150, %c0_151, %c64_152], %167 {strides = array<i32>} : memref<2x16x512xf32, #tpu.memory_space<vmem>>, vector<2x2x64xf32>,
    %169 = vector.extract_strided_slice %162 {offsets = [0, 0, 0], sizes = [2, 14, 64], strides = [1, 1, 1]} : vector<2x16x64xf32> to vector<2x14x64xf32>
    %c0_153 = arith.constant 0 : index
    %c2_154 = arith.constant 2 : index
    %c64_155 = arith.constant 64 : index
    %170 = vector.load %arg35[%c0_153, %c2_154, %c64_155] : memref<2x16x512xf32, #tpu.memory_space<vmem>>, vector<2x14x64xf32>
    tpu.vector_store %arg35[%c0_153, %c2_154, %c64_155], %169 {strides = array<i32>} : memref<2x16x512xf32, #tpu.memory_space<vmem>>, vector<2x14x64xf32>,
    %cst_156 = arith.constant 0.000000e+00 : f32
    %171 = vector.broadcast %cst_156 : f32 to vector<2x1x64xf32>
    %c0_157 = arith.constant 0 : index
    %c0_158 = arith.constant 0 : index
    %c128_159 = arith.constant 128 : index
    %172 = vector.load %arg35[%c0_157, %c0_158, %c128_159] : memref<2x16x512xf32, #tpu.memory_space<vmem>>, vector<2x1x64xf32>
    tpu.vector_store %arg35[%c0_157, %c0_158, %c128_159], %171 {strides = array<i32>} : memref<2x16x512xf32, #tpu.memory_space<vmem>>, vector<2x1x64xf32>,
    %173 = vector.extract_strided_slice %162 {offsets = [0, 0, 0], sizes = [2, 15, 64], strides = [1, 1, 1]} : vector<2x16x64xf32> to vector<2x15x64xf32>
    %c0_160 = arith.constant 0 : index
    %c1_161 = arith.constant 1 : index
    %c128_162 = arith.constant 128 : index
    %174 = vector.load %arg35[%c0_160, %c1_161, %c128_162] : memref<2x16x512xf32, #tpu.memory_space<vmem>>, vector<2x15x64xf32>
    tpu.vector_store %arg35[%c0_160, %c1_161, %c128_162], %173 {strides = array<i32>} : memref<2x16x512xf32, #tpu.memory_space<vmem>>, vector<2x15x64xf32>,
    %c0_163 = arith.constant 0 : index
    %c0_164 = arith.constant 0 : index
    %c192_165 = arith.constant 192 : index
    %175 = vector.load %arg35[%c0_163, %c0_164, %c192_165] : memref<2x16x512xf32, #tpu.memory_space<vmem>>, vector<2x16x64xf32>
    tpu.vector_store %arg35[%c0_163, %c0_164, %c192_165], %162 {strides = array<i32>} : memref<2x16x512xf32, #tpu.memory_space<vmem>>, vector<2x16x64xf32>,
    %cst_166 = arith.constant 0.000000e+00 : f32
    %176 = vector.broadcast %cst_166 : f32 to vector<2x1x64xf32>
    %c0_167 = arith.constant 0 : index
    %c15_168 = arith.constant 15 : index
    %c256_169 = arith.constant 256 : index
    %177 = vector.load %arg35[%c0_167, %c15_168, %c256_169] : memref<2x16x512xf32, #tpu.memory_space<vmem>>, vector<2x1x64xf32>
    tpu.vector_store %arg35[%c0_167, %c15_168, %c256_169], %176 {strides = array<i32>} : memref<2x16x512xf32, #tpu.memory_space<vmem>>, vector<2x1x64xf32>,
    %178 = vector.extract_strided_slice %162 {offsets = [0, 1, 0], sizes = [2, 15, 64], strides = [1, 1, 1]} : vector<2x16x64xf32> to vector<2x15x64xf32>
    %c0_170 = arith.constant 0 : index
    %c0_171 = arith.constant 0 : index
    %c256_172 = arith.constant 256 : index
    %179 = vector.load %arg35[%c0_170, %c0_171, %c256_172] : memref<2x16x512xf32, #tpu.memory_space<vmem>>, vector<2x15x64xf32>
    tpu.vector_store %arg35[%c0_170, %c0_171, %c256_172], %178 {strides = array<i32>} : memref<2x16x512xf32, #tpu.memory_space<vmem>>, vector<2x15x64xf32>,
    %cst_173 = arith.constant 0.000000e+00 : f32
    %180 = vector.broadcast %cst_173 : f32 to vector<2x2x64xf32>
    %c0_174 = arith.constant 0 : index
    %c14_175 = arith.constant 14 : index
    %c320_176 = arith.constant 320 : index
    %181 = vector.load %arg35[%c0_174, %c14_175, %c320_176] : memref<2x16x512xf32, #tpu.memory_space<vmem>>, vector<2x2x64xf32>
    tpu.vector_store %arg35[%c0_174, %c14_175, %c320_176], %180 {strides = array<i32>} : memref<2x16x512xf32, #tpu.memory_space<vmem>>, vector<2x2x64xf32>,
    %182 = vector.extract_strided_slice %162 {offsets = [0, 2, 0], sizes = [2, 14, 64], strides = [1, 1, 1]} : vector<2x16x64xf32> to vector<2x14x64xf32>
    %c0_177 = arith.constant 0 : index
    %c0_178 = arith.constant 0 : index
    %c320_179 = arith.constant 320 : index
    %183 = vector.load %arg35[%c0_177, %c0_178, %c320_179] : memref<2x16x512xf32, #tpu.memory_space<vmem>>, vector<2x14x64xf32>
    tpu.vector_store %arg35[%c0_177, %c0_178, %c320_179], %182 {strides = array<i32>} : memref<2x16x512xf32, #tpu.memory_space<vmem>>, vector<2x14x64xf32>,
    %cst_180 = arith.constant 0.000000e+00 : f32
    %184 = vector.broadcast %cst_180 : f32 to vector<2x3x64xf32>
    %c0_181 = arith.constant 0 : index
    %c13_182 = arith.constant 13 : index
    %c384_183 = arith.constant 384 : index
    %185 = vector.load %arg35[%c0_181, %c13_182, %c384_183] : memref<2x16x512xf32, #tpu.memory_space<vmem>>, vector<2x3x64xf32>
    tpu.vector_store %arg35[%c0_181, %c13_182, %c384_183], %184 {strides = array<i32>} : memref<2x16x512xf32, #tpu.memory_space<vmem>>, vector<2x3x64xf32>,
    %186 = vector.extract_strided_slice %162 {offsets = [0, 3, 0], sizes = [2, 13, 64], strides = [1, 1, 1]} : vector<2x16x64xf32> to vector<2x13x64xf32>
    %c0_184 = arith.constant 0 : index
    %c0_185 = arith.constant 0 : index
    %c384_186 = arith.constant 384 : index
    %187 = vector.load %arg35[%c0_184, %c0_185, %c384_186] : memref<2x16x512xf32, #tpu.memory_space<vmem>>, vector<2x13x64xf32>
    tpu.vector_store %arg35[%c0_184, %c0_185, %c384_186], %186 {strides = array<i32>} : memref<2x16x512xf32, #tpu.memory_space<vmem>>, vector<2x13x64xf32>,
    %cst_187 = arith.constant 0.000000e+00 : f32
    %188 = vector.broadcast %cst_187 : f32 to vector<2x4x64xf32>
    %c0_188 = arith.constant 0 : index
    %c12_189 = arith.constant 12 : index
    %c448_190 = arith.constant 448 : index
    %189 = vector.load %arg35[%c0_188, %c12_189, %c448_190] : memref<2x16x512xf32, #tpu.memory_space<vmem>>, vector<2x4x64xf32>
    tpu.vector_store %arg35[%c0_188, %c12_189, %c448_190], %188 {strides = array<i32>} : memref<2x16x512xf32, #tpu.memory_space<vmem>>, vector<2x4x64xf32>,
    %190 = vector.extract_strided_slice %162 {offsets = [0, 4, 0], sizes = [2, 12, 64], strides = [1, 1, 1]} : vector<2x16x64xf32> to vector<2x12x64xf32>
    %c0_191 = arith.constant 0 : index
    %c0_192 = arith.constant 0 : index
    %c448_193 = arith.constant 448 : index
    %191 = vector.load %arg35[%c0_191, %c0_192, %c448_193] : memref<2x16x512xf32, #tpu.memory_space<vmem>>, vector<2x12x64xf32>
    tpu.vector_store %arg35[%c0_191, %c0_192, %c448_193], %190 {strides = array<i32>} : memref<2x16x512xf32, #tpu.memory_space<vmem>>, vector<2x12x64xf32>,
    %c0_194 = arith.constant 0 : index
    %c0_195 = arith.constant 0 : index
    %c0_196 = arith.constant 0 : index
    %192 = vector.load %arg35[%c0_194, %c0_195, %c0_196] : memref<2x16x512xf32, #tpu.memory_space<vmem>>, vector<2x16x512xf32>
    %193 = vector.shape_cast %192 : vector<2x16x512xf32> to vector<32x512xf32>
    %194 = arith.truncf %193 : vector<32x512xf32> to vector<32x512xbf16>
    %c0_197 = arith.constant 0 : index
    %c0_198 = arith.constant 0 : index
    %195 = vector.load %arg12[%c0_197, %c0_198] : memref<512x64xbf16, #tpu.memory_space<vmem>>, vector<512x64xbf16>
    %cst_199 = arith.constant dense<0.000000e+00> : vector<32x64xf32>
    %196 = tpu.matmul %194, %195, %cst_199 {dimension_numbers = #tpu.dot_dimension_numbers<[1], [0], [0], [1], [0, 0, 1, 1], [], []>} : vector<32x512xbf16>, vector<512x64xbf16>, vector<32x64xf32> -> vector<32x64xf32>
    %cst_200 = arith.constant dense<0.000000e+00> : vector<64xf32>
    %197 = vector.multi_reduction <add>, %196, %cst_200 [0] : vector<32x64xf32> to vector<64xf32>
    %198 = vector.shape_cast %197 : vector<64xf32> to vector<1x64xf32>
    %cst_201 = arith.constant 3.125000e-02 : f32
    %199 = vector.broadcast %cst_201 : f32 to vector<1x64xf32>
    %200 = arith.mulf %198, %199 : vector<1x64xf32>
    %201 = arith.mulf %196, %196 : vector<32x64xf32>
    %cst_202 = arith.constant dense<0.000000e+00> : vector<64xf32>
    %202 = vector.multi_reduction <add>, %201, %cst_202 [0] : vector<32x64xf32> to vector<64xf32>
    %203 = vector.shape_cast %202 : vector<64xf32> to vector<1x64xf32>
    %cst_203 = arith.constant 3.125000e-02 : f32
    %204 = vector.broadcast %cst_203 : f32 to vector<1x64xf32>
    %205 = arith.mulf %203, %204 : vector<1x64xf32>
    %206 = arith.mulf %200, %200 : vector<1x64xf32>
    %207 = arith.subf %205, %206 : vector<1x64xf32>
    %cst_204 = arith.constant 0.000000e+00 : f32
    %208 = vector.broadcast %cst_204 : f32 to vector<1x64xf32>
    %209 = arith.maximumf %207, %208 : vector<1x64xf32>
    %c0_205 = arith.constant 0 : index
    %c0_206 = arith.constant 0 : index
    %210 = vector.load %arg13[%c0_205, %c0_206] : memref<1x64xf32, #tpu.memory_space<vmem>>, vector<1x64xf32>
    %cst_207 = arith.constant 9.99999974E-6 : f32
    %211 = vector.broadcast %cst_207 : f32 to vector<1x64xf32>
    %212 = arith.addf %209, %211 : vector<1x64xf32>
    %213 = math.rsqrt %212 : vector<1x64xf32>
    %214 = arith.mulf %210, %213 : vector<1x64xf32>
    %215 = vector.broadcast %200 : vector<1x64xf32> to vector<32x64xf32>
    %216 = arith.subf %196, %215 : vector<32x64xf32>
    %217 = vector.broadcast %214 : vector<1x64xf32> to vector<32x64xf32>
    %218 = arith.mulf %216, %217 : vector<32x64xf32>
    %c0_208 = arith.constant 0 : index
    %c0_209 = arith.constant 0 : index
    %219 = vector.load %arg14[%c0_208, %c0_209] : memref<1x64xf32, #tpu.memory_space<vmem>>, vector<1x64xf32>
    %220 = vector.broadcast %219 : vector<1x64xf32> to vector<32x64xf32>
    %221 = arith.addf %218, %220 : vector<32x64xf32>
    %cst_210 = arith.constant 0.000000e+00 : f32
    %222 = vector.broadcast %cst_210 : f32 to vector<32x64xf32>
    %223 = arith.maximumf %221, %222 : vector<32x64xf32>
    %224 = vector.shape_cast %223 : vector<32x64xf32> to vector<2x16x64xf32>
    %cst_211 = arith.constant 0.000000e+00 : f32
    %225 = vector.broadcast %cst_211 : f32 to vector<2x2x64xf32>
    %c0_212 = arith.constant 0 : index
    %c0_213 = arith.constant 0 : index
    %c0_214 = arith.constant 0 : index
    %226 = vector.load %arg35[%c0_212, %c0_213, %c0_214] : memref<2x16x512xf32, #tpu.memory_space<vmem>>, vector<2x2x64xf32>
    tpu.vector_store %arg35[%c0_212, %c0_213, %c0_214], %225 {strides = array<i32>} : memref<2x16x512xf32, #tpu.memory_space<vmem>>, vector<2x2x64xf32>,
    %227 = vector.extract_strided_slice %224 {offsets = [0, 0, 0], sizes = [2, 14, 64], strides = [1, 1, 1]} : vector<2x16x64xf32> to vector<2x14x64xf32>
    %c0_215 = arith.constant 0 : index
    %c2_216 = arith.constant 2 : index
    %c0_217 = arith.constant 0 : index
    %228 = vector.load %arg35[%c0_215, %c2_216, %c0_217] : memref<2x16x512xf32, #tpu.memory_space<vmem>>, vector<2x14x64xf32>
    tpu.vector_store %arg35[%c0_215, %c2_216, %c0_217], %227 {strides = array<i32>} : memref<2x16x512xf32, #tpu.memory_space<vmem>>, vector<2x14x64xf32>,
    %cst_218 = arith.constant 0.000000e+00 : f32
    %229 = vector.broadcast %cst_218 : f32 to vector<2x1x64xf32>
    %c0_219 = arith.constant 0 : index
    %c0_220 = arith.constant 0 : index
    %c64_221 = arith.constant 64 : index
    %230 = vector.load %arg35[%c0_219, %c0_220, %c64_221] : memref<2x16x512xf32, #tpu.memory_space<vmem>>, vector<2x1x64xf32>
    tpu.vector_store %arg35[%c0_219, %c0_220, %c64_221], %229 {strides = array<i32>} : memref<2x16x512xf32, #tpu.memory_space<vmem>>, vector<2x1x64xf32>,
    %231 = vector.extract_strided_slice %224 {offsets = [0, 0, 0], sizes = [2, 15, 64], strides = [1, 1, 1]} : vector<2x16x64xf32> to vector<2x15x64xf32>
    %c0_222 = arith.constant 0 : index
    %c1_223 = arith.constant 1 : index
    %c64_224 = arith.constant 64 : index
    %232 = vector.load %arg35[%c0_222, %c1_223, %c64_224] : memref<2x16x512xf32, #tpu.memory_space<vmem>>, vector<2x15x64xf32>
    tpu.vector_store %arg35[%c0_222, %c1_223, %c64_224], %231 {strides = array<i32>} : memref<2x16x512xf32, #tpu.memory_space<vmem>>, vector<2x15x64xf32>,
    %c0_225 = arith.constant 0 : index
    %c0_226 = arith.constant 0 : index
    %c128_227 = arith.constant 128 : index
    %233 = vector.load %arg35[%c0_225, %c0_226, %c128_227] : memref<2x16x512xf32, #tpu.memory_space<vmem>>, vector<2x16x64xf32>
    tpu.vector_store %arg35[%c0_225, %c0_226, %c128_227], %224 {strides = array<i32>} : memref<2x16x512xf32, #tpu.memory_space<vmem>>, vector<2x16x64xf32>,
    %cst_228 = arith.constant 0.000000e+00 : f32
    %234 = vector.broadcast %cst_228 : f32 to vector<2x1x64xf32>
    %c0_229 = arith.constant 0 : index
    %c15_230 = arith.constant 15 : index
    %c192_231 = arith.constant 192 : index
    %235 = vector.load %arg35[%c0_229, %c15_230, %c192_231] : memref<2x16x512xf32, #tpu.memory_space<vmem>>, vector<2x1x64xf32>
    tpu.vector_store %arg35[%c0_229, %c15_230, %c192_231], %234 {strides = array<i32>} : memref<2x16x512xf32, #tpu.memory_space<vmem>>, vector<2x1x64xf32>,
    %236 = vector.extract_strided_slice %224 {offsets = [0, 1, 0], sizes = [2, 15, 64], strides = [1, 1, 1]} : vector<2x16x64xf32> to vector<2x15x64xf32>
    %c0_232 = arith.constant 0 : index
    %c0_233 = arith.constant 0 : index
    %c192_234 = arith.constant 192 : index
    %237 = vector.load %arg35[%c0_232, %c0_233, %c192_234] : memref<2x16x512xf32, #tpu.memory_space<vmem>>, vector<2x15x64xf32>
    tpu.vector_store %arg35[%c0_232, %c0_233, %c192_234], %236 {strides = array<i32>} : memref<2x16x512xf32, #tpu.memory_space<vmem>>, vector<2x15x64xf32>,
    %cst_235 = arith.constant 0.000000e+00 : f32
    %238 = vector.broadcast %cst_235 : f32 to vector<2x2x64xf32>
    %c0_236 = arith.constant 0 : index
    %c14_237 = arith.constant 14 : index
    %c256_238 = arith.constant 256 : index
    %239 = vector.load %arg35[%c0_236, %c14_237, %c256_238] : memref<2x16x512xf32, #tpu.memory_space<vmem>>, vector<2x2x64xf32>
    tpu.vector_store %arg35[%c0_236, %c14_237, %c256_238], %238 {strides = array<i32>} : memref<2x16x512xf32, #tpu.memory_space<vmem>>, vector<2x2x64xf32>,
    %240 = vector.extract_strided_slice %224 {offsets = [0, 2, 0], sizes = [2, 14, 64], strides = [1, 1, 1]} : vector<2x16x64xf32> to vector<2x14x64xf32>
    %c0_239 = arith.constant 0 : index
    %c0_240 = arith.constant 0 : index
    %c256_241 = arith.constant 256 : index
    %241 = vector.load %arg35[%c0_239, %c0_240, %c256_241] : memref<2x16x512xf32, #tpu.memory_space<vmem>>, vector<2x14x64xf32>
    tpu.vector_store %arg35[%c0_239, %c0_240, %c256_241], %240 {strides = array<i32>} : memref<2x16x512xf32, #tpu.memory_space<vmem>>, vector<2x14x64xf32>,
    %c0_242 = arith.constant 0 : index
    %c0_243 = arith.constant 0 : index
    %c0_244 = arith.constant 0 : index
    %242 = vector.load %arg35[%c0_242, %c0_243, %c0_244] : memref<2x16x512xf32, #tpu.memory_space<vmem>>, vector<2x16x320xf32>
    %243 = vector.shape_cast %242 : vector<2x16x320xf32> to vector<32x320xf32>
    %244 = arith.truncf %243 : vector<32x320xf32> to vector<32x320xbf16>
    %c0_245 = arith.constant 0 : index
    %c0_246 = arith.constant 0 : index
    %245 = vector.load %arg15[%c0_245, %c0_246] : memref<320x64xbf16, #tpu.memory_space<vmem>>, vector<320x64xbf16>
    %cst_247 = arith.constant dense<0.000000e+00> : vector<32x64xf32>
    %246 = tpu.matmul %244, %245, %cst_247 {dimension_numbers = #tpu.dot_dimension_numbers<[1], [0], [0], [1], [0, 0, 1, 1], [], []>} : vector<32x320xbf16>, vector<320x64xbf16>, vector<32x64xf32> -> vector<32x64xf32>
    %cst_248 = arith.constant dense<0.000000e+00> : vector<64xf32>
    %247 = vector.multi_reduction <add>, %246, %cst_248 [0] : vector<32x64xf32> to vector<64xf32>
    %248 = vector.shape_cast %247 : vector<64xf32> to vector<1x64xf32>
    %cst_249 = arith.constant 3.125000e-02 : f32
    %249 = vector.broadcast %cst_249 : f32 to vector<1x64xf32>
    %250 = arith.mulf %248, %249 : vector<1x64xf32>
    %251 = arith.mulf %246, %246 : vector<32x64xf32>
    %cst_250 = arith.constant dense<0.000000e+00> : vector<64xf32>
    %252 = vector.multi_reduction <add>, %251, %cst_250 [0] : vector<32x64xf32> to vector<64xf32>
    %253 = vector.shape_cast %252 : vector<64xf32> to vector<1x64xf32>
    %cst_251 = arith.constant 3.125000e-02 : f32
    %254 = vector.broadcast %cst_251 : f32 to vector<1x64xf32>
    %255 = arith.mulf %253, %254 : vector<1x64xf32>
    %256 = arith.mulf %250, %250 : vector<1x64xf32>
    %257 = arith.subf %255, %256 : vector<1x64xf32>
    %cst_252 = arith.constant 0.000000e+00 : f32
    %258 = vector.broadcast %cst_252 : f32 to vector<1x64xf32>
    %259 = arith.maximumf %257, %258 : vector<1x64xf32>
    %c0_253 = arith.constant 0 : index
    %c0_254 = arith.constant 0 : index
    %260 = vector.load %arg16[%c0_253, %c0_254] : memref<1x64xf32, #tpu.memory_space<vmem>>, vector<1x64xf32>
    %cst_255 = arith.constant 9.99999974E-6 : f32
    %261 = vector.broadcast %cst_255 : f32 to vector<1x64xf32>
    %262 = arith.addf %259, %261 : vector<1x64xf32>
    %263 = math.rsqrt %262 : vector<1x64xf32>
    %264 = arith.mulf %260, %263 : vector<1x64xf32>
    %265 = vector.broadcast %250 : vector<1x64xf32> to vector<32x64xf32>
    %266 = arith.subf %246, %265 : vector<32x64xf32>
    %267 = vector.broadcast %264 : vector<1x64xf32> to vector<32x64xf32>
    %268 = arith.mulf %266, %267 : vector<32x64xf32>
    %c0_256 = arith.constant 0 : index
    %c0_257 = arith.constant 0 : index
    %269 = vector.load %arg17[%c0_256, %c0_257] : memref<1x64xf32, #tpu.memory_space<vmem>>, vector<1x64xf32>
    %270 = vector.broadcast %269 : vector<1x64xf32> to vector<32x64xf32>
    %271 = arith.addf %268, %270 : vector<32x64xf32>
    %cst_258 = arith.constant 0.000000e+00 : f32
    %272 = vector.broadcast %cst_258 : f32 to vector<32x64xf32>
    %273 = arith.maximumf %271, %272 : vector<32x64xf32>
    %274 = vector.shape_cast %273 : vector<32x64xf32> to vector<2x16x64xf32>
    %cst_259 = arith.constant 0.000000e+00 : f32
    %275 = vector.broadcast %cst_259 : f32 to vector<2x1x64xf32>
    %c0_260 = arith.constant 0 : index
    %c0_261 = arith.constant 0 : index
    %c0_262 = arith.constant 0 : index
    %276 = vector.load %arg35[%c0_260, %c0_261, %c0_262] : memref<2x16x512xf32, #tpu.memory_space<vmem>>, vector<2x1x64xf32>
    tpu.vector_store %arg35[%c0_260, %c0_261, %c0_262], %275 {strides = array<i32>} : memref<2x16x512xf32, #tpu.memory_space<vmem>>, vector<2x1x64xf32>,
    %277 = vector.extract_strided_slice %274 {offsets = [0, 0, 0], sizes = [2, 15, 64], strides = [1, 1, 1]} : vector<2x16x64xf32> to vector<2x15x64xf32>
    %c0_263 = arith.constant 0 : index
    %c1_264 = arith.constant 1 : index
    %c0_265 = arith.constant 0 : index
    %278 = vector.load %arg35[%c0_263, %c1_264, %c0_265] : memref<2x16x512xf32, #tpu.memory_space<vmem>>, vector<2x15x64xf32>
    tpu.vector_store %arg35[%c0_263, %c1_264, %c0_265], %277 {strides = array<i32>} : memref<2x16x512xf32, #tpu.memory_space<vmem>>, vector<2x15x64xf32>,
    %c0_266 = arith.constant 0 : index
    %c0_267 = arith.constant 0 : index
    %c64_268 = arith.constant 64 : index
    %279 = vector.load %arg35[%c0_266, %c0_267, %c64_268] : memref<2x16x512xf32, #tpu.memory_space<vmem>>, vector<2x16x64xf32>
    tpu.vector_store %arg35[%c0_266, %c0_267, %c64_268], %274 {strides = array<i32>} : memref<2x16x512xf32, #tpu.memory_space<vmem>>, vector<2x16x64xf32>,
    %cst_269 = arith.constant 0.000000e+00 : f32
    %280 = vector.broadcast %cst_269 : f32 to vector<2x1x64xf32>
    %c0_270 = arith.constant 0 : index
    %c15_271 = arith.constant 15 : index
    %c128_272 = arith.constant 128 : index
    %281 = vector.load %arg35[%c0_270, %c15_271, %c128_272] : memref<2x16x512xf32, #tpu.memory_space<vmem>>, vector<2x1x64xf32>
    tpu.vector_store %arg35[%c0_270, %c15_271, %c128_272], %280 {strides = array<i32>} : memref<2x16x512xf32, #tpu.memory_space<vmem>>, vector<2x1x64xf32>,
    %282 = vector.extract_strided_slice %274 {offsets = [0, 1, 0], sizes = [2, 15, 64], strides = [1, 1, 1]} : vector<2x16x64xf32> to vector<2x15x64xf32>
    %c0_273 = arith.constant 0 : index
    %c0_274 = arith.constant 0 : index
    %c128_275 = arith.constant 128 : index
    %283 = vector.load %arg35[%c0_273, %c0_274, %c128_275] : memref<2x16x512xf32, #tpu.memory_space<vmem>>, vector<2x15x64xf32>
    tpu.vector_store %arg35[%c0_273, %c0_274, %c128_275], %282 {strides = array<i32>} : memref<2x16x512xf32, #tpu.memory_space<vmem>>, vector<2x15x64xf32>,
    %c0_276 = arith.constant 0 : index
    %c0_277 = arith.constant 0 : index
    %c0_278 = arith.constant 0 : index
    %284 = vector.load %arg35[%c0_276, %c0_277, %c0_278] : memref<2x16x512xf32, #tpu.memory_space<vmem>>, vector<2x16x192xf32>
    %285 = vector.shape_cast %284 : vector<2x16x192xf32> to vector<32x192xf32>
    %286 = arith.truncf %285 : vector<32x192xf32> to vector<32x192xbf16>
    %c0_279 = arith.constant 0 : index
    %c0_280 = arith.constant 0 : index
    %287 = vector.load %arg18[%c0_279, %c0_280] : memref<192x64xbf16, #tpu.memory_space<vmem>>, vector<192x64xbf16>
    %cst_281 = arith.constant dense<0.000000e+00> : vector<32x64xf32>
    %288 = tpu.matmul %286, %287, %cst_281 {dimension_numbers = #tpu.dot_dimension_numbers<[1], [0], [0], [1], [0, 0, 1, 1], [], []>} : vector<32x192xbf16>, vector<192x64xbf16>, vector<32x64xf32> -> vector<32x64xf32>
    %cst_282 = arith.constant dense<0.000000e+00> : vector<64xf32>
    %289 = vector.multi_reduction <add>, %288, %cst_282 [0] : vector<32x64xf32> to vector<64xf32>
    %290 = vector.shape_cast %289 : vector<64xf32> to vector<1x64xf32>
    %cst_283 = arith.constant 3.125000e-02 : f32
    %291 = vector.broadcast %cst_283 : f32 to vector<1x64xf32>
    %292 = arith.mulf %290, %291 : vector<1x64xf32>
    %293 = arith.mulf %288, %288 : vector<32x64xf32>
    %cst_284 = arith.constant dense<0.000000e+00> : vector<64xf32>
    %294 = vector.multi_reduction <add>, %293, %cst_284 [0] : vector<32x64xf32> to vector<64xf32>
    %295 = vector.shape_cast %294 : vector<64xf32> to vector<1x64xf32>
    %cst_285 = arith.constant 3.125000e-02 : f32
    %296 = vector.broadcast %cst_285 : f32 to vector<1x64xf32>
    %297 = arith.mulf %295, %296 : vector<1x64xf32>
    %298 = arith.mulf %292, %292 : vector<1x64xf32>
    %299 = arith.subf %297, %298 : vector<1x64xf32>
    %cst_286 = arith.constant 0.000000e+00 : f32
    %300 = vector.broadcast %cst_286 : f32 to vector<1x64xf32>
    %301 = arith.maximumf %299, %300 : vector<1x64xf32>
    %c0_287 = arith.constant 0 : index
    %c0_288 = arith.constant 0 : index
    %302 = vector.load %arg19[%c0_287, %c0_288] : memref<1x64xf32, #tpu.memory_space<vmem>>, vector<1x64xf32>
    %cst_289 = arith.constant 9.99999974E-6 : f32
    %303 = vector.broadcast %cst_289 : f32 to vector<1x64xf32>
    %304 = arith.addf %301, %303 : vector<1x64xf32>
    %305 = math.rsqrt %304 : vector<1x64xf32>
    %306 = arith.mulf %302, %305 : vector<1x64xf32>
    %307 = vector.broadcast %292 : vector<1x64xf32> to vector<32x64xf32>
    %308 = arith.subf %288, %307 : vector<32x64xf32>
    %309 = vector.broadcast %306 : vector<1x64xf32> to vector<32x64xf32>
    %310 = arith.mulf %308, %309 : vector<32x64xf32>
    %c0_290 = arith.constant 0 : index
    %c0_291 = arith.constant 0 : index
    %311 = vector.load %arg20[%c0_290, %c0_291] : memref<1x64xf32, #tpu.memory_space<vmem>>, vector<1x64xf32>
    %312 = vector.broadcast %311 : vector<1x64xf32> to vector<32x64xf32>
    %313 = arith.addf %310, %312 : vector<32x64xf32>
    %314 = arith.truncf %161 : vector<32x64xf32> to vector<32x64xbf16>
    %c0_292 = arith.constant 0 : index
    %c0_293 = arith.constant 0 : index
    %315 = vector.load %arg21[%c0_292, %c0_293] : memref<64x64xbf16, #tpu.memory_space<vmem>>, vector<64x64xbf16>
    %cst_294 = arith.constant dense<0.000000e+00> : vector<32x64xf32>
    %316 = tpu.matmul %314, %315, %cst_294 {dimension_numbers = #tpu.dot_dimension_numbers<[1], [0], [0], [1], [0, 0, 1, 1], [], []>} : vector<32x64xbf16>, vector<64x64xbf16>, vector<32x64xf32> -> vector<32x64xf32>
    %c0_295 = arith.constant 0 : index
    %c0_296 = arith.constant 0 : index
    %317 = vector.load %arg22[%c0_295, %c0_296] : memref<1x64xf32, #tpu.memory_space<vmem>>, vector<1x64xf32>
    %318 = vector.broadcast %317 : vector<1x64xf32> to vector<32x64xf32>
    %319 = arith.addf %316, %318 : vector<32x64xf32>
    %320 = arith.addf %319, %313 : vector<32x64xf32>
    %cst_297 = arith.constant 0.000000e+00 : f32
    %321 = vector.broadcast %cst_297 : f32 to vector<32x64xf32>
    %322 = arith.maximumf %320, %321 : vector<32x64xf32>
    %323 = vector.shape_cast %322 : vector<32x64xf32> to vector<2x16x64xf32>
    %cst_298 = arith.constant 0.000000e+00 : f32
    %324 = vector.broadcast %cst_298 : f32 to vector<2x3x64xf32>
    %c0_299 = arith.constant 0 : index
    %c0_300 = arith.constant 0 : index
    %c0_301 = arith.constant 0 : index
    %325 = vector.load %arg35[%c0_299, %c0_300, %c0_301] : memref<2x16x512xf32, #tpu.memory_space<vmem>>, vector<2x3x64xf32>
    tpu.vector_store %arg35[%c0_299, %c0_300, %c0_301], %324 {strides = array<i32>} : memref<2x16x512xf32, #tpu.memory_space<vmem>>, vector<2x3x64xf32>,
    %326 = vector.extract_strided_slice %323 {offsets = [0, 0, 0], sizes = [2, 13, 64], strides = [1, 1, 1]} : vector<2x16x64xf32> to vector<2x13x64xf32>
    %c0_302 = arith.constant 0 : index
    %c3_303 = arith.constant 3 : index
    %c0_304 = arith.constant 0 : index
    %327 = vector.load %arg35[%c0_302, %c3_303, %c0_304] : memref<2x16x512xf32, #tpu.memory_space<vmem>>, vector<2x13x64xf32>
    tpu.vector_store %arg35[%c0_302, %c3_303, %c0_304], %326 {strides = array<i32>} : memref<2x16x512xf32, #tpu.memory_space<vmem>>, vector<2x13x64xf32>,
    %cst_305 = arith.constant 0.000000e+00 : f32
    %328 = vector.broadcast %cst_305 : f32 to vector<2x2x64xf32>
    %c0_306 = arith.constant 0 : index
    %c0_307 = arith.constant 0 : index
    %c64_308 = arith.constant 64 : index
    %329 = vector.load %arg35[%c0_306, %c0_307, %c64_308] : memref<2x16x512xf32, #tpu.memory_space<vmem>>, vector<2x2x64xf32>
    tpu.vector_store %arg35[%c0_306, %c0_307, %c64_308], %328 {strides = array<i32>} : memref<2x16x512xf32, #tpu.memory_space<vmem>>, vector<2x2x64xf32>,
    %330 = vector.extract_strided_slice %323 {offsets = [0, 0, 0], sizes = [2, 14, 64], strides = [1, 1, 1]} : vector<2x16x64xf32> to vector<2x14x64xf32>
    %c0_309 = arith.constant 0 : index
    %c2_310 = arith.constant 2 : index
    %c64_311 = arith.constant 64 : index
    %331 = vector.load %arg35[%c0_309, %c2_310, %c64_311] : memref<2x16x512xf32, #tpu.memory_space<vmem>>, vector<2x14x64xf32>
    tpu.vector_store %arg35[%c0_309, %c2_310, %c64_311], %330 {strides = array<i32>} : memref<2x16x512xf32, #tpu.memory_space<vmem>>, vector<2x14x64xf32>,
    %cst_312 = arith.constant 0.000000e+00 : f32
    %332 = vector.broadcast %cst_312 : f32 to vector<2x1x64xf32>
    %c0_313 = arith.constant 0 : index
    %c0_314 = arith.constant 0 : index
    %c128_315 = arith.constant 128 : index
    %333 = vector.load %arg35[%c0_313, %c0_314, %c128_315] : memref<2x16x512xf32, #tpu.memory_space<vmem>>, vector<2x1x64xf32>
    tpu.vector_store %arg35[%c0_313, %c0_314, %c128_315], %332 {strides = array<i32>} : memref<2x16x512xf32, #tpu.memory_space<vmem>>, vector<2x1x64xf32>,
    %334 = vector.extract_strided_slice %323 {offsets = [0, 0, 0], sizes = [2, 15, 64], strides = [1, 1, 1]} : vector<2x16x64xf32> to vector<2x15x64xf32>
    %c0_316 = arith.constant 0 : index
    %c1_317 = arith.constant 1 : index
    %c128_318 = arith.constant 128 : index
    %335 = vector.load %arg35[%c0_316, %c1_317, %c128_318] : memref<2x16x512xf32, #tpu.memory_space<vmem>>, vector<2x15x64xf32>
    tpu.vector_store %arg35[%c0_316, %c1_317, %c128_318], %334 {strides = array<i32>} : memref<2x16x512xf32, #tpu.memory_space<vmem>>, vector<2x15x64xf32>,
    %c0_319 = arith.constant 0 : index
    %c0_320 = arith.constant 0 : index
    %c192_321 = arith.constant 192 : index
    %336 = vector.load %arg35[%c0_319, %c0_320, %c192_321] : memref<2x16x512xf32, #tpu.memory_space<vmem>>, vector<2x16x64xf32>
    tpu.vector_store %arg35[%c0_319, %c0_320, %c192_321], %323 {strides = array<i32>} : memref<2x16x512xf32, #tpu.memory_space<vmem>>, vector<2x16x64xf32>,
    %cst_322 = arith.constant 0.000000e+00 : f32
    %337 = vector.broadcast %cst_322 : f32 to vector<2x1x64xf32>
    %c0_323 = arith.constant 0 : index
    %c15_324 = arith.constant 15 : index
    %c256_325 = arith.constant 256 : index
    %338 = vector.load %arg35[%c0_323, %c15_324, %c256_325] : memref<2x16x512xf32, #tpu.memory_space<vmem>>, vector<2x1x64xf32>
    tpu.vector_store %arg35[%c0_323, %c15_324, %c256_325], %337 {strides = array<i32>} : memref<2x16x512xf32, #tpu.memory_space<vmem>>, vector<2x1x64xf32>,
    %339 = vector.extract_strided_slice %323 {offsets = [0, 1, 0], sizes = [2, 15, 64], strides = [1, 1, 1]} : vector<2x16x64xf32> to vector<2x15x64xf32>
    %c0_326 = arith.constant 0 : index
    %c0_327 = arith.constant 0 : index
    %c256_328 = arith.constant 256 : index
    %340 = vector.load %arg35[%c0_326, %c0_327, %c256_328] : memref<2x16x512xf32, #tpu.memory_space<vmem>>, vector<2x15x64xf32>
    tpu.vector_store %arg35[%c0_326, %c0_327, %c256_328], %339 {strides = array<i32>} : memref<2x16x512xf32, #tpu.memory_space<vmem>>, vector<2x15x64xf32>,
    %cst_329 = arith.constant 0.000000e+00 : f32
    %341 = vector.broadcast %cst_329 : f32 to vector<2x2x64xf32>
    %c0_330 = arith.constant 0 : index
    %c14_331 = arith.constant 14 : index
    %c320_332 = arith.constant 320 : index
    %342 = vector.load %arg35[%c0_330, %c14_331, %c320_332] : memref<2x16x512xf32, #tpu.memory_space<vmem>>, vector<2x2x64xf32>
    tpu.vector_store %arg35[%c0_330, %c14_331, %c320_332], %341 {strides = array<i32>} : memref<2x16x512xf32, #tpu.memory_space<vmem>>, vector<2x2x64xf32>,
    %343 = vector.extract_strided_slice %323 {offsets = [0, 2, 0], sizes = [2, 14, 64], strides = [1, 1, 1]} : vector<2x16x64xf32> to vector<2x14x64xf32>
    %c0_333 = arith.constant 0 : index
    %c0_334 = arith.constant 0 : index
    %c320_335 = arith.constant 320 : index
    %344 = vector.load %arg35[%c0_333, %c0_334, %c320_335] : memref<2x16x512xf32, #tpu.memory_space<vmem>>, vector<2x14x64xf32>
    tpu.vector_store %arg35[%c0_333, %c0_334, %c320_335], %343 {strides = array<i32>} : memref<2x16x512xf32, #tpu.memory_space<vmem>>, vector<2x14x64xf32>,
    %cst_336 = arith.constant 0.000000e+00 : f32
    %345 = vector.broadcast %cst_336 : f32 to vector<2x3x64xf32>
    %c0_337 = arith.constant 0 : index
    %c13_338 = arith.constant 13 : index
    %c384_339 = arith.constant 384 : index
    %346 = vector.load %arg35[%c0_337, %c13_338, %c384_339] : memref<2x16x512xf32, #tpu.memory_space<vmem>>, vector<2x3x64xf32>
    tpu.vector_store %arg35[%c0_337, %c13_338, %c384_339], %345 {strides = array<i32>} : memref<2x16x512xf32, #tpu.memory_space<vmem>>, vector<2x3x64xf32>,
    %347 = vector.extract_strided_slice %323 {offsets = [0, 3, 0], sizes = [2, 13, 64], strides = [1, 1, 1]} : vector<2x16x64xf32> to vector<2x13x64xf32>
    %c0_340 = arith.constant 0 : index
    %c0_341 = arith.constant 0 : index
    %c384_342 = arith.constant 384 : index
    %348 = vector.load %arg35[%c0_340, %c0_341, %c384_342] : memref<2x16x512xf32, #tpu.memory_space<vmem>>, vector<2x13x64xf32>
    tpu.vector_store %arg35[%c0_340, %c0_341, %c384_342], %347 {strides = array<i32>} : memref<2x16x512xf32, #tpu.memory_space<vmem>>, vector<2x13x64xf32>,
    %cst_343 = arith.constant 0.000000e+00 : f32
    %349 = vector.broadcast %cst_343 : f32 to vector<2x4x64xf32>
    %c0_344 = arith.constant 0 : index
    %c12_345 = arith.constant 12 : index
    %c448_346 = arith.constant 448 : index
    %350 = vector.load %arg35[%c0_344, %c12_345, %c448_346] : memref<2x16x512xf32, #tpu.memory_space<vmem>>, vector<2x4x64xf32>
    tpu.vector_store %arg35[%c0_344, %c12_345, %c448_346], %349 {strides = array<i32>} : memref<2x16x512xf32, #tpu.memory_space<vmem>>, vector<2x4x64xf32>,
    %351 = vector.extract_strided_slice %323 {offsets = [0, 4, 0], sizes = [2, 12, 64], strides = [1, 1, 1]} : vector<2x16x64xf32> to vector<2x12x64xf32>
    %c0_347 = arith.constant 0 : index
    %c0_348 = arith.constant 0 : index
    %c448_349 = arith.constant 448 : index
    %352 = vector.load %arg35[%c0_347, %c0_348, %c448_349] : memref<2x16x512xf32, #tpu.memory_space<vmem>>, vector<2x12x64xf32>
    tpu.vector_store %arg35[%c0_347, %c0_348, %c448_349], %351 {strides = array<i32>} : memref<2x16x512xf32, #tpu.memory_space<vmem>>, vector<2x12x64xf32>,
    %c0_350 = arith.constant 0 : index
    %c0_351 = arith.constant 0 : index
    %c0_352 = arith.constant 0 : index
    %353 = vector.load %arg35[%c0_350, %c0_351, %c0_352] : memref<2x16x512xf32, #tpu.memory_space<vmem>>, vector<2x16x512xf32>
    %354 = vector.shape_cast %353 : vector<2x16x512xf32> to vector<32x512xf32>
    %355 = arith.truncf %354 : vector<32x512xf32> to vector<32x512xbf16>
    %c0_353 = arith.constant 0 : index
    %c0_354 = arith.constant 0 : index
    %356 = vector.load %arg23[%c0_353, %c0_354] : memref<512x64xbf16, #tpu.memory_space<vmem>>, vector<512x64xbf16>
    %cst_355 = arith.constant dense<0.000000e+00> : vector<32x64xf32>
    %357 = tpu.matmul %355, %356, %cst_355 {dimension_numbers = #tpu.dot_dimension_numbers<[1], [0], [0], [1], [0, 0, 1, 1], [], []>} : vector<32x512xbf16>, vector<512x64xbf16>, vector<32x64xf32> -> vector<32x64xf32>
    %cst_356 = arith.constant dense<0.000000e+00> : vector<64xf32>
    %358 = vector.multi_reduction <add>, %357, %cst_356 [0] : vector<32x64xf32> to vector<64xf32>
    %359 = vector.shape_cast %358 : vector<64xf32> to vector<1x64xf32>
    %cst_357 = arith.constant 3.125000e-02 : f32
    %360 = vector.broadcast %cst_357 : f32 to vector<1x64xf32>
    %361 = arith.mulf %359, %360 : vector<1x64xf32>
    %362 = arith.mulf %357, %357 : vector<32x64xf32>
    %cst_358 = arith.constant dense<0.000000e+00> : vector<64xf32>
    %363 = vector.multi_reduction <add>, %362, %cst_358 [0] : vector<32x64xf32> to vector<64xf32>
    %364 = vector.shape_cast %363 : vector<64xf32> to vector<1x64xf32>
    %cst_359 = arith.constant 3.125000e-02 : f32
    %365 = vector.broadcast %cst_359 : f32 to vector<1x64xf32>
    %366 = arith.mulf %364, %365 : vector<1x64xf32>
    %367 = arith.mulf %361, %361 : vector<1x64xf32>
    %368 = arith.subf %366, %367 : vector<1x64xf32>
    %cst_360 = arith.constant 0.000000e+00 : f32
    %369 = vector.broadcast %cst_360 : f32 to vector<1x64xf32>
    %370 = arith.maximumf %368, %369 : vector<1x64xf32>
    %c0_361 = arith.constant 0 : index
    %c0_362 = arith.constant 0 : index
    %371 = vector.load %arg24[%c0_361, %c0_362] : memref<1x64xf32, #tpu.memory_space<vmem>>, vector<1x64xf32>
    %cst_363 = arith.constant 9.99999974E-6 : f32
    %372 = vector.broadcast %cst_363 : f32 to vector<1x64xf32>
    %373 = arith.addf %370, %372 : vector<1x64xf32>
    %374 = math.rsqrt %373 : vector<1x64xf32>
    %375 = arith.mulf %371, %374 : vector<1x64xf32>
    %376 = vector.broadcast %361 : vector<1x64xf32> to vector<32x64xf32>
    %377 = arith.subf %357, %376 : vector<32x64xf32>
    %378 = vector.broadcast %375 : vector<1x64xf32> to vector<32x64xf32>
    %379 = arith.mulf %377, %378 : vector<32x64xf32>
    %c0_364 = arith.constant 0 : index
    %c0_365 = arith.constant 0 : index
    %380 = vector.load %arg25[%c0_364, %c0_365] : memref<1x64xf32, #tpu.memory_space<vmem>>, vector<1x64xf32>
    %381 = vector.broadcast %380 : vector<1x64xf32> to vector<32x64xf32>
    %382 = arith.addf %379, %381 : vector<32x64xf32>
    %cst_366 = arith.constant 0.000000e+00 : f32
    %383 = vector.broadcast %cst_366 : f32 to vector<32x64xf32>
    %384 = arith.maximumf %382, %383 : vector<32x64xf32>
    %385 = vector.shape_cast %384 : vector<32x64xf32> to vector<2x16x64xf32>
    %cst_367 = arith.constant 0.000000e+00 : f32
    %386 = vector.broadcast %cst_367 : f32 to vector<2x2x64xf32>
    %c0_368 = arith.constant 0 : index
    %c0_369 = arith.constant 0 : index
    %c0_370 = arith.constant 0 : index
    %387 = vector.load %arg35[%c0_368, %c0_369, %c0_370] : memref<2x16x512xf32, #tpu.memory_space<vmem>>, vector<2x2x64xf32>
    tpu.vector_store %arg35[%c0_368, %c0_369, %c0_370], %386 {strides = array<i32>} : memref<2x16x512xf32, #tpu.memory_space<vmem>>, vector<2x2x64xf32>,
    %388 = vector.extract_strided_slice %385 {offsets = [0, 0, 0], sizes = [2, 14, 64], strides = [1, 1, 1]} : vector<2x16x64xf32> to vector<2x14x64xf32>
    %c0_371 = arith.constant 0 : index
    %c2_372 = arith.constant 2 : index
    %c0_373 = arith.constant 0 : index
    %389 = vector.load %arg35[%c0_371, %c2_372, %c0_373] : memref<2x16x512xf32, #tpu.memory_space<vmem>>, vector<2x14x64xf32>
    tpu.vector_store %arg35[%c0_371, %c2_372, %c0_373], %388 {strides = array<i32>} : memref<2x16x512xf32, #tpu.memory_space<vmem>>, vector<2x14x64xf32>,
    %cst_374 = arith.constant 0.000000e+00 : f32
    %390 = vector.broadcast %cst_374 : f32 to vector<2x1x64xf32>
    %c0_375 = arith.constant 0 : index
    %c0_376 = arith.constant 0 : index
    %c64_377 = arith.constant 64 : index
    %391 = vector.load %arg35[%c0_375, %c0_376, %c64_377] : memref<2x16x512xf32, #tpu.memory_space<vmem>>, vector<2x1x64xf32>
    tpu.vector_store %arg35[%c0_375, %c0_376, %c64_377], %390 {strides = array<i32>} : memref<2x16x512xf32, #tpu.memory_space<vmem>>, vector<2x1x64xf32>,
    %392 = vector.extract_strided_slice %385 {offsets = [0, 0, 0], sizes = [2, 15, 64], strides = [1, 1, 1]} : vector<2x16x64xf32> to vector<2x15x64xf32>
    %c0_378 = arith.constant 0 : index
    %c1_379 = arith.constant 1 : index
    %c64_380 = arith.constant 64 : index
    %393 = vector.load %arg35[%c0_378, %c1_379, %c64_380] : memref<2x16x512xf32, #tpu.memory_space<vmem>>, vector<2x15x64xf32>
    tpu.vector_store %arg35[%c0_378, %c1_379, %c64_380], %392 {strides = array<i32>} : memref<2x16x512xf32, #tpu.memory_space<vmem>>, vector<2x15x64xf32>,
    %c0_381 = arith.constant 0 : index
    %c0_382 = arith.constant 0 : index
    %c128_383 = arith.constant 128 : index
    %394 = vector.load %arg35[%c0_381, %c0_382, %c128_383] : memref<2x16x512xf32, #tpu.memory_space<vmem>>, vector<2x16x64xf32>
    tpu.vector_store %arg35[%c0_381, %c0_382, %c128_383], %385 {strides = array<i32>} : memref<2x16x512xf32, #tpu.memory_space<vmem>>, vector<2x16x64xf32>,
    %cst_384 = arith.constant 0.000000e+00 : f32
    %395 = vector.broadcast %cst_384 : f32 to vector<2x1x64xf32>
    %c0_385 = arith.constant 0 : index
    %c15_386 = arith.constant 15 : index
    %c192_387 = arith.constant 192 : index
    %396 = vector.load %arg35[%c0_385, %c15_386, %c192_387] : memref<2x16x512xf32, #tpu.memory_space<vmem>>, vector<2x1x64xf32>
    tpu.vector_store %arg35[%c0_385, %c15_386, %c192_387], %395 {strides = array<i32>} : memref<2x16x512xf32, #tpu.memory_space<vmem>>, vector<2x1x64xf32>,
    %397 = vector.extract_strided_slice %385 {offsets = [0, 1, 0], sizes = [2, 15, 64], strides = [1, 1, 1]} : vector<2x16x64xf32> to vector<2x15x64xf32>
    %c0_388 = arith.constant 0 : index
    %c0_389 = arith.constant 0 : index
    %c192_390 = arith.constant 192 : index
    %398 = vector.load %arg35[%c0_388, %c0_389, %c192_390] : memref<2x16x512xf32, #tpu.memory_space<vmem>>, vector<2x15x64xf32>
    tpu.vector_store %arg35[%c0_388, %c0_389, %c192_390], %397 {strides = array<i32>} : memref<2x16x512xf32, #tpu.memory_space<vmem>>, vector<2x15x64xf32>,
    %cst_391 = arith.constant 0.000000e+00 : f32
    %399 = vector.broadcast %cst_391 : f32 to vector<2x2x64xf32>
    %c0_392 = arith.constant 0 : index
    %c14_393 = arith.constant 14 : index
    %c256_394 = arith.constant 256 : index
    %400 = vector.load %arg35[%c0_392, %c14_393, %c256_394] : memref<2x16x512xf32, #tpu.memory_space<vmem>>, vector<2x2x64xf32>
    tpu.vector_store %arg35[%c0_392, %c14_393, %c256_394], %399 {strides = array<i32>} : memref<2x16x512xf32, #tpu.memory_space<vmem>>, vector<2x2x64xf32>,
    %401 = vector.extract_strided_slice %385 {offsets = [0, 2, 0], sizes = [2, 14, 64], strides = [1, 1, 1]} : vector<2x16x64xf32> to vector<2x14x64xf32>
    %c0_395 = arith.constant 0 : index
    %c0_396 = arith.constant 0 : index
    %c256_397 = arith.constant 256 : index
    %402 = vector.load %arg35[%c0_395, %c0_396, %c256_397] : memref<2x16x512xf32, #tpu.memory_space<vmem>>, vector<2x14x64xf32>
    tpu.vector_store %arg35[%c0_395, %c0_396, %c256_397], %401 {strides = array<i32>} : memref<2x16x512xf32, #tpu.memory_space<vmem>>, vector<2x14x64xf32>,
    %c0_398 = arith.constant 0 : index
    %c0_399 = arith.constant 0 : index
    %c0_400 = arith.constant 0 : index
    %403 = vector.load %arg35[%c0_398, %c0_399, %c0_400] : memref<2x16x512xf32, #tpu.memory_space<vmem>>, vector<2x16x320xf32>
    %404 = vector.shape_cast %403 : vector<2x16x320xf32> to vector<32x320xf32>
    %405 = arith.truncf %404 : vector<32x320xf32> to vector<32x320xbf16>
    %c0_401 = arith.constant 0 : index
    %c0_402 = arith.constant 0 : index
    %406 = vector.load %arg26[%c0_401, %c0_402] : memref<320x64xbf16, #tpu.memory_space<vmem>>, vector<320x64xbf16>
    %cst_403 = arith.constant dense<0.000000e+00> : vector<32x64xf32>
    %407 = tpu.matmul %405, %406, %cst_403 {dimension_numbers = #tpu.dot_dimension_numbers<[1], [0], [0], [1], [0, 0, 1, 1], [], []>} : vector<32x320xbf16>, vector<320x64xbf16>, vector<32x64xf32> -> vector<32x64xf32>
    %cst_404 = arith.constant dense<0.000000e+00> : vector<64xf32>
    %408 = vector.multi_reduction <add>, %407, %cst_404 [0] : vector<32x64xf32> to vector<64xf32>
    %409 = vector.shape_cast %408 : vector<64xf32> to vector<1x64xf32>
    %cst_405 = arith.constant 3.125000e-02 : f32
    %410 = vector.broadcast %cst_405 : f32 to vector<1x64xf32>
    %411 = arith.mulf %409, %410 : vector<1x64xf32>
    %412 = arith.mulf %407, %407 : vector<32x64xf32>
    %cst_406 = arith.constant dense<0.000000e+00> : vector<64xf32>
    %413 = vector.multi_reduction <add>, %412, %cst_406 [0] : vector<32x64xf32> to vector<64xf32>
    %414 = vector.shape_cast %413 : vector<64xf32> to vector<1x64xf32>
    %cst_407 = arith.constant 3.125000e-02 : f32
    %415 = vector.broadcast %cst_407 : f32 to vector<1x64xf32>
    %416 = arith.mulf %414, %415 : vector<1x64xf32>
    %417 = arith.mulf %411, %411 : vector<1x64xf32>
    %418 = arith.subf %416, %417 : vector<1x64xf32>
    %cst_408 = arith.constant 0.000000e+00 : f32
    %419 = vector.broadcast %cst_408 : f32 to vector<1x64xf32>
    %420 = arith.maximumf %418, %419 : vector<1x64xf32>
    %c0_409 = arith.constant 0 : index
    %c0_410 = arith.constant 0 : index
    %421 = vector.load %arg27[%c0_409, %c0_410] : memref<1x64xf32, #tpu.memory_space<vmem>>, vector<1x64xf32>
    %cst_411 = arith.constant 9.99999974E-6 : f32
    %422 = vector.broadcast %cst_411 : f32 to vector<1x64xf32>
    %423 = arith.addf %420, %422 : vector<1x64xf32>
    %424 = math.rsqrt %423 : vector<1x64xf32>
    %425 = arith.mulf %421, %424 : vector<1x64xf32>
    %426 = vector.broadcast %411 : vector<1x64xf32> to vector<32x64xf32>
    %427 = arith.subf %407, %426 : vector<32x64xf32>
    %428 = vector.broadcast %425 : vector<1x64xf32> to vector<32x64xf32>
    %429 = arith.mulf %427, %428 : vector<32x64xf32>
    %c0_412 = arith.constant 0 : index
    %c0_413 = arith.constant 0 : index
    %430 = vector.load %arg28[%c0_412, %c0_413] : memref<1x64xf32, #tpu.memory_space<vmem>>, vector<1x64xf32>
    %431 = vector.broadcast %430 : vector<1x64xf32> to vector<32x64xf32>
    %432 = arith.addf %429, %431 : vector<32x64xf32>
    %cst_414 = arith.constant 0.000000e+00 : f32
    %433 = vector.broadcast %cst_414 : f32 to vector<32x64xf32>
    %434 = arith.maximumf %432, %433 : vector<32x64xf32>
    %435 = vector.shape_cast %434 : vector<32x64xf32> to vector<2x16x64xf32>
    %cst_415 = arith.constant 0.000000e+00 : f32
    %436 = vector.broadcast %cst_415 : f32 to vector<2x1x64xf32>
    %c0_416 = arith.constant 0 : index
    %c0_417 = arith.constant 0 : index
    %c0_418 = arith.constant 0 : index
    %437 = vector.load %arg35[%c0_416, %c0_417, %c0_418] : memref<2x16x512xf32, #tpu.memory_space<vmem>>, vector<2x1x64xf32>
    tpu.vector_store %arg35[%c0_416, %c0_417, %c0_418], %436 {strides = array<i32>} : memref<2x16x512xf32, #tpu.memory_space<vmem>>, vector<2x1x64xf32>,
    %438 = vector.extract_strided_slice %435 {offsets = [0, 0, 0], sizes = [2, 15, 64], strides = [1, 1, 1]} : vector<2x16x64xf32> to vector<2x15x64xf32>
    %c0_419 = arith.constant 0 : index
    %c1_420 = arith.constant 1 : index
    %c0_421 = arith.constant 0 : index
    %439 = vector.load %arg35[%c0_419, %c1_420, %c0_421] : memref<2x16x512xf32, #tpu.memory_space<vmem>>, vector<2x15x64xf32>
    tpu.vector_store %arg35[%c0_419, %c1_420, %c0_421], %438 {strides = array<i32>} : memref<2x16x512xf32, #tpu.memory_space<vmem>>, vector<2x15x64xf32>,
    %c0_422 = arith.constant 0 : index
    %c0_423 = arith.constant 0 : index
    %c64_424 = arith.constant 64 : index
    %440 = vector.load %arg35[%c0_422, %c0_423, %c64_424] : memref<2x16x512xf32, #tpu.memory_space<vmem>>, vector<2x16x64xf32>
    tpu.vector_store %arg35[%c0_422, %c0_423, %c64_424], %435 {strides = array<i32>} : memref<2x16x512xf32, #tpu.memory_space<vmem>>, vector<2x16x64xf32>,
    %cst_425 = arith.constant 0.000000e+00 : f32
    %441 = vector.broadcast %cst_425 : f32 to vector<2x1x64xf32>
    %c0_426 = arith.constant 0 : index
    %c15_427 = arith.constant 15 : index
    %c128_428 = arith.constant 128 : index
    %442 = vector.load %arg35[%c0_426, %c15_427, %c128_428] : memref<2x16x512xf32, #tpu.memory_space<vmem>>, vector<2x1x64xf32>
    tpu.vector_store %arg35[%c0_426, %c15_427, %c128_428], %441 {strides = array<i32>} : memref<2x16x512xf32, #tpu.memory_space<vmem>>, vector<2x1x64xf32>,
    %443 = vector.extract_strided_slice %435 {offsets = [0, 1, 0], sizes = [2, 15, 64], strides = [1, 1, 1]} : vector<2x16x64xf32> to vector<2x15x64xf32>
    %c0_429 = arith.constant 0 : index
    %c0_430 = arith.constant 0 : index
    %c128_431 = arith.constant 128 : index
    %444 = vector.load %arg35[%c0_429, %c0_430, %c128_431] : memref<2x16x512xf32, #tpu.memory_space<vmem>>, vector<2x15x64xf32>
    tpu.vector_store %arg35[%c0_429, %c0_430, %c128_431], %443 {strides = array<i32>} : memref<2x16x512xf32, #tpu.memory_space<vmem>>, vector<2x15x64xf32>,
    %c0_432 = arith.constant 0 : index
    %c0_433 = arith.constant 0 : index
    %c0_434 = arith.constant 0 : index
    %445 = vector.load %arg35[%c0_432, %c0_433, %c0_434] : memref<2x16x512xf32, #tpu.memory_space<vmem>>, vector<2x16x192xf32>
    %446 = vector.shape_cast %445 : vector<2x16x192xf32> to vector<32x192xf32>
    %447 = arith.truncf %446 : vector<32x192xf32> to vector<32x192xbf16>
    %c0_435 = arith.constant 0 : index
    %c0_436 = arith.constant 0 : index
    %448 = vector.load %arg29[%c0_435, %c0_436] : memref<192x128xbf16, #tpu.memory_space<vmem>>, vector<192x128xbf16>
    %cst_437 = arith.constant dense<0.000000e+00> : vector<32x128xf32>
    %449 = tpu.matmul %447, %448, %cst_437 {dimension_numbers = #tpu.dot_dimension_numbers<[1], [0], [0], [1], [0, 0, 1, 1], [], []>} : vector<32x192xbf16>, vector<192x128xbf16>, vector<32x128xf32> -> vector<32x128xf32>
    %cst_438 = arith.constant dense<0.000000e+00> : vector<128xf32>
    %450 = vector.multi_reduction <add>, %449, %cst_438 [0] : vector<32x128xf32> to vector<128xf32>
    %451 = vector.shape_cast %450 : vector<128xf32> to vector<1x128xf32>
    %cst_439 = arith.constant 3.125000e-02 : f32
    %452 = vector.broadcast %cst_439 : f32 to vector<1x128xf32>
    %453 = arith.mulf %451, %452 : vector<1x128xf32>
    %454 = arith.mulf %449, %449 : vector<32x128xf32>
    %cst_440 = arith.constant dense<0.000000e+00> : vector<128xf32>
    %455 = vector.multi_reduction <add>, %454, %cst_440 [0] : vector<32x128xf32> to vector<128xf32>
    %456 = vector.shape_cast %455 : vector<128xf32> to vector<1x128xf32>
    %cst_441 = arith.constant 3.125000e-02 : f32
    %457 = vector.broadcast %cst_441 : f32 to vector<1x128xf32>
    %458 = arith.mulf %456, %457 : vector<1x128xf32>
    %459 = arith.mulf %453, %453 : vector<1x128xf32>
    %460 = arith.subf %458, %459 : vector<1x128xf32>
    %cst_442 = arith.constant 0.000000e+00 : f32
    %461 = vector.broadcast %cst_442 : f32 to vector<1x128xf32>
    %462 = arith.maximumf %460, %461 : vector<1x128xf32>
    %c0_443 = arith.constant 0 : index
    %c0_444 = arith.constant 0 : index
    %463 = vector.load %arg30[%c0_443, %c0_444] : memref<1x128xf32, #tpu.memory_space<vmem>>, vector<1x128xf32>
    %cst_445 = arith.constant 9.99999974E-6 : f32
    %464 = vector.broadcast %cst_445 : f32 to vector<1x128xf32>
    %465 = arith.addf %462, %464 : vector<1x128xf32>
    %466 = math.rsqrt %465 : vector<1x128xf32>
    %467 = arith.mulf %463, %466 : vector<1x128xf32>
    %468 = vector.broadcast %453 : vector<1x128xf32> to vector<32x128xf32>
    %469 = arith.subf %449, %468 : vector<32x128xf32>
    %470 = vector.broadcast %467 : vector<1x128xf32> to vector<32x128xf32>
    %471 = arith.mulf %469, %470 : vector<32x128xf32>
    %c0_446 = arith.constant 0 : index
    %c0_447 = arith.constant 0 : index
    %472 = vector.load %arg31[%c0_446, %c0_447] : memref<1x128xf32, #tpu.memory_space<vmem>>, vector<1x128xf32>
    %473 = vector.broadcast %472 : vector<1x128xf32> to vector<32x128xf32>
    %474 = arith.addf %471, %473 : vector<32x128xf32>
    %475 = arith.truncf %322 : vector<32x64xf32> to vector<32x64xbf16>
    %c0_448 = arith.constant 0 : index
    %c0_449 = arith.constant 0 : index
    %476 = vector.load %arg32[%c0_448, %c0_449] : memref<64x128xbf16, #tpu.memory_space<vmem>>, vector<64x128xbf16>
    %cst_450 = arith.constant dense<0.000000e+00> : vector<32x128xf32>
    %477 = tpu.matmul %475, %476, %cst_450 {dimension_numbers = #tpu.dot_dimension_numbers<[1], [0], [0], [1], [0, 0, 1, 1], [], []>} : vector<32x64xbf16>, vector<64x128xbf16>, vector<32x128xf32> -> vector<32x128xf32>
    %c0_451 = arith.constant 0 : index
    %c0_452 = arith.constant 0 : index
    %478 = vector.load %arg33[%c0_451, %c0_452] : memref<1x128xf32, #tpu.memory_space<vmem>>, vector<1x128xf32>
    %479 = vector.broadcast %478 : vector<1x128xf32> to vector<32x128xf32>
    %480 = arith.addf %477, %479 : vector<32x128xf32>
    %481 = arith.addf %480, %474 : vector<32x128xf32>
    %cst_453 = arith.constant 0.000000e+00 : f32
    %482 = vector.broadcast %cst_453 : f32 to vector<32x128xf32>
    %483 = arith.maximumf %481, %482 : vector<32x128xf32>
    %484 = tpu.iota {dimensions = array<i32: 1>} : vector<1x128xi32>
    %c0_i32 = arith.constant 0 : i32
    %485 = vector.broadcast %c0_i32 : i32 to vector<1x128xi32>
    %486 = arith.cmpi eq, %484, %485 : vector<1x128xi32>
    %487 = arith.extui %486 : vector<1x128xi1> to vector<1x128xi32>
    %488 = arith.sitofp %487 : vector<1x128xi32> to vector<1x128xf32>
    %cst_454 = arith.constant dense<0.000000e+00> : vector<1x32xf32>
    %489 = tpu.matmul %488, %483, %cst_454 {dimension_numbers = #tpu.dot_dimension_numbers<[1], [1], [0], [0], [0, 0, 1, 0], [], []>} : vector<1x128xf32>, vector<32x128xf32>, vector<1x32xf32> -> vector<1x32xf32>
    %c0_455 = arith.constant 0 : index
    %c0_456 = arith.constant 0 : index
    %490 = vector.load %arg34[%c0_455, %c0_456] : memref<1x32xf32, #tpu.memory_space<vmem>>, vector<1x32xf32>
    tpu.vector_store %arg34[%c0_455, %c0_456], %489 {strides = array<i32>} : memref<1x32xf32, #tpu.memory_space<vmem>>, vector<1x32xf32>,
    return
  }
}

</mosaic_0001>

<bundles_post_ra>
// kernel: resnet_decoder_forward.2
= control target key start
LH: loop header
LB: loop body
LE: loop exit
PB: predicated region body
PF: predicated region fallthrough
CT: control target
= control target key end

     0   :  { %8 = vsyncpa [#allocation3], 0  ;;  %s441_s12 = smov [#allocation2]   ;;  %s537_s0 = inlined_call_operand.vmem [shape: f32[2,32], index: 0, kind: input, shape index: {}]   ;;  %s538_s1 = inlined_call_operand.vmem [shape: bf16[32,1024], index: 1, kind: input, shape index: {}]   ;;  %s539_s2 = inlined_call_operand.hbm [shape: f32[1,1024], index: 2, kind: input, shape index: {}]   ;;  %s540_s3 = inlined_call_operand.vmem [shape: f32[2,1024], index: 3, kind: output, shape index: {}]  }
   0x1   :  { %s19_s13 = sshll.u32 %s441_s12, 4  ;;  %s417_s16 = scalar_lea.hbm %s539_s2, 128  ;;  %s20_s13 = int_to_ptr.vmem [resolvable:$true] %s19_s13 }
   0x2   :  { %p418_p0 = scmp.ne.s32.totalorder %s539_s2, %s417_s16  ;;  %p421_p1 = scmp.lt.u32.totalorder %s417_s16, %s539_s2 }
   0x4   :  { %p423_p2 = pnand %p421_p1, %p418_p0 }
   0x6   :  { %426 = shalt.err (!%p423_p2)
}
   0x7   :  { %s427_s21 = scalar_lea.vmem %s20_s13, 128  ;;  %p432_p4 = scmp.lt.s32.totalorder %s20_s13, %s20_s13 }
   0x8   :  { %p428_p3 = scmp.ne.s32.totalorder %s20_s13, %s427_s21  ;;  %p433_p5 = scmp.lt.s32.totalorder %s427_s21, %s427_s21 }
   0xa   :  { %p434_p6 = por %p433_p5, %p432_p4 }
   0xc   :  { %p435_p7 = pnand %p434_p6, %p428_p3 }
   0xe   :  { %438 = shalt.err (!%p435_p7)
}
   0xf   :  { %22 = dma.hbm_to_vmem [thread:$0]  %s539_s2, 128, %s20_s13, [#allocation3]  }
  0x10   :  { %439 = dma.done.wait [#allocation3], 128  }
  0x11   :  { %440 = vsyncadd [#allocation3], 4294967168  ;;  %v442_v0 = vmov 0   ;;  %v29_v1 = vld [vmem:[%s538_s1] sm:$0xff]  ;;  %v30_v3 = vld [vmem:[%s538_s1 + $0x8] sm:$0xff]  ;;  %vm167_vm0 = vcmask 261120   ;;  %v47_v35 = vlaneseq }
  0x12   :  { %203 = vmatprep.mubr.bf16.mxu0 %v442_v0  ;;  %244 = vmatprep.mubr.bf16.mxu1 %v442_v0  ;;  %v33_v2 = vld [vmem:[%s538_s1 + $0x20] sm:$0xff]  ;;  %v34_v5 = vld [vmem:[%s538_s1 + $0x28] sm:$0xff]  ;;  %v31_v15 = vld [vmem:[%s538_s1 + $0x10] sm:$0xff]  ;;  %v443_v42 = vmov 1983009808  }
  0x13   :  { %v395_v4 = vcombine.high %v29_v1, %v33_v2  ;;  %v394_v6 = vcombine.low %v29_v1, %v33_v2  ;;  %v37_v7 = vld [vmem:[%s538_s1 + $0x40] sm:$0xff]  ;;  %v397_v9 = vcombine.high %v30_v3, %v34_v5  ;;  %v396_v10 = vcombine.low %v30_v3, %v34_v5  ;;  %v38_v12 = vld [vmem:[%s538_s1 + $0x48] sm:$0xff]  ;;  %v35_v16 = vld [vmem:[%s538_s1 + $0x30] sm:$0xff] }
  0x14   :  { %v41_v8 = vld [vmem:[%s538_s1 + $0x60] sm:$0xff]  ;;  %v42_v13 = vld [vmem:[%s538_s1 + $0x68] sm:$0xff]  ;;  %v32_v17 = vld [vmem:[%s538_s1 + $0x18] sm:$0xff]  ;;  %v399_v22 = vcombine.high %v31_v15, %v35_v16  ;;  %v398_v29 = vcombine.low %v31_v15, %v35_v16  ;;  %v48_v36 = vshrl.u32 %v47_v35, 7  ;;  %v354_v43 = vunpack.c.l.s4 %v443_v42 }
  0x15   :  { %v403_v11 = vcombine.high %v37_v7, %v41_v8  ;;  %171 = vmatprep.subr.bf16.mxu0 %v395_v4  ;;  %v405_v14 = vcombine.high %v38_v12, %v42_v13  ;;  %212 = vmatprep.subr.bf16.mxu1 %v397_v9  ;;  %v402_v18 = vcombine.low %v37_v7, %v41_v8  ;;  %v27_v19 = vld [vmem:[%s537_s0] sm:$0x3]  ;;  %v36_v20 = vld [vmem:[%s538_s1 + $0x38] sm:$0xff]  ;;  %v39_v24 = vld [vmem:[%s538_s1 + $0x50] sm:$0xff] }
  0x16   :  { %172 = vmatpush1.bf16.msra.mxu0 %v394_v6  ;;  %213 = vmatpush1.bf16.msra.mxu1 %v396_v10  ;;  %v404_v21 = vcombine.low %v38_v12, %v42_v13  ;;  %v401_v23 = vcombine.high %v32_v17, %v36_v20  ;;  %v43_v25 = vld [vmem:[%s538_s1 + $0x70] sm:$0xff]  ;;  %v28_v26 = vpack.c.bf16 %v27_v19, %v27_v19  ;;  %v40_v27 = vld [vmem:[%s538_s1 + $0x58] sm:$0xff]  ;;  %v49_v37 = vsub.s32 0, %v48_v36  ;;  %v45_v38 = vld [vmem:[#allocation2] sm:$0xff] }
  0x17   :  { %173 = vmatprep.subr.bf16.mxu0 %v403_v11  ;;  %214 = vmatprep.subr.bf16.mxu1 %v405_v14  ;;  %v44_v28 = vld [vmem:[%s538_s1 + $0x78] sm:$0xff]  ;;  %v400_v30 = vcombine.low %v32_v17, %v36_v20  ;;  %v407_v31 = vcombine.high %v39_v24, %v43_v25  ;;  %v406_v33 = vcombine.low %v39_v24, %v43_v25  ;;  %v57_v39 = vsub.s32 2, %v48_v36 }
  0x18   :  { %v409_v32 = vcombine.high %v40_v27, %v44_v28  ;;  %v408_v34 = vcombine.low %v40_v27, %v44_v28  ;;  %v53_v40 = vsub.s32 1, %v48_v36  ;;  %v61_v41 = vsub.s32 3, %v48_v36 }
  0x19   :  { %v50_v44 = vrot.slane %v45_v38, %v49_v37  ;;  %v58_v45 = vrot.slane %v45_v38, %v57_v39  ;;  %v355_v49 = vunpack.c.0.s8 %v354_v43  ;;  %v65_v53 = vsub.s32 4, %v48_v36 }
  0x1a   :  { %174 = vmatpush1.bf16.msra.mxu0 %v402_v18  ;;  %215 = vmatpush1.bf16.msra.mxu1 %v404_v21  ;;  %v54_v46 = vrot.slane %v45_v38, %v53_v40  ;;  %v62_v47 = vrot.slane %v45_v38, %v61_v41  ;;  %v73_v58 = vsub.s32 6, %v48_v36  ;;  %v69_v59 = vsub.s32 5, %v48_v36 }
  0x1b   :  { %253 = vmatprep.subr.bf16.mxu0 %v399_v22  ;;  %294 = vmatprep.subr.bf16.mxu1 %v401_v23  ;;  %v358_v3 = vsub.s32 %v355_v49, %v48_v36  ;;  %v66_v6 = vrot.slane %v45_v38, %v65_v53 }
  0x1c   :  { %v74_v8 = vrot.slane %v45_v38, %v73_v58  ;;  %v70_v9 = vrot.slane %v45_v38, %v69_v59 }
  0x1d   :  { %410 = vmatmul.mubr.msk.bf16.vlgmr.msra.gmra.mrb[0].mxu0 %vm167_vm0, %v28_v26  ;;  %411 = vmatmul.mubr.msk.bf16.vlgmr.msra.gmra.mrb[0].mxu1 %vm167_vm0, %v28_v26 }
  0x1e   :  { %254 = vmatpush1.bf16.msra.mxu0 %v398_v29  ;;  %295 = vmatpush1.bf16.msra.mxu1 %v400_v30 }
  0x1f   :  { %255 = vmatprep.subr.bf16.mxu0 %v407_v31  ;;  %296 = vmatprep.subr.bf16.mxu1 %v409_v32 }
  0x20   :  { %285 = vmatprep.mubr.bf16.mxu0 %v442_v0  ;;  %326 = vmatprep.mubr.bf16.mxu1 %v442_v0  ;;  %v77_v0 = vsub.s32 7, %v48_v36 }
  0x22   :  { %256 = vmatpush1.bf16.msra.mxu0 %v406_v33  ;;  %297 = vmatpush1.bf16.msra.mxu1 %v408_v34  ;;  %v78_v11 = vrot.slane %v45_v38, %v77_v0 }
  0x25   :  { %412 = vmatmul.mubr.msk.bf16.vlgmr.msra.gmra.mrb[4].mxu0 %vm167_vm0, %v28_v26  ;;  %413 = vmatmul.mubr.msk.bf16.vlgmr.msra.gmra.mrb[4].mxu1 %vm167_vm0, %v28_v26 }
  0xf0   :  { %v205_v48 = vpop.f32.mrb[0].mxu0  ;;  %v246_v51 = vpop.f32.mrb[0].mxu1 }
  0xf1   :  { %v206_v50 = vadd.f32 %v205_v48, %v50_v44  ;;  %v207_v52 = vpop.f32.mrb[1].mxu0  ;;  %v247_v54 = vadd.f32 %v246_v51, %v58_v45  ;;  %v248_v56 = vpop.f32.mrb[1].mxu1 }
  0xf2   :  { %v208_v55 = vadd.f32 %v207_v52, %v54_v46  ;;  %v209_v57 = vpop.f32.mrb[2].mxu0  ;;  %v249_v61 = vadd.f32 %v248_v56, %v62_v47  ;;  %v250_v62 = vpop.f32.mrb[2].mxu1 }
  0xf3   :  { %v335_v60 = vmax.f32 %v206_v50, 0.0  ;;  %v210_v63 = vpop.f32.mrb[3].mxu0  ;;  %v337_v1 = vmax.f32 %v247_v54, 0.0  ;;  %v251_v4 = vpop.f32.mrb[3].mxu1 }
  0xf4   :  { %v336_v2 = vmax.f32 %v208_v55, 0.0  ;;  %v338_v5 = vmax.f32 %v249_v61, 0.0 }
  0xf6   :  { %v351_v7 = vcombine.low %v335_v60, %v336_v2  ;;  %v352_v10 = vcombine.low %v337_v1, %v338_v5 }
  0xf8   :  { %v359_v12 = vrot.slane %v351_v7, %v358_v3  ;;  %v287_v13 = vpop.f32.mrb[4].mxu0  ;;  %v366_v14 = vrot.slane %v352_v10, %v358_v3  ;;  %v328_v16 = vpop.f32.mrb[4].mxu1 }
  0xf9   :  { %v288_v15 = vadd.f32 %v287_v13, %v66_v6  ;;  %v289_v17 = vpop.f32.mrb[5].mxu0  ;;  %v329_v18 = vadd.f32 %v328_v16, %v74_v8  ;;  %v330_v20 = vpop.f32.mrb[5].mxu1 }
  0xfa   :  { %v290_v19 = vadd.f32 %v289_v17, %v70_v9  ;;  %v291_v21 = vpop.f32.mrb[6].mxu0  ;;  %v367_v22 = vcombine.low %v359_v12, %v366_v14  ;;  %v331_v24 = vadd.f32 %v330_v20, %v78_v11  ;;  %v332_v25 = vpop.f32.mrb[6].mxu1 }
  0xfb   :  { %v339_v23 = vmax.f32 %v288_v15, 0.0  ;;  %v292_v26 = vpop.f32.mrb[7].mxu0  ;;  %v341_v27 = vmax.f32 %v329_v18, 0.0  ;;  %v333_v29 = vpop.f32.mrb[7].mxu1 }
  0xfc   :  { %v340_v28 = vmax.f32 %v290_v19, 0.0  ;;  %387 = vst [vmem:[%s540_s3] sm:$0xff] %v367_v22  ;;  %v342_v30 = vmax.f32 %v331_v24, 0.0 }
  0xfe   :  { %v368_v31 = vcombine.low %v339_v23, %v340_v28  ;;  %v369_v32 = vcombine.low %v341_v27, %v342_v30 }
 0x100   :  { %v376_v33 = vrot.slane %v368_v31, %v358_v3  ;;  %v383_v34 = vrot.slane %v369_v32, %v358_v3 }
 0x102   :  { %v384_v35 = vcombine.low %v376_v33, %v383_v34 }
 0x104   :  { %388 = vst [vmem:[%s540_s3 + $0x8] sm:$0xff] %v384_v35 }
 0x105   :  { %393 = vsyncpa [#allocation3], 1 }

// kernel: resnet_decoder_forward.3
= control target key start
LH: loop header
LB: loop body
LE: loop exit
PB: predicated region body
PF: predicated region fallthrough
CT: control target
= control target key end

     0   :  { %s5436_s6 = smov 1   ;;  %vm6864_vm0 = vcmask 516096   ;;  %vm6857_vm1 = vcmask 523269   ;;  %v5437_v0 = vmov 0.0   ;;  %vm6850_vm2 = vcmask 518144   ;;  %s5438_s10 = smov 64   ;;  %s6848_s0 = inlined_call_operand.smem [shape: u32[35], index: -1, kind: input, shape index: {}] }
   0x1   :  { %s5484_s5 = sld [smem:[%s6848_s0]]   ;;  %200 = vst.msk [vmem:[#allocation2 + $0x8] sm:$0x1] %vm6864_vm0, %v5437_v0  ;;  %201 = vst.msk [vmem:[#allocation2 + $0x48] sm:$0x1] %vm6864_vm0, %v5437_v0  ;;  %vm6849_vm3 = vcmask 1041920   ;;  %vm301_vm4 = vcmask 1043456  }
   0x2   :  { %s5489_s9 = sld [smem:[%s6848_s0 + %s5436_s6]]   ;;  %234 = vst.msk [vmem:[#allocation2 + $0x37] sm:$0x1] %vm6864_vm0, %v5437_v0  ;;  %235 = vst.msk [vmem:[#allocation2 + $0x77] sm:$0x1] %vm6864_vm0, %v5437_v0  ;;  %vm174_vm5 = vcmask 1041408   ;;  %vm255_vm6 = vcmask 1045504  }
   0x3   :  { %280 = vst.msk [vmem:[#allocation2 + $0x38] sm:$0xe0] %vm6857_vm1, %v5437_v0  ;;  %281 = vst.msk [vmem:[#allocation2 + $0x78] sm:$0xe0] %vm6857_vm1, %v5437_v0  ;;  %vm213_vm7 = vcmask 523265   ;;  %vm294_vm8 = vcmask 520192  }
   0x4   :  { %148 = vst.msk [vmem:[#allocation2] sm:$0x7] %vm6850_vm2, %v5437_v0  ;;  %149 = vst.msk [vmem:[#allocation2 + $0x40] sm:$0x7] %vm6850_vm2, %v5437_v0  ;;  %vm6854_vm9 = vcmask 1048068   ;;  %vm167_vm10 = vcmask 523264  }
   0x5   :  { %172 = vst.msk [vmem:[#allocation2] sm:$0x3] %vm6849_vm3, %v5437_v0  ;;  %173 = vst.msk [vmem:[#allocation2 + $0x40] sm:$0x3] %vm6849_vm3, %v5437_v0  ;;  %vm202_vm11 = vcmask 1040384   ;;  %vm6852_vm12 = vcmask 1044480  }
   0x6   :  { %vm6855_vm13 = vcmask 523267   ;;  %vm6851_vm14 = vcmask 1042432   ;;  %vm236_vm15 = vcmask 1046528   ;;  %vm248_vm3 = vcmask 522240   ;;  %s5439_s11 = smov 4   ;;  %s5440_s15 = smov 2  }
   0x7   :  { %v5512_v1 = vld [vmem:[%s5484_s5] sm:$0xff]  ;;  %v5515_v2 = vld [vmem:[%s5484_s5 + $0x8] sm:$0xff]  ;;  %v5518_v3 = vld [vmem:[%s5484_s5 + $0x10] sm:$0xff]  ;;  %vm6853_vm2 = vcmask 1048070   ;;  %s5686_s14 = sld [smem:[%s6848_s0 + %s5439_s11]]   ;;  %s5441_s19 = smov 3  }
   0x8   :  { %218 = vrot.lane.b32.xlu0 %v5512_v1, %s5438_s10  ;;  %v303_v4 = vrot.slane %v5515_v2, 4  ;;  %v302_v5 = vrot.slane %v5512_v1, 4  ;;  %v175_v6 = vrot.slane %v5512_v1, 6  ;;  %v5526_v7 = vld [vmem:[%s5484_s5 + $0x18] sm:$0xff]  ;;  %v5210_v8 = vld [vmem:[%s5489_s9 + $0x40] sm:$0xff]   ;;  %v176_v9 = vrot.slane %v5515_v2, 6  ;;  %s4519_s18 = sld [smem:[%s6848_s0 + %s5440_s15]]  }
   0x9   :  { %v256_v10 = vrot.slane %v5512_v1, 2  ;;  %v257_v11 = vrot.slane %v5515_v2, 2  ;;  %v305_v12 = vrot.slane %v5518_v3, 4  ;;  %v306_v13 = vrot.slane %v5526_v7, 4  ;;  %4788 = vmatprep.subr.bf16.mxu0 %v5210_v8  ;;  %v5211_v18 = vld [vmem:[%s5489_s9] sm:$0xff]   ;;  %v5212_v19 = vld [vmem:[%s5489_s9 + $0x48] sm:$0xff]   ;;  %s4520_s22 = sld [smem:[%s6848_s0 + %s5441_s19]]  }
   0xa   :  { %310 = vrot.lane.b32.xlu1 %v303_v4, %s5438_s10  ;;  %v178_v14 = vrot.slane %v5518_v3, 6  ;;  %v304_v15 = vsel %vm301_vm4, %v302_v5, %v303_v4  ;;  %v179_v16 = vrot.slane %v5526_v7, 6  ;;  %v259_v17 = vrot.slane %v5518_v3, 2  ;;  %4789 = vmatpush3.bf16.msra.mxu0 %v5211_v18  ;;  %v5213_v20 = vld [vmem:[%s5489_s9 + $0xc0] sm:$0xff]   ;;  %v5214_v22 = vld [vmem:[%s5489_s9 + $0x8] sm:$0xff]   ;;  %v5216_v27 = vld [vmem:[%s5489_s9 + $0x50] sm:$0xff]  }
   0xb   :  { %v203_v21 = vrot.slane %v5512_v1, 7  ;;  %4790 = vmatprep.subr.bf16.mxu0 %v5212_v19  ;;  %v284_v23 = vrot.slane %v5515_v2, 3  ;;  %v177_v24 = vsel %vm174_vm5, %v175_v6, %v176_v9  ;;  %4816 = vmatprep.subr.bf16.mxu1 %v5213_v20  ;;  %v5215_v25 = vld [vmem:[%s5489_s9 + $0x80] sm:$0xff]   ;;  %v204_v26 = vrot.slane %v5515_v2, 7  ;;  %v5217_v30 = vld [vmem:[%s5489_s9 + $0xc8] sm:$0xff]   ;;  %v5218_v33 = vld [vmem:[%s5489_s9 + $0x10] sm:$0xff]  }
   0xc   :  { %220 = vrot.lane.b32.xlu0 %v5515_v2, %s5438_s10  ;;  %v283_v28 = vrot.slane %v5512_v1, 3  ;;  %v258_v29 = vsel %vm255_vm6, %v256_v10, %v257_v11  ;;  %4817 = vmatpush3.bf16.msra.mxu1 %v5215_v25  ;;  %v155_v32 = vrot.slane %v5512_v1, 5  ;;  %v156_v35 = vrot.slane %v5515_v2, 5  ;;  %v5219_v36 = vld [vmem:[%s5489_s9 + $0x88] sm:$0xff]   ;;  %v5220_v38 = vld [vmem:[%s5489_s9 + $0x58] sm:$0xff]   ;;  %v5221_v42 = vld [vmem:[%s5489_s9 + $0xd0] sm:$0xff]  }
   0xd   :  { %214 = vst.msk [vmem:[#allocation2 + $0x8] sm:$0xfe] %vm213_vm7, %v203_v21  ;;  %v205_v31 = vsel %vm202_vm11, %v203_v21, %v204_v26  ;;  %4818 = vmatprep.subr.bf16.mxu1 %v5217_v30  ;;  %v237_v37 = vrot.slane %v5512_v1, 1  ;;  %v238_v40 = vrot.slane %v5515_v2, 1  ;;  %v260_v41 = vrot.slane %v5526_v7, 2  ;;  %v5222_v43 = vld [vmem:[%s5489_s9 + $0x18] sm:$0xff]  }
   0xe   :  { %308 = vrot.lane.b32.xlu1 %v304_v15, %s5438_s10  ;;  %295 = vst.msk [vmem:[#allocation2 + $0x38] sm:$0x1f] %vm294_vm8, %v284_v23  ;;  %4791 = vmatpush3.bf16.msra.mxu0 %v5214_v22  ;;  %v285_v34 = vsel %vm6852_vm12, %v283_v28, %v284_v23  ;;  %v157_v39 = vsel %vm6851_vm14, %v155_v32, %v156_v35  ;;  %v206_v45 = vrot.slane %v5518_v3, 7  ;;  %v5223_v46 = vld [vmem:[%s5489_s9 + $0x90] sm:$0xff]   ;;  %v207_v47 = vrot.slane %v5526_v7, 7  ;;  %v5224_v48 = vld [vmem:[%s5489_s9 + $0x60] sm:$0xff]  }
   0xf   :  { %299 = vst.msk [vmem:[#allocation2 + $0x38] sm:$0xf0] %vm6854_vm9, %v5437_v0  ;;  %4792 = vmatprep.subr.bf16.mxu0 %v5216_v27  ;;  %v239_v44 = vsel %vm236_vm15, %v237_v37, %v238_v40  ;;  %v286_v49 = vrot.slane %v5518_v3, 3  ;;  %v307_v50 = vsel %vm301_vm4, %v305_v12, %v306_v13  ;;  %v5225_v51 = vld [vmem:[%s5489_s9 + $0xd8] sm:$0xff]   ;;  %v287_v53 = vrot.slane %v5526_v7, 3  ;;  %v5226_v54 = vld [vmem:[%s5489_s9 + $0x20] sm:$0xff]  }
  0x10   :  { %181 = vrot.lane.b32.xlu0 %v175_v6, %s5438_s10  ;;  %215 = vst.msk [vmem:[#allocation2 + $0x28] sm:$0xff] %vm167_vm10, %v205_v31  ;;  %293 = vst.msk [vmem:[#allocation2 + $0x18] sm:$0xff] %vm167_vm10, %v285_v34  ;;  %4819 = vmatpush3.bf16.msra.mxu1 %v5219_v36  ;;  %v208_v52 = vsel %vm202_vm11, %v206_v45, %v207_v47  ;;  %v158_v55 = vrot.slane %v5518_v3, 5  ;;  %v5227_v56 = vld [vmem:[%s5489_s9 + $0x98] sm:$0xff]   ;;  %v159_v58 = vrot.slane %v5526_v7, 5  ;;  %v5228_v59 = vld [vmem:[%s5489_s9 + $0x68] sm:$0xff]  }
  0x11   :  { %166 = vst.msk [vmem:[#allocation2] sm:$0xf8] %vm6855_vm13, %v155_v32  ;;  %4820 = vmatprep.subr.bf16.mxu1 %v5221_v42  ;;  %v288_v57 = vsel %vm6852_vm12, %v286_v49, %v287_v53  ;;  %v240_v60 = vrot.slane %v5518_v3, 1  ;;  %v5229_v61 = vld [vmem:[%s5489_s9 + $0xe0] sm:$0xff]   ;;  %v241_v63 = vrot.slane %v5526_v7, 1  ;;  %v5230_v1 = vld [vmem:[%s5489_s9 + $0x28] sm:$0xff]   ;;  %v180_v2 = vsel %vm174_vm5, %v178_v14, %v179_v16 }
  0x12   :  { %183 = vrot.lane.b32.xlu1 %v177_v24, %s5438_s10  ;;  %4793 = vmatpush3.bf16.msra.mxu0 %v5218_v33  ;;  %168 = vst.msk [vmem:[#allocation2 + $0x20] sm:$0xff] %vm167_vm10, %v157_v39  ;;  %247 = vst.msk [vmem:[#allocation2 + $0x10] sm:$0xff] %vm167_vm10, %v239_v44  ;;  %v160_v62 = vsel %vm6851_vm14, %v158_v55, %v159_v58  ;;  %v5231_v4 = vld [vmem:[%s5489_s9 + $0xa0] sm:$0xff]   ;;  %v5232_v6 = vld [vmem:[%s5489_s9 + $0x70] sm:$0xff]   ;;  %v261_v8 = vsel %vm255_vm6, %v259_v17, %v260_v41  ;;  %vm195_vm14 = vcmask 1048064   ;;  %vm321_vm12 = vcmask 1043968  }
  0x13   :  { %4794 = vmatprep.subr.bf16.mxu0 %v5220_v38  ;;  %249 = vst.msk [vmem:[#allocation2 + $0x30] sm:$0x7f] %vm248_vm3, %v238_v40  ;;  %v242_v5 = vsel %vm236_vm15, %v240_v60, %v241_v63  ;;  %251 = vst.msk [vmem:[#allocation2 + $0x70] sm:$0x7f] %vm248_vm3, %v241_v63  ;;  %v5233_v9 = vld [vmem:[%s5489_s9 + $0xe8] sm:$0xff]   ;;  %v5234_v10 = vld [vmem:[%s5489_s9 + $0x30] sm:$0xff]  }
  0x14   :  { %262 = vrot.lane.b32.xlu0 %v258_v29, %s5438_s10  ;;  %253 = vst.msk [vmem:[#allocation2 + $0x30] sm:$0xc0] %vm6853_vm2, %v5437_v0  ;;  %4821 = vmatpush3.bf16.msra.mxu1 %v5223_v46  ;;  %254 = vst.msk [vmem:[#allocation2 + $0x70] sm:$0xc0] %vm6853_vm2, %v5437_v0  ;;  %v5236_v12 = vld [vmem:[%s5489_s9 + $0x78] sm:$0xff]   ;;  %vm6866_vm2 = vcmask 1048066  }
  0x15   :  { %216 = vst.msk [vmem:[#allocation2 + $0x48] sm:$0xfe] %vm213_vm7, %v206_v45  ;;  %4822 = vmatprep.subr.bf16.mxu1 %v5225_v51  ;;  %v5240_v15 = vld [vmem:[%s5489_s9 + $0xf8] sm:$0xff]   ;;  %v5244_v58 = vld [vmem:[%s5686_s14 + $0x90] sm:$0xff]   ;;  %v5246_v60 = vld [vmem:[%s5686_s14 + $0x40] sm:$0xff]   ;;  %s5443_s23 = smov 7  }
  0x16   :  { %264 = vrot.lane.b32.xlu1 %v257_v11, %s5438_s10  ;;  %4795 = vmatpush3.bf16.msra.mxu0 %v5222_v43  ;;  %217 = vst.msk [vmem:[#allocation2 + $0x68] sm:$0xff] %vm167_vm10, %v208_v52  ;;  %296 = vst.msk [vmem:[#allocation2 + $0x58] sm:$0xff] %vm167_vm10, %v288_v57  ;;  %v5235_v11 = vld [vmem:[%s5489_s9 + $0xa8] sm:$0xff]   ;;  %v5241_v16 = vld [vmem:[%s5489_s9 + $0xb8] sm:$0xff]   ;;  %s5811_s26 = sld [smem:[%s6848_s0 + %s5443_s23]]   ;;  %s5444_s27 = smov 5  }
  0x17   :  { %4796 = vmatprep.subr.bf16.mxu0 %v5224_v48  ;;  %297 = vst.msk [vmem:[#allocation2 + $0x78] sm:$0x1f] %vm294_vm8, %v287_v53  ;;  %v5243_v57 = vld [vmem:[%s5686_s14 + $0x88] sm:$0xff]   ;;  %s4522_s30 = sld [smem:[%s6848_s0 + %s5444_s27]]   ;;  %s5445_s1 = smov 6  }
  0x18   :  { %222 = vrot.lane.b32.xlu0 %v5518_v3, %s5438_s10  ;;  %300 = vst.msk [vmem:[#allocation2 + $0x78] sm:$0xf0] %vm6854_vm9, %v5437_v0  ;;  %4823 = vmatpush3.bf16.msra.mxu1 %v5227_v56  ;;  %v5237_v3 = vld [vmem:[%s5489_s9 + $0xf0] sm:$0xff]   ;;  %vm6859_vm9 = vcmask 1046016   ;;  %v5242_v56 = vld [vmem:[%s5686_s14 + $0x80] sm:$0xff]   ;;  %v5249_v63 = vld [vmem:[%s5686_s14 + $0x8] sm:$0xff]   ;;  %s4523_s4 = sld [smem:[%s6848_s0 + %s5445_s1]]  }
  0x19   :  { %169 = vst.msk [vmem:[#allocation2 + $0x40] sm:$0xf8] %vm6855_vm13, %v158_v55  ;;  %4824 = vmatprep.subr.bf16.mxu1 %v5229_v61  ;;  %vm6856_vm13 = vcmask 523270   ;;  %v5247_v61 = vld [vmem:[%s5686_s14] sm:$0xff]   ;;  %s5446_s6 = smov 10  }
  0x1a   :  { %224 = vrot.lane.b32.xlu1 %v5526_v7, %s5438_s10  ;;  %4797 = vmatpush3.bf16.msra.mxu0 %v5226_v54  ;;  %170 = vst.msk [vmem:[#allocation2 + $0x60] sm:$0xff] %vm167_vm10, %v160_v62  ;;  %250 = vst.msk [vmem:[#allocation2 + $0x50] sm:$0xff] %vm167_vm10, %v242_v5  ;;  %v5248_v62 = vld [vmem:[%s5686_s14 + $0x48] sm:$0xff]   ;;  %v5253_v5 = vld [vmem:[%s5686_s14 + $0x18] sm:$0xff]  }
  0x1b   :  { %4798 = vmatprep.subr.bf16.mxu0 %v5228_v59  ;;  %v5245_v59 = vld [vmem:[%s5686_s14 + $0x98] sm:$0xff]  }
  0x1c   :  { %312 = vrot.lane.b32.xlu0 %v307_v50, %s5438_s10  ;;  %4825 = vmatpush3.bf16.msra.mxu1 %v5231_v4  ;;  %v5252_v4 = vld [vmem:[%s5686_s14 + $0x58] sm:$0xff]  }
  0x1d   :  { %4826 = vmatprep.subr.bf16.mxu1 %v5233_v9 }
  0x1e   :  { %314 = vrot.lane.b32.xlu1 %v306_v13, %s5438_s10  ;;  %4799 = vmatpush3.bf16.msra.mxu0 %v5230_v1  ;;  %v5238_v13 = vld [vmem:[%s5489_s9 + $0x38] sm:$0xff]   ;;  %v5250_v1 = vld [vmem:[%s5686_s14 + $0x50] sm:$0xff]  }
  0x1f   :  { %4800 = vmatprep.subr.bf16.mxu0 %v5232_v6  ;;  %v5254_v6 = vld [vmem:[%s5686_s14 + $0x60] sm:$0xff]  }
  0x20   :  { %185 = vrot.lane.b32.xlu0 %v178_v14, %s5438_s10  ;;  %4827 = vmatpush3.bf16.msra.mxu1 %v5235_v11  ;;  %v5239_v14 = vld [vmem:[%s5489_s9 + $0xb0] sm:$0xff]   ;;  %s4527_s9 = sld [smem:[%s6848_s0 + %s5446_s6]]  }
  0x21   :  { %4828 = vmatprep.subr.bf16.mxu1 %v5237_v3 }
  0x22   :  { %187 = vrot.lane.b32.xlu1 %v180_v2, %s5438_s10  ;;  %4801 = vmatpush3.bf16.msra.mxu0 %v5234_v10  ;;  %v5251_v2 = vld [vmem:[%s5686_s14 + $0x10] sm:$0xff]  }
  0x23   :  { %4802 = vmatprep.subr.bf16.mxu0 %v5236_v12 }
  0x24   :  { %266 = vrot.lane.b32.xlu0 %v261_v8, %s5438_s10  ;;  %4829 = vmatpush3.bf16.msra.mxu1 %v5239_v14 }
  0x25   :  { %4830 = vmatprep.subr.bf16.mxu1 %v5240_v15 }
  0x26   :  { %268 = vrot.lane.b32.xlu1 %v260_v41, %s5438_s10  ;;  %4803 = vmatpush3.bf16.msra.mxu0 %v5238_v13 }
  0x27   :  { %4844 = vmatprep.subr.bf16.mxu0 %v5246_v60 }
  0x28   :  { %4831 = vmatpush3.bf16.msra.mxu1 %v5241_v16 }
  0x29   :  { %5081 = vmatprep.subr.bf16.mxu1 %v5242_v56 }
  0x7a   :  { %v219_v17 = vpop.permute.xlu0 %218 }
  0x7b   :  { %230 = vst.msk [vmem:[#allocation2 + $0x8] sm:$0xff] %vm195_vm14, %v219_v17 }
  0x7c   :  { %v311_v18 = vpop.permute.xlu1 %310 }
  0x7d   :  { %322 = vst.msk [vmem:[#allocation2 + $0x38] sm:$0xf] %vm321_vm12, %v311_v18 }
  0x7e   :  { %v221_v7 = vpop.permute.xlu0 %220 }
  0x7f   :  { %231 = vst.msk [vmem:[#allocation2 + $0x28] sm:$0xff] %vm195_vm14, %v221_v7 }
  0x80   :  { %v309_v19 = vpop.permute.xlu1 %308 }
  0x81   :  { %320 = vst.msk [vmem:[#allocation2 + $0x18] sm:$0xff] %vm195_vm14, %v309_v19 }
  0x82   :  { %v182_v20 = vpop.permute.xlu0 %181  ;;  %v326_v24 = vld [vmem:[#allocation2 + $0x8] sm:$0xff] }
  0x83   :  { %194 = vst.msk [vmem:[#allocation2] sm:$0xfc] %vm6866_vm2, %v182_v20 }
  0x84   :  { %v332_v21 = vld [vmem:[#allocation2 + $0x38] sm:$0xff]  ;;  %v184_v22 = vpop.permute.xlu1 %183 }
  0x85   :  { %1715 = vst.msk [vmem:[#allocation2 + $0x38] sm:$0xe0] %vm6857_vm1, %v5437_v0 }
  0x86   :  { %196 = vst.msk [vmem:[#allocation2 + $0x20] sm:$0xff] %vm195_vm14, %v184_v22  ;;  %v263_v23 = vpop.permute.xlu0 %262  ;;  %v330_v25 = vld [vmem:[#allocation2 + $0x28] sm:$0xff] }
  0x87   :  { %274 = vst.msk [vmem:[#allocation2 + $0x10] sm:$0xff] %vm195_vm14, %v263_v23  ;;  %v342_v26 = vpack.c.bf16 %v330_v25, %v326_v24 }
  0x88   :  { %v265_v27 = vpop.permute.xlu1 %264  ;;  %v328_v28 = vld [vmem:[#allocation2 + $0x18] sm:$0xff] }
  0x89   :  { %276 = vst.msk [vmem:[#allocation2 + $0x30] sm:$0x3f] %vm6859_vm9, %v265_v27  ;;  %637 = vmatprep.mubr.bf16.mxu0 %v342_v26  ;;  %v344_v29 = vpack.c.bf16 %v332_v21, %v328_v28 }
  0x8a   :  { %v223_v30 = vpop.permute.xlu0 %222  ;;  %v325_v31 = vld [vmem:[#allocation2] sm:$0xff] }
  0x8b   :  { %686 = vmatprep.mubr.bf16.mxu1 %v344_v29  ;;  %232 = vst.msk [vmem:[#allocation2 + $0x48] sm:$0xff] %vm195_vm14, %v223_v30 }
  0x8c   :  { %v225_v32 = vpop.permute.xlu1 %224 }
  0x8d   :  { %v329_v33 = vld [vmem:[#allocation2 + $0x20] sm:$0xff]  ;;  %233 = vst.msk [vmem:[#allocation2 + $0x68] sm:$0xff] %vm195_vm14, %v225_v32 }
  0x8e   :  { %v341_v34 = vpack.c.bf16 %v329_v33, %v325_v31  ;;  %v313_v35 = vpop.permute.xlu0 %312  ;;  %v327_v36 = vld [vmem:[#allocation2 + $0x10] sm:$0xff] }
  0x8f   :  { %323 = vst.msk [vmem:[#allocation2 + $0x58] sm:$0xff] %vm195_vm14, %v313_v35 }
  0x90   :  { %638 = vmatmul.mubr.bf16.vlgmr.msra.gmra.mrb[0].mxu0 %v341_v34  ;;  %v331_v37 = vld [vmem:[#allocation2 + $0x30] sm:$0xff]  ;;  %v315_v38 = vpop.permute.xlu1 %314 }
  0x91   :  { %849 = vst.msk [vmem:[#allocation2 + $0x30] sm:$0xc0] %vm6856_vm13, %v5437_v0  ;;  %v343_v39 = vpack.c.bf16 %v331_v37, %v327_v36  ;;  %4845 = vmatpush3.bf16.msra.mxu0 %v5247_v61 }
  0x92   :  { %324 = vst.msk [vmem:[#allocation2 + $0x78] sm:$0xf] %vm321_vm12, %v315_v38  ;;  %v186_v40 = vpop.permute.xlu0 %185  ;;  %v334_v41 = vld [vmem:[#allocation2 + $0x48] sm:$0xff]  ;;  %4846 = vmatprep.subr.bf16.mxu0 %v5248_v62 }
  0x93   :  { %687 = vmatmul.mubr.bf16.vlgmr.msra.gmra.mrb[0].mxu1 %v343_v39  ;;  %197 = vst.msk [vmem:[#allocation2 + $0x40] sm:$0xfc] %vm6866_vm2, %v186_v40 }
  0x94   :  { %v188_v42 = vpop.permute.xlu1 %187  ;;  %v338_v43 = vld [vmem:[#allocation2 + $0x68] sm:$0xff]  ;;  %5082 = vmatpush3.bf16.msra.mxu1 %v5242_v56 }
  0x95   :  { %198 = vst.msk [vmem:[#allocation2 + $0x60] sm:$0xff] %vm195_vm14, %v188_v42  ;;  %v346_v44 = vpack.c.bf16 %v338_v43, %v334_v41  ;;  %5083 = vmatprep.subr.bf16.mxu1 %v5243_v57  ;;  %4847 = vmatpush3.bf16.msra.mxu0 %v5249_v63 }
  0x96   :  { %v267_v45 = vpop.permute.xlu0 %266  ;;  %v336_v46 = vld [vmem:[#allocation2 + $0x58] sm:$0xff]  ;;  %4848 = vmatprep.subr.bf16.mxu0 %v5250_v1 }
  0x97   :  { %645 = vmatprep.mubr.bf16.mxu0 %v346_v44  ;;  %277 = vst.msk [vmem:[#allocation2 + $0x50] sm:$0xff] %vm195_vm14, %v267_v45 }
  0x98   :  { %v269_v48 = vpop.permute.xlu1 %268  ;;  %5084 = vmatpush3.bf16.msra.mxu1 %v5243_v57 }
  0x99   :  { %v340_v47 = vld [vmem:[#allocation2 + $0x78] sm:$0xff]  ;;  %278 = vst.msk [vmem:[#allocation2 + $0x70] sm:$0x3f] %vm6859_vm9, %v269_v48  ;;  %5085 = vmatprep.subr.bf16.mxu1 %v5244_v58  ;;  %4849 = vmatpush3.bf16.msra.mxu0 %v5251_v2  ;;  %vm6860_vm9 = vcmask 523266  }
  0x9a   :  { %1716 = vst.msk [vmem:[#allocation2 + $0x78] sm:$0xe0] %vm6857_vm1, %v5437_v0  ;;  %v348_v49 = vpack.c.bf16 %v340_v47, %v336_v46  ;;  %v333_v50 = vld [vmem:[#allocation2 + $0x40] sm:$0xff]  ;;  %4850 = vmatprep.subr.bf16.mxu0 %v5252_v4  ;;  %vm6858_vm1 = vcmask 517120  }
  0x9b   :  { %772 = vst.msk [vmem:[#allocation2] sm:$0x3] %vm6858_vm1, %v5437_v0  ;;  %773 = vst.msk [vmem:[#allocation2 + $0x40] sm:$0x3] %vm6858_vm1, %v5437_v0  ;;  %vm6861_vm1 = vcmask 521216  }
  0x9c   :  { %694 = vmatprep.mubr.bf16.mxu1 %v348_v49  ;;  %v337_v51 = vld [vmem:[#allocation2 + $0x60] sm:$0xff]  ;;  %5086 = vmatpush3.bf16.msra.mxu1 %v5244_v58 }
  0x9d   :  { %v345_v52 = vpack.c.bf16 %v337_v51, %v333_v50  ;;  %5087 = vmatprep.subr.bf16.mxu1 %v5245_v59  ;;  %4851 = vmatpush3.bf16.msra.mxu0 %v5253_v5 }
  0x9e   :  { %v335_v53 = vld [vmem:[#allocation2 + $0x50] sm:$0xff]  ;;  %4852 = vmatprep.subr.bf16.mxu0 %v5254_v6 }
  0x9f   :  { %646 = vmatmul.mubr.bf16.gmra.mrb[4].mxu0 %v345_v52 }
  0xa0   :  { %v339_v54 = vld [vmem:[#allocation2 + $0x70] sm:$0xff]  ;;  %5088 = vmatpush3.bf16.msra.mxu1 %v5245_v59 }
  0xa1   :  { %850 = vst.msk [vmem:[#allocation2 + $0x70] sm:$0xc0] %vm6856_vm13, %v5437_v0  ;;  %v347_v55 = vpack.c.bf16 %v339_v54, %v335_v53  ;;  %vm6865_vm13 = vcmask 1040896  }
  0xa2   :  { %794 = vst.msk [vmem:[#allocation2] sm:$0x1] %vm6865_vm13, %v5437_v0  ;;  %795 = vst.msk [vmem:[#allocation2 + $0x40] sm:$0x1] %vm6865_vm13, %v5437_v0 }
  0xa3   :  { %695 = vmatmul.mubr.bf16.gmra.mrb[4].mxu1 %v347_v55 }
 0x163   :  { %v4804_v8 = vpop.f32.mrb[0].mxu0 }
 0x164   :  { %v4805_v9 = vpop.f32.mrb[1].mxu0 }
 0x165   :  { %v4806_v10 = vadd.f32 %v4805_v9, %v4804_v8  ;;  %v4807_v11 = vpop.f32.mrb[2].mxu0 }
 0x166   :  { %v4808_v12 = vpop.f32.mrb[3].mxu0  ;;  %v4832_v13 = vpop.f32.mrb[0].mxu1 }
 0x167   :  { %v4809_v3 = vadd.f32 %v4808_v12, %v4807_v11  ;;  %v4833_v14 = vpop.f32.mrb[1].mxu1 }
 0x168   :  { %v4834_v15 = vadd.f32 %v4833_v14, %v4832_v13  ;;  %v4835_v16 = vpop.f32.mrb[2].mxu1  ;;  %v738_v14 = vld [vmem:[%s4519_s18] sm:$0x1]  ;;  %s5449_s18 = smov 11  }
 0x169   :  { %v4836_v17 = vpop.f32.mrb[3].mxu1  ;;  %s4528_s21 = sld [smem:[%s6848_s0 + %s5449_s18]]   ;;  %s5473_s18 = smov 31  }
 0x16a   :  { %v5701_v18 = vadd.f32 %v4834_v15, %v4806_v10  ;;  %v4837_v7 = vadd.f32 %v4836_v17, %v4835_v16  ;;  %v5255_v17 = vld [vmem:[%s5686_s14 + $0x20] sm:$0xff]  }
 0x16b   :  { %4853 = vmatpush3.bf16.msra.mxu0 %v5255_v17 }
 0x16c   :  { %v717_v19 = vmul.f32 %v5701_v18, %v5701_v18  ;;  %v5705_v20 = vadd.f32 %v4837_v7, %v4809_v3  ;;  %v703_v21 = vsel %vm167_vm10, %v5701_v18, 0.0  ;;  %v747_v3 = vlaneseq  ;;  %v5256_v7 = vld [vmem:[%s5686_s14 + $0x68] sm:$0xff]  }
 0x16d   :  { %4854 = vmatprep.subr.bf16.mxu0 %v5256_v7 }
 0x16e   :  { %v704_v22 = vsel %vm167_vm10, %v5705_v20, 0.0  ;;  %v718_v23 = vmul.f32 %v5705_v20, %v5705_v20  ;;  %v721_v25 = vsel %vm167_vm10, %v717_v19, 0.0  ;;  %v748_v13 = vshrl.u32 %v747_v3, 7 }
 0x16f   :  { %v705_v24 = vadd.f32 %v704_v22, %v703_v21  ;;  %v5257_v21 = vld [vmem:[%s5686_s14 + $0x28] sm:$0xff]  }
 0x170   :  { %v722_v26 = vsel %vm167_vm10, %v718_v23, 0.0  ;;  %v5728_v15 = vsub.s32 0, %v748_v13  ;;  %4855 = vmatpush3.bf16.msra.mxu0 %v5257_v21 }
 0x171   :  { %v723_v27 = vadd.f32 %v722_v26, %v721_v25  ;;  %v5258_v26 = vld [vmem:[%s5686_s14 + $0x70] sm:$0xff]  }
 0x172   :  { %v4810_v28 = vpop.f32.mrb[4].mxu0  ;;  %4856 = vmatprep.subr.bf16.mxu0 %v5258_v26 }
 0x173   :  { %v4811_v29 = vpop.f32.mrb[5].mxu0 }
 0x174   :  { %v4812_v30 = vadd.f32 %v4811_v29, %v4810_v28  ;;  %v4813_v31 = vpop.f32.mrb[6].mxu0 }
 0x175   :  { %v4814_v32 = vpop.f32.mrb[7].mxu0 }
 0x176   :  { %v4815_v33 = vadd.f32 %v4814_v32, %v4813_v31  ;;  %v4838_v34 = vpop.f32.mrb[4].mxu1  ;;  %v5259_v31 = vld [vmem:[%s5686_s14 + $0x30] sm:$0xff]  }
 0x177   :  { %v4839_v35 = vpop.f32.mrb[5].mxu1  ;;  %4857 = vmatpush3.bf16.msra.mxu0 %v5259_v31  ;;  %v5442_v31 = vmov 0  }
 0x178   :  { %v4840_v36 = vadd.f32 %v4839_v35, %v4838_v34  ;;  %v4841_v37 = vpop.f32.mrb[6].mxu1  ;;  %1382 = vmatprep.subr.bf16.mxu1 %v5442_v31 }
 0x179   :  { %v4842_v38 = vpop.f32.mrb[7].mxu1 }
 0x17a   :  { %v697_v39 = vadd.f32 %v4840_v36, %v4812_v30  ;;  %v4843_v40 = vadd.f32 %v4842_v38, %v4841_v37  ;;  %v5260_v36 = vld [vmem:[%s5686_s14 + $0x78] sm:$0xff]  }
 0x17b   :  { %4858 = vmatprep.subr.bf16.mxu0 %v5260_v36  ;;  %v5266_v36 = vld [vmem:[%s5811_s26 + $0x20] sm:$0xff]  }
 0x17c   :  { %v706_v41 = vsel %vm167_vm10, %v697_v39, 0.0  ;;  %v719_v42 = vmul.f32 %v697_v39, %v697_v39  ;;  %v700_v43 = vadd.f32 %v4843_v40, %v4815_v33 }
 0x17d   :  { %v707_v44 = vadd.f32 %v706_v41, %v705_v24 }
 0x17e   :  { %v724_v45 = vsel %vm167_vm10, %v719_v42, 0.0  ;;  %v708_v46 = vsel %vm167_vm10, %v700_v43, 0.0  ;;  %v720_v47 = vmul.f32 %v700_v43, %v700_v43 }
 0x17f   :  { %v725_v48 = vadd.f32 %v724_v45, %v723_v27  ;;  %v709_v49 = vadd.f32 %v708_v46, %v707_v44  ;;  %v5261_v45 = vld [vmem:[%s5686_s14 + $0x38] sm:$0xff]   ;;  %s5448_s14 = smov 8  }
 0x180   :  { %v726_v50 = vsel %vm167_vm10, %v720_v47, 0.0  ;;  %4859 = vmatpush3.bf16.msra.mxu0 %v5261_v45  ;;  %s4525_s17 = sld [smem:[%s6848_s0 + %s5448_s14]]   ;;  %s5472_s14 = smov 33  }
 0x181   :  { %v710_v51 = vrot.slane %v709_v49, 4  ;;  %v727_v52 = vadd.f32 %v726_v50, %v725_v48 }
 0x183   :  { %v711_v53 = vadd.f32 %v710_v51, %v709_v49  ;;  %v728_v54 = vrot.slane %v727_v52, 4 }
 0x185   :  { %v712_v55 = vrot.slane %v711_v53, 2  ;;  %v729_v56 = vadd.f32 %v728_v54, %v727_v52 }
 0x187   :  { %v713_v57 = vadd.f32 %v712_v55, %v711_v53  ;;  %v730_v58 = vrot.slane %v729_v56, 2 }
 0x189   :  { %v714_v59 = vrot.slane %v713_v57, 1  ;;  %v731_v60 = vadd.f32 %v730_v58, %v729_v56 }
 0x18b   :  { %v715_v61 = vadd.f32 %v714_v59, %v713_v57  ;;  %v732_v62 = vrot.slane %v731_v60, 1 }
 0x18d   :  { %v716_v63 = vmul.f32 0.03125, %v715_v61  ;;  %v733_v1 = vadd.f32 %v732_v62, %v731_v60 }
 0x18f   :  { %v734_v2 = vmul.f32 0.03125, %v733_v1  ;;  %v735_v4 = vmul.f32 %v716_v63, %v716_v63  ;;  %v742_v5 = vsub.f32 %v5701_v18, %v716_v63  ;;  %v744_v6 = vsub.f32 %v697_v39, %v716_v63 }
 0x190   :  { %v745_v8 = vsub.f32 %v700_v43, %v716_v63  ;;  %v743_v9 = vsub.f32 %v5705_v20, %v716_v63  ;;  %v4584_v20 = vld [vmem:[%s4520_s22] ss:$0 sm:$0xff]  ;;  %s5450_s22 = smov 9  }
 0x191   :  { %v736_v10 = vsub.f32 %v734_v2, %v735_v4  ;;  %s4526_s25 = sld [smem:[%s6848_s0 + %s5450_s22]]   ;;  %s5475_s22 = smov 34  }
 0x193   :  { %v737_v11 = vmax.f32 %v736_v10, 0.0 }
 0x195   :  { %v739_v12 = vadd.f32 1e-05, %v737_v11 }
 0x197   :  { %5414 = vrsqrt.f32 %v739_v12 }
 0x1a1   :  { %v5415_v16 = vpop.eup %5414 }
 0x1a2   :  { %v741_v18 = vmul.f32 %v5415_v16, %v738_v14 }
 0x1a4   :  { %v750_v19 = vrot.slane %v741_v18, %v5728_v15 }
 0x1a6   :  { %v752_v22 = vmul.f32 %v750_v19, %v742_v5  ;;  %v754_v23 = vmul.f32 %v750_v19, %v744_v6  ;;  %v755_v24 = vmul.f32 %v750_v19, %v745_v8  ;;  %v753_v25 = vmul.f32 %v750_v19, %v743_v9 }
 0x1a8   :  { %v763_v27 = vadd.f32 %v4584_v20, %v752_v22  ;;  %v765_v28 = vadd.f32 %v4584_v20, %v754_v23  ;;  %v766_v29 = vadd.f32 %v4584_v20, %v755_v24  ;;  %v764_v30 = vadd.f32 %v4584_v20, %v753_v25 }
 0x1aa   :  { %v770_v32 = vmax.f32 %v766_v29, 0.0  ;;  %v768_v33 = vmax.f32 %v764_v30, 0.0  ;;  %v767_v34 = vmax.f32 %v763_v27, 0.0  ;;  %v5744_v35 = vmax.f32 %v765_v28, 0.0 }
 0x1ac   :  { %v855_v37 = vrot.slane %v770_v32, 2  ;;  %822 = vst.msk [vmem:[#allocation2 + $0x68] sm:$0xff] %vm167_vm10, %v770_v32  ;;  %v826_v38 = vrot.slane %v768_v33, 1  ;;  %v852_v39 = vrot.slane %v768_v33, 2  ;;  %820 = vst.msk [vmem:[#allocation2 + $0x28] sm:$0xff] %vm167_vm10, %v768_v33  ;;  %v825_v40 = vrot.slane %v767_v34, 1 }
 0x1ad   :  { %819 = vst.msk [vmem:[#allocation2 + $0x8] sm:$0xff] %vm167_vm10, %v767_v34  ;;  %821 = vst.msk [vmem:[#allocation2 + $0x48] sm:$0xff] %vm167_vm10, %v5744_v35  ;;  %v851_v41 = vrot.slane %v767_v34, 2  ;;  %v796_v42 = vrot.slane %v767_v34, 7  ;;  %v797_v43 = vrot.slane %v768_v33, 7  ;;  %v829_v44 = vrot.slane %v770_v32, 1 }
 0x1ae   :  { %823 = vst.msk [vmem:[#allocation2 + $0x2f] sm:$0x1] %vm6865_vm13, %v5437_v0  ;;  %824 = vst.msk [vmem:[#allocation2 + $0x6f] sm:$0x1] %vm6865_vm13, %v5437_v0  ;;  %833 = vrot.lane.b32.xlu1 %v826_v38, %s5438_s10  ;;  %v827_v46 = vsel %vm236_vm15, %v825_v40, %v826_v38  ;;  %v828_v47 = vrot.slane %v5744_v35, 1  ;;  %v854_v48 = vrot.slane %v5744_v35, 2 }
 0x1af   :  { %865 = vst.msk [vmem:[#allocation2 + $0x70] sm:$0x3f] %vm6861_vm1, %v855_v37  ;;  %863 = vst.msk [vmem:[#allocation2 + $0x30] sm:$0x3f] %vm6861_vm1, %v852_v39  ;;  %v799_v49 = vrot.slane %v5744_v35, 7  ;;  %v853_v50 = vsel %vm255_vm6, %v851_v41, %v852_v39  ;;  %831 = vrot.lane.b32.xlu0 %v827_v46, %s5438_s10  ;;  %v798_v51 = vsel %vm202_vm11, %v796_v42, %v797_v43  ;;  %v800_v52 = vrot.slane %v770_v32, 7 }
 0x1b0   :  { %v779_v53 = vrot.slane %v768_v33, 6  ;;  %861 = vst.msk [vmem:[#allocation2 + $0x10] sm:$0xff] %vm167_vm10, %v853_v50  ;;  %v830_v54 = vsel %vm236_vm15, %v828_v47, %v829_v44  ;;  %v856_v55 = vsel %vm255_vm6, %v854_v48, %v855_v37  ;;  %v778_v56 = vrot.slane %v767_v34, 6  ;;  %v5263_v33 = vld [vmem:[%s5811_s26 + $0x8] sm:$0xff]   ;;  %v5264_v34 = vld [vmem:[%s5811_s26 + $0x10] sm:$0xff]   ;;  %v5269_v39 = vld [vmem:[%s5811_s26 + $0x38] sm:$0xff]  }
 0x1b1   :  { %v781_v57 = vrot.slane %v5744_v35, 6  ;;  %864 = vst.msk [vmem:[#allocation2 + $0x50] sm:$0xff] %vm167_vm10, %v856_v55  ;;  %v801_v58 = vsel %vm202_vm11, %v799_v49, %v800_v52  ;;  %v782_v59 = vrot.slane %v770_v32, 6  ;;  %vm6862_vm1 = vcmask 1048065   ;;  %v5262_v32 = vld [vmem:[%s5811_s26] sm:$0xff]   ;;  %v5265_v35 = vld [vmem:[%s5811_s26 + $0x18] sm:$0xff]  }
 0x1b2   :  { %804 = vrot.lane.b32.xlu1 %v798_v51, %s5438_s10  ;;  %v780_v60 = vsel %vm174_vm5, %v778_v56, %v779_v53  ;;  %789 = vst.msk [vmem:[#allocation2] sm:$0xfc] %vm6860_vm9, %v778_v56  ;;  %v5267_v37 = vld [vmem:[%s5811_s26 + $0x28] sm:$0xff]   ;;  %v5268_v38 = vld [vmem:[%s5811_s26 + $0x30] sm:$0xff]   ;;  %v5270_v40 = vld [vmem:[%s5811_s26 + $0x40] sm:$0xff]  }
 0x1b3   :  { %791 = vst.msk [vmem:[#allocation2 + $0x40] sm:$0xfc] %vm6860_vm9, %v781_v57  ;;  %802 = vrot.lane.b32.xlu0 %v796_v42, %s5438_s10  ;;  %v783_v61 = vsel %vm174_vm5, %v781_v57, %v782_v59  ;;  %vm6863_vm9 = vcmask 1047040   ;;  %v5271_v41 = vld [vmem:[%s5811_s26 + $0x48] sm:$0xff]  }
 0x1b4   :  { %790 = vst.msk [vmem:[#allocation2 + $0x20] sm:$0xff] %vm167_vm10, %v780_v60  ;;  %792 = vst.msk [vmem:[#allocation2 + $0x60] sm:$0xff] %vm167_vm10, %v783_v61 }
 0x1b6   :  { %v871_v62 = vld [vmem:[#allocation2 + $0x30] sm:$0xff]  ;;  %837 = vrot.lane.b32.xlu1 %v829_v44, %s5438_s10 }
 0x1b7   :  { %v877_v63 = vld [vmem:[#allocation2 + $0x70] sm:$0xff]  ;;  %1675 = vst.msk [vmem:[#allocation2 + $0x37] sm:$0x1] %vm6864_vm0, %v5437_v0  ;;  %835 = vrot.lane.b32.xlu0 %v830_v54, %s5438_s10 }
 0x1b8   :  { %1676 = vst.msk [vmem:[#allocation2 + $0x77] sm:$0x1] %vm6864_vm0, %v5437_v0  ;;  %v868_v1 = vld [vmem:[#allocation2 + $0x10] sm:$0xff] }
 0x1b9   :  { %v880_v2 = vpack.c.bf16 %v871_v62, %v868_v1  ;;  %v874_v4 = vld [vmem:[#allocation2 + $0x50] sm:$0xff] }
 0x1ba   :  { %v883_v5 = vpack.c.bf16 %v877_v63, %v874_v4  ;;  %808 = vrot.lane.b32.xlu1 %v801_v58, %s5438_s10 }
 0x1bb   :  { %5089 = vmatprep.mubr.msk.bf16.mxu1 %vm167_vm10, %v880_v2  ;;  %806 = vrot.lane.b32.xlu0 %v799_v49, %s5438_s10 }
 0x1bc   :  { %5090 = vmatmul.mubr.msk.bf16.vlgmr.msra.gmra.mrb[8].mxu1 %vm167_vm10, %v883_v5 }
 0x1bd   :  { %1383 = vmatpush1.bf16.msra.mxu1 %v5262_v32 }
 0x1be   :  { %1384 = vmatprep.subr.bf16.mxu1 %v5442_v31 }
 0x1c1   :  { %1385 = vmatpush1.bf16.msra.mxu1 %v5263_v33 }
 0x1c2   :  { %1386 = vmatprep.subr.bf16.mxu1 %v5442_v31 }
 0x1c5   :  { %1387 = vmatpush1.bf16.msra.mxu1 %v5264_v34 }
 0x1c6   :  { %1388 = vmatprep.subr.bf16.mxu1 %v5442_v31 }
 0x1c9   :  { %1389 = vmatpush1.bf16.msra.mxu1 %v5265_v35 }
 0x1ca   :  { %1390 = vmatprep.subr.bf16.mxu1 %v5442_v31 }
 0x1cd   :  { %1391 = vmatpush1.bf16.msra.mxu1 %v5266_v36 }
 0x1ce   :  { %1392 = vmatprep.subr.bf16.mxu1 %v5442_v31 }
 0x1d1   :  { %1393 = vmatpush1.bf16.msra.mxu1 %v5267_v37 }
 0x1d2   :  { %1394 = vmatprep.subr.bf16.mxu1 %v5442_v31 }
 0x1d5   :  { %1395 = vmatpush1.bf16.msra.mxu1 %v5268_v38  ;;  %v1183_v38 = vld [vmem:[%s4522_s30] sm:$0x1]  ;;  %s5452_s30 = smov 21  }
 0x1d6   :  { %1396 = vmatprep.subr.bf16.mxu1 %v5442_v31  ;;  %s6161_s3 = sld [smem:[%s6848_s0 + %s5452_s30]]  }
 0x1d9   :  { %1397 = vmatpush1.bf16.msra.mxu1 %v5269_v39 }
 0x1da   :  { %1398 = vmatprep.subr.bf16.mxu1 %v5442_v31 }
 0x1dd   :  { %1399 = vmatpush1.bf16.msra.mxu1 %v5270_v40 }
 0x1de   :  { %1400 = vmatprep.subr.bf16.mxu1 %v5442_v31 }
 0x1e1   :  { %1401 = vmatpush1.bf16.msra.mxu1 %v5271_v41 }
 0x1e2   :  { %1402 = vmatprep.subr.bf16.mxu1 %v5442_v31 }
 0x220   :  { %v834_v6 = vpop.permute.xlu1 %833 }
 0x221   :  { %845 = vst.msk [vmem:[#allocation2 + $0x28] sm:$0x7f] %vm6863_vm9, %v834_v6  ;;  %v832_v8 = vpop.permute.xlu0 %831 }
 0x222   :  { %843 = vst.msk [vmem:[#allocation2 + $0x8] sm:$0xff] %vm195_vm14, %v832_v8 }
 0x224   :  { %v805_v9 = vpop.permute.xlu1 %804 }
 0x225   :  { %816 = vst.msk [vmem:[#allocation2 + $0x20] sm:$0xff] %vm195_vm14, %v805_v9  ;;  %v803_v10 = vpop.permute.xlu0 %802 }
 0x226   :  { %815 = vst.msk [vmem:[#allocation2] sm:$0xfe] %vm6862_vm1, %v803_v10 }
 0x228   :  { %v838_v11 = vpop.permute.xlu1 %837  ;;  %v870_v12 = vld [vmem:[#allocation2 + $0x28] sm:$0xff] }
 0x229   :  { %847 = vst.msk [vmem:[#allocation2 + $0x68] sm:$0x7f] %vm6863_vm9, %v838_v11  ;;  %v836_v13 = vpop.permute.xlu0 %835  ;;  %v867_v14 = vld [vmem:[#allocation2 + $0x8] sm:$0xff]  ;;  %vm6868_vm9 = vcmask 1041920  }
 0x22a   :  { %1252 = vst.msk [vmem:[#allocation2 + $0x2f] sm:$0x1] %vm6864_vm0, %v5437_v0  ;;  %v879_v16 = vpack.c.bf16 %v870_v12, %v867_v14  ;;  %vm6870_vm13 = vmmov %vm6868_vm9 }
 0x22b   :  { %846 = vst.msk [vmem:[#allocation2 + $0x48] sm:$0xff] %vm195_vm14, %v836_v13 }
 0x22c   :  { %1082 = vmatprep.mubr.bf16.mxu0 %v879_v16  ;;  %v809_v17 = vpop.permute.xlu1 %808  ;;  %v869_v18 = vld [vmem:[#allocation2 + $0x20] sm:$0xff] }
 0x22d   :  { %818 = vst.msk [vmem:[#allocation2 + $0x60] sm:$0xff] %vm195_vm14, %v809_v17  ;;  %v807_v7 = vpop.permute.xlu0 %806  ;;  %v866_v19 = vld [vmem:[#allocation2] sm:$0xff] }
 0x22e   :  { %817 = vst.msk [vmem:[#allocation2 + $0x40] sm:$0xfe] %vm6862_vm1, %v807_v7  ;;  %v878_v20 = vpack.c.bf16 %v869_v18, %v866_v19  ;;  %vm6867_vm1 = vcmask 518144  }
 0x22f   :  { %1216 = vst.msk [vmem:[#allocation2] sm:$0x1] %vm6864_vm0, %v5437_v0 }
 0x230   :  { %1083 = vmatmul.mubr.bf16.vlgmr.msra.gmra.mrb[8].mxu0 %v878_v20  ;;  %v876_v21 = vld [vmem:[#allocation2 + $0x68] sm:$0xff] }
 0x231   :  { %1253 = vst.msk [vmem:[#allocation2 + $0x6f] sm:$0x1] %vm6864_vm0, %v5437_v0 }
 0x232   :  { %v873_v22 = vld [vmem:[#allocation2 + $0x48] sm:$0xff] }
 0x233   :  { %v882_v23 = vpack.c.bf16 %v876_v21, %v873_v22 }
 0x234   :  { %v875_v24 = vld [vmem:[#allocation2 + $0x60] sm:$0xff] }
 0x235   :  { %1090 = vmatprep.mubr.bf16.mxu0 %v882_v23  ;;  %v872_v25 = vld [vmem:[#allocation2 + $0x40] sm:$0xff] }
 0x236   :  { %v881_v26 = vpack.c.bf16 %v875_v24, %v872_v25  ;;  %1217 = vst.msk [vmem:[#allocation2 + $0x40] sm:$0x1] %vm6864_vm0, %v5437_v0 }
 0x238   :  { %1091 = vmatmul.mubr.bf16.gmra.mrb[12].mxu0 %v881_v26 }
 0x28f   :  { %v5091_v27 = vpop.f32.mrb[8].mxu1 }
 0x290   :  { %v1133_v28 = vpop.f32.mrb[9].mxu1 }
 0x291   :  { %v5092_v29 = vpop.f32.mrb[10].mxu1 }
 0x292   :  { %v1136_v30 = vpop.f32.mrb[11].mxu1 }
 0x303   :  { %v4860_v42 = vpop.f32.mrb[8].mxu0 }
 0x304   :  { %v4861_v43 = vpop.f32.mrb[9].mxu0 }
 0x305   :  { %v4862_v44 = vadd.f32 %v4861_v43, %v4860_v42  ;;  %v4863_v45 = vpop.f32.mrb[10].mxu0  ;;  %v4607_v42 = vld [vmem:[%s4523_s4] ss:$0 sm:$0xff]  ;;  %v5272_v43 = vld [vmem:[%s5811_s26 + $0x50] sm:$0xff]   ;;  %s5453_s4 = smov 13  }
 0x306   :  { %v4864_v46 = vpop.f32.mrb[11].mxu0  ;;  %1403 = vmatpush1.bf16.msra.mxu1 %v5272_v43  ;;  %s4530_s8 = sld [smem:[%s6848_s0 + %s5453_s4]]  }
 0x307   :  { %v5833_v47 = vadd.f32 %v4862_v44, %v1133_v28  ;;  %v4865_v48 = vadd.f32 %v4864_v46, %v4863_v45  ;;  %1404 = vmatprep.subr.bf16.mxu1 %v5442_v31 }
 0x309   :  { %v1162_v49 = vmul.f32 %v5833_v47, %v5833_v47  ;;  %v1137_v50 = vadd.f32 %v4865_v48, %v1136_v30  ;;  %v1148_v51 = vsel %vm167_vm10, %v5833_v47, 0.0 }
 0x30b   :  { %v1149_v52 = vsel %vm167_vm10, %v1137_v50, 0.0  ;;  %v1163_v53 = vmul.f32 %v1137_v50, %v1137_v50  ;;  %v4866_v54 = vpop.f32.mrb[12].mxu0  ;;  %v1166_v57 = vsel %vm167_vm10, %v1162_v49, 0.0 }
 0x30c   :  { %v1150_v55 = vadd.f32 %v1149_v52, %v1148_v51  ;;  %v4867_v56 = vpop.f32.mrb[13].mxu0  ;;  %v5273_v52 = vld [vmem:[%s5811_s26 + $0x58] sm:$0xff]   ;;  %s5451_s26 = smov 15  }
 0x30d   :  { %v1167_v58 = vsel %vm167_vm10, %v1163_v53, 0.0  ;;  %v4868_v59 = vadd.f32 %v4867_v56, %v4866_v54  ;;  %v4869_v60 = vpop.f32.mrb[14].mxu0  ;;  %1405 = vmatpush1.bf16.msra.mxu1 %v5273_v52  ;;  %s6152_s29 = sld [smem:[%s6848_s0 + %s5451_s26]]  }
 0x30e   :  { %v1168_v61 = vadd.f32 %v1167_v58, %v1166_v57  ;;  %v4870_v62 = vpop.f32.mrb[15].mxu0 }
 0x30f   :  { %v1142_v63 = vadd.f32 %v5091_v27, %v4868_v59  ;;  %v4871_v1 = vadd.f32 %v4870_v62, %v4869_v60 }
 0x311   :  { %v1151_v2 = vsel %vm167_vm10, %v1142_v63, 0.0  ;;  %v1164_v4 = vmul.f32 %v1142_v63, %v1142_v63  ;;  %v1145_v5 = vadd.f32 %v5092_v29, %v4871_v1 }
 0x312   :  { %v1152_v6 = vadd.f32 %v1151_v2, %v1150_v55 }
 0x313   :  { %v1169_v8 = vsel %vm167_vm10, %v1164_v4, 0.0  ;;  %v1153_v9 = vsel %vm167_vm10, %v1145_v5, 0.0  ;;  %v1165_v10 = vmul.f32 %v1145_v5, %v1145_v5 }
 0x314   :  { %v1170_v11 = vadd.f32 %v1169_v8, %v1168_v61  ;;  %v1154_v12 = vadd.f32 %v1153_v9, %v1152_v6  ;;  %v5432_v8 = vld [vmem:[%s5484_s5] sm:$0xff]  ;;  %v5433_v9 = vld [vmem:[%s5484_s5 + $0x8] sm:$0xff] }
 0x315   :  { %v1171_v13 = vsel %vm167_vm10, %v1165_v10, 0.0  ;;  %v1495_v10 = vpack.c.bf16 %v5433_v9, %v5432_v8 }
 0x316   :  { %v1155_v14 = vrot.slane %v1154_v12, 4  ;;  %v1172_v16 = vadd.f32 %v1171_v13, %v1170_v11 }
 0x317   :  { %5101 = vmatprep.mubr.msk.bf16.mxu0 %vm167_vm10, %v1495_v10 }
 0x318   :  { %v1156_v17 = vadd.f32 %v1155_v14, %v1154_v12  ;;  %v1173_v18 = vrot.slane %v1172_v16, 4 }
 0x31a   :  { %v1157_v7 = vrot.slane %v1156_v17, 2  ;;  %v1174_v19 = vadd.f32 %v1173_v18, %v1172_v16  ;;  %v5274_v16 = vld [vmem:[%s4527_s9] sm:$0xff]   ;;  %v5276_v18 = vld [vmem:[%s4527_s9 + $0x10] sm:$0xff]  }
 0x31b   :  { %5093 = vmatprep.subr.bf16.mxu0 %v5274_v16 }
 0x31c   :  { %v1158_v20 = vadd.f32 %v1157_v7, %v1156_v17  ;;  %v1175_v21 = vrot.slane %v1174_v19, 2  ;;  %v5275_v17 = vld [vmem:[%s4527_s9 + $0x8] sm:$0xff]   ;;  %5094 = vmatpush3.bf16.msra.mxu0 %v5274_v16  ;;  %v5277_v7 = vld [vmem:[%s4527_s9 + $0x18] sm:$0xff]   ;;  %s5454_s9 = smov 14  }
 0x31d   :  { %5095 = vmatprep.subr.bf16.mxu0 %v5275_v17  ;;  %s4531_s12 = sld [smem:[%s6848_s0 + %s5454_s9]]  }
 0x31e   :  { %v1159_v22 = vrot.slane %v1158_v20, 1  ;;  %v1176_v23 = vadd.f32 %v1175_v21, %v1174_v19  ;;  %v5434_v19 = vld [vmem:[%s5484_s5 + $0x10] sm:$0xff] }
 0x320   :  { %v1160_v24 = vadd.f32 %v1159_v22, %v1158_v20  ;;  %v1177_v25 = vrot.slane %v1176_v23, 1  ;;  %5096 = vmatpush3.bf16.msra.mxu0 %v5275_v17  ;;  %v5435_v20 = vld [vmem:[%s5484_s5 + $0x18] sm:$0xff]  ;;  %s5447_s5 = smov 12  }
 0x321   :  { %5097 = vmatprep.subr.bf16.mxu0 %v5276_v18  ;;  %v1496_v21 = vpack.c.bf16 %v5435_v20, %v5434_v19  ;;  %s5911_s13 = sld [smem:[%s6848_s0 + %s5447_s5]]  }
 0x322   :  { %v1161_v26 = vmul.f32 0.03125, %v1160_v24  ;;  %v1178_v27 = vadd.f32 %v1177_v25, %v1176_v23 }
 0x324   :  { %v1179_v28 = vmul.f32 0.03125, %v1178_v27  ;;  %v1180_v29 = vmul.f32 %v1161_v26, %v1161_v26  ;;  %v1190_v30 = vsub.f32 %v1145_v5, %v1161_v26  ;;  %v1188_v32 = vsub.f32 %v1137_v50, %v1161_v26  ;;  %5098 = vmatpush3.bf16.msra.mxu0 %v5276_v18 }
 0x325   :  { %v1187_v33 = vsub.f32 %v5833_v47, %v1161_v26  ;;  %v1189_v34 = vsub.f32 %v1142_v63, %v1161_v26  ;;  %5099 = vmatprep.subr.bf16.mxu0 %v5277_v7 }
 0x326   :  { %v1181_v35 = vsub.f32 %v1179_v28, %v1180_v29 }
 0x328   :  { %v1182_v36 = vmax.f32 %v1181_v35, 0.0  ;;  %5100 = vmatpush3.bf16.msra.mxu0 %v5277_v7 }
 0x32a   :  { %v1184_v37 = vadd.f32 1e-05, %v1182_v36 }
 0x32b   :  { %5102 = vmatmul.mubr.msk.bf16.vlgmr.msra.gmra.mrb[16].mxu0 %vm167_vm10, %v1496_v21 }
 0x32c   :  { %5416 = vrsqrt.f32 %v1184_v37 }
 0x336   :  { %v5417_v39 = vpop.eup %5416 }
 0x337   :  { %v1186_v40 = vmul.f32 %v5417_v39, %v1183_v38  ;;  %v5278_v39 = vld [vmem:[%s5911_s13 + $0x40] sm:$0xff]  }
 0x338   :  { %4884 = vmatprep.subr.bf16.mxu0 %v5278_v39  ;;  %v5284_v39 = vld [vmem:[%s5911_s13 + $0x8] sm:$0xff]  }
 0x339   :  { %v1195_v41 = vrot.slane %v1186_v40, %v5728_v15  ;;  %v5279_v40 = vld [vmem:[%s5911_s13 + $0xc0] sm:$0xff]  }
 0x33a   :  { %4912 = vmatprep.subr.bf16.mxu1 %v5279_v40 }
 0x33b   :  { %v1198_v44 = vmul.f32 %v1195_v41, %v1188_v32  ;;  %v1197_v45 = vmul.f32 %v1195_v41, %v1187_v33  ;;  %v1200_v46 = vmul.f32 %v1195_v41, %v1190_v30  ;;  %v1199_v47 = vmul.f32 %v1195_v41, %v1189_v34  ;;  %v5280_v41 = vld [vmem:[%s5911_s13] sm:$0xff]  }
 0x33c   :  { %4885 = vmatpush3.bf16.msra.mxu0 %v5280_v41  ;;  %v4623_v41 = vld [vmem:[%s4528_s21] ss:$0 sm:$0xff]  ;;  %s5457_s21 = smov 17  }
 0x33d   :  { %v1209_v48 = vadd.f32 %v4607_v42, %v1198_v44  ;;  %v1208_v49 = vadd.f32 %v4607_v42, %v1197_v45  ;;  %v1211_v50 = vadd.f32 %v4607_v42, %v1200_v46  ;;  %v1210_v51 = vadd.f32 %v4607_v42, %v1199_v47  ;;  %v5281_v42 = vld [vmem:[%s5911_s13 + $0x80] sm:$0xff]   ;;  %s4534_s24 = sld [smem:[%s6848_s0 + %s5457_s21]]  }
 0x33e   :  { %s4548_s21 = sld [smem:[%s6848_s0 + %s5473_s18]]  }
 0x33f   :  { %v1213_v53 = vmax.f32 %v1209_v48, 0.0  ;;  %v1212_v54 = vmax.f32 %v1208_v49, 0.0  ;;  %v1215_v55 = vmax.f32 %v1211_v50, 0.0  ;;  %v1214_v56 = vmax.f32 %v1210_v51, 0.0 }
 0x341   :  { %1238 = vrot.lane.b32.xlu1 %v1213_v53, %s5438_s10  ;;  %v1223_v57 = vrot.slane %v1213_v53, 7  ;;  %v1255_v58 = vrot.slane %v1213_v53, 1  ;;  %1236 = vrot.lane.b32.xlu0 %v1212_v54, %s5438_s10  ;;  %v1222_v59 = vrot.slane %v1212_v54, 7  ;;  %v1254_v60 = vrot.slane %v1212_v54, 1 }
 0x342   :  { %v1226_v61 = vrot.slane %v1215_v55, 7  ;;  %v1258_v62 = vrot.slane %v1215_v55, 1  ;;  %v1225_v63 = vrot.slane %v1214_v56, 7  ;;  %v1257_v1 = vrot.slane %v1214_v56, 1 }
 0x343   :  { %1265 = vst.msk [vmem:[#allocation2 + $0x28] sm:$0x7f] %vm248_vm3, %v1255_v58  ;;  %v1256_v2 = vsel %vm236_vm15, %v1254_v60, %v1255_v58  ;;  %v1224_v4 = vsel %vm202_vm11, %v1222_v59, %v1223_v57 }
 0x344   :  { %1232 = vst.msk [vmem:[#allocation2] sm:$0xfe] %vm213_vm7, %v1222_v59  ;;  %v1259_v5 = vsel %vm236_vm15, %v1257_v1, %v1258_v62  ;;  %1234 = vst.msk [vmem:[#allocation2 + $0x40] sm:$0xfe] %vm213_vm7, %v1225_v63  ;;  %v1227_v6 = vsel %vm202_vm11, %v1225_v63, %v1226_v61 }
 0x345   :  { %1264 = vst.msk [vmem:[#allocation2 + $0x8] sm:$0xff] %vm167_vm10, %v1256_v2  ;;  %1233 = vst.msk [vmem:[#allocation2 + $0x20] sm:$0xff] %vm167_vm10, %v1224_v4  ;;  %1242 = vrot.lane.b32.xlu1 %v1215_v55, %s5438_s10  ;;  %1240 = vrot.lane.b32.xlu0 %v1214_v56, %s5438_s10 }
 0x346   :  { %1267 = vst.msk [vmem:[#allocation2 + $0x68] sm:$0x7f] %vm248_vm3, %v1258_v62 }
 0x347   :  { %1266 = vst.msk [vmem:[#allocation2 + $0x48] sm:$0xff] %vm167_vm10, %v1259_v5  ;;  %1235 = vst.msk [vmem:[#allocation2 + $0x60] sm:$0xff] %vm167_vm10, %v1227_v6 }
 0x34a   :  { %v1271_v11 = vld [vmem:[#allocation2 + $0x28] sm:$0xff] }
 0x34c   :  { %v1269_v12 = vld [vmem:[#allocation2 + $0x8] sm:$0xff] }
 0x34d   :  { %v1277_v13 = vpack.c.bf16 %v1271_v11, %v1269_v12  ;;  %1643 = vst.msk [vmem:[#allocation2 + $0x8] sm:$0x1] %vm6864_vm0, %v5437_v0  ;;  %v1275_v26 = vld [vmem:[#allocation2 + $0x68] sm:$0xff] }
 0x34e   :  { %v1273_v14 = vld [vmem:[#allocation2 + $0x48] sm:$0xff] }
 0x34f   :  { %1644 = vst.msk [vmem:[#allocation2 + $0x48] sm:$0x1] %vm6864_vm0, %v5437_v0  ;;  %4620 = vmatprep.mubr.msk.bf16.mxu1 %vm167_vm10, %v1277_v13  ;;  %v1279_v30 = vpack.c.bf16 %v1275_v26, %v1273_v14  ;;  %vm6869_vm0 = vmmov %vm6867_vm1 }
 0x3b3   :  { %v1239_v22 = vpop.permute.xlu1 %1238  ;;  %v1237_v23 = vpop.permute.xlu0 %1236 }
 0x3b4   :  { %1249 = vst.msk [vmem:[#allocation2 + $0x20] sm:$0xff] %vm195_vm14, %v1239_v22  ;;  %1248 = vst.msk [vmem:[#allocation2] sm:$0xff] %vm195_vm14, %v1237_v23 }
 0x3b7   :  { %v1243_v24 = vpop.permute.xlu1 %1242  ;;  %v1241_v25 = vpop.permute.xlu0 %1240 }
 0x3b8   :  { %1251 = vst.msk [vmem:[#allocation2 + $0x60] sm:$0xff] %vm195_vm14, %v1243_v24  ;;  %1250 = vst.msk [vmem:[#allocation2 + $0x40] sm:$0xff] %vm195_vm14, %v1241_v25 }
 0x3bb   :  { %v1268_v27 = vld [vmem:[#allocation2] sm:$0xff] }
 0x3bc   :  { %v1270_v28 = vld [vmem:[#allocation2 + $0x20] sm:$0xff]  ;;  %1599 = vst.msk [vmem:[#allocation2] sm:$0x7] %vm6867_vm1, %v5437_v0  ;;  %vm6872_vm1 = vcmask 1048068  }
 0x3bd   :  { %v1276_v29 = vpack.c.bf16 %v1270_v28, %v1268_v27  ;;  %1619 = vst.msk [vmem:[#allocation2] sm:$0x3] %vm6868_vm9, %v5437_v0 }
 0x3bf   :  { %1415 = vmatmul.mubr.bf16.vlgmr.msra.gmra.mrb[12].mxu1 %v1276_v29  ;;  %v1272_v32 = vld [vmem:[#allocation2 + $0x40] sm:$0xff] }
 0x3c0   :  { %4621 = vmatprep.mubr.msk.bf16.mxu1 %vm167_vm10, %v1279_v30  ;;  %1600 = vst.msk [vmem:[#allocation2 + $0x40] sm:$0x7] %vm6869_vm0, %v5437_v0  ;;  %v1274_v33 = vld [vmem:[#allocation2 + $0x60] sm:$0xff]  ;;  %4913 = vmatpush3.bf16.msra.mxu1 %v5281_v42  ;;  %v5285_v42 = vld [vmem:[%s5911_s13 + $0x88] sm:$0xff]   ;;  %vm6871_vm0 = vcmask 523267  }
 0x3c1   :  { %1620 = vst.msk [vmem:[#allocation2 + $0x40] sm:$0x3] %vm6870_vm13, %v5437_v0  ;;  %v1278_v34 = vpack.c.bf16 %v1274_v33, %v1272_v32  ;;  %v1466_v30 = vld [vmem:[%s4525_s17] sm:$0x1]  ;;  %v5282_v33 = vld [vmem:[%s5911_s13 + $0x48] sm:$0xff]   ;;  %vm6873_vm9 = vmmov %vm6871_vm0  ;;  %vm6874_vm13 = vcmask 1048070  }
 0x3c2   :  { %4886 = vmatprep.subr.bf16.mxu0 %v5282_v33  ;;  %v5294_v33 = vld [vmem:[%s5911_s13 + $0x60] sm:$0xff]   ;;  %s5456_s17 = smov 16  }
 0x3c3   :  { %4887 = vmatpush3.bf16.msra.mxu0 %v5284_v39  ;;  %s4533_s20 = sld [smem:[%s6848_s0 + %s5456_s17]]  }
 0x3c4   :  { %s4550_s17 = sld [smem:[%s6848_s0 + %s5472_s14]]  }
 0x3c7   :  { %1423 = vmatmul.mubr.bf16.gmra.mrb[16].mxu1 %v1278_v34  ;;  %v5283_v34 = vld [vmem:[%s5911_s13 + $0xc8] sm:$0xff]  }
 0x3c8   :  { %4914 = vmatprep.subr.bf16.mxu1 %v5283_v34  ;;  %v5295_v34 = vld [vmem:[%s5911_s13 + $0xe0] sm:$0xff]  }
 0x3c9   :  { %4915 = vmatpush3.bf16.msra.mxu1 %v5285_v42  ;;  %v5296_v42 = vld [vmem:[%s5911_s13 + $0x20] sm:$0xff]  }
 0x3fe   :  { %v5900_v35 = vpop.f32.mrb[16].mxu0 }
 0x3ff   :  { %v5902_v36 = vpop.f32.mrb[17].mxu0 }
 0x400   :  { %v5904_v37 = vpop.f32.mrb[18].mxu0 }
 0x401   :  { %v5906_v38 = vpop.f32.mrb[19].mxu0 }
 0x492   :  { %v5917_v43 = vpop.f32.mrb[12].mxu1 }
 0x493   :  { %v1445_v44 = vmul.f32 %v5917_v43, %v5917_v43  ;;  %v1418_v45 = vpop.f32.mrb[13].mxu1  ;;  %v1431_v47 = vsel %vm167_vm10, %v5917_v43, 0.0 }
 0x494   :  { %v5921_v46 = vpop.f32.mrb[14].mxu1  ;;  %v1585_v45 = vadd.f32 %v5900_v35, %v4623_v41 }
 0x495   :  { %v1432_v48 = vsel %vm167_vm10, %v5921_v46, 0.0  ;;  %v1446_v49 = vmul.f32 %v5921_v46, %v5921_v46  ;;  %v1421_v50 = vpop.f32.mrb[15].mxu1  ;;  %v1449_v52 = vsel %vm167_vm10, %v1445_v44, 0.0  ;;  %v4622_v44 = vld [vmem:[%s4526_s25] ss:$0 sm:$0xff]  ;;  %s5458_s25 = smov 23  }
 0x496   :  { %v1433_v51 = vadd.f32 %v1432_v48, %v1431_v47  ;;  %v5287_v47 = vld [vmem:[%s5911_s13 + $0xd0] sm:$0xff]   ;;  %s6381_s28 = sld [smem:[%s6848_s0 + %s5458_s25]]  }
 0x497   :  { %v1450_v53 = vsel %vm167_vm10, %v1446_v49, 0.0  ;;  %v5288_v48 = vld [vmem:[%s5911_s13 + $0x10] sm:$0xff]   ;;  %4916 = vmatprep.subr.bf16.mxu1 %v5287_v47  ;;  %v5298_v47 = vld [vmem:[%s5911_s13 + $0x68] sm:$0xff]   ;;  %s4551_s25 = sld [smem:[%s6848_s0 + %s5475_s22]]  }
 0x498   :  { %v1451_v54 = vadd.f32 %v1450_v53, %v1449_v52  ;;  %v5289_v53 = vld [vmem:[%s5911_s13 + $0x90] sm:$0xff]  }
 0x499   :  { %4917 = vmatpush3.bf16.msra.mxu1 %v5289_v53 }
 0x49a   :  { %v5931_v55 = vpop.f32.mrb[16].mxu1 }
 0x49b   :  { %v1434_v56 = vsel %vm167_vm10, %v5931_v55, 0.0  ;;  %v1447_v57 = vmul.f32 %v5931_v55, %v5931_v55  ;;  %v1426_v58 = vpop.f32.mrb[17].mxu1 }
 0x49c   :  { %v1435_v59 = vadd.f32 %v1434_v56, %v1433_v51  ;;  %v1427_v60 = vpop.f32.mrb[18].mxu1  ;;  %v1580_v56 = vadd.f32 %v4623_v41, %v5906_v38 }
 0x49d   :  { %v1452_v61 = vsel %vm167_vm10, %v1447_v57, 0.0  ;;  %v1436_v62 = vsel %vm167_vm10, %v1427_v60, 0.0  ;;  %v1448_v63 = vmul.f32 %v1427_v60, %v1427_v60  ;;  %v1429_v1 = vpop.f32.mrb[19].mxu1 }
 0x49e   :  { %v1453_v2 = vadd.f32 %v1452_v61, %v1451_v54  ;;  %v1437_v4 = vadd.f32 %v1436_v62, %v1435_v59  ;;  %v1577_v54 = vadd.f32 %v4623_v41, %v5902_v36  ;;  %v5292_v1 = vld [vmem:[%s5911_s13 + $0x18] sm:$0xff]  }
 0x49f   :  { %v1454_v5 = vsel %vm167_vm10, %v1448_v63, 0.0 }
 0x4a0   :  { %v1438_v6 = vrot.slane %v1437_v4, 4  ;;  %v1455_v8 = vadd.f32 %v1454_v5, %v1453_v2  ;;  %v5293_v2 = vld [vmem:[%s5911_s13 + $0x98] sm:$0xff]  }
 0x4a2   :  { %v1439_v9 = vadd.f32 %v1438_v6, %v1437_v4  ;;  %v1456_v10 = vrot.slane %v1455_v8, 4 }
 0x4a4   :  { %v1440_v11 = vrot.slane %v1439_v9, 2  ;;  %v1457_v12 = vadd.f32 %v1456_v10, %v1455_v8 }
 0x4a6   :  { %v1441_v13 = vadd.f32 %v1440_v11, %v1439_v9  ;;  %v1458_v14 = vrot.slane %v1457_v12, 2 }
 0x4a8   :  { %v1442_v16 = vrot.slane %v1441_v13, 1  ;;  %v1459_v17 = vadd.f32 %v1458_v14, %v1457_v12 }
 0x4aa   :  { %v1443_v18 = vadd.f32 %v1442_v16, %v1441_v13  ;;  %v1460_v7 = vrot.slane %v1459_v17, 1 }
 0x4ac   :  { %v1444_v19 = vmul.f32 0.03125, %v1443_v18  ;;  %v1461_v20 = vadd.f32 %v1460_v7, %v1459_v17 }
 0x4ae   :  { %v1462_v21 = vmul.f32 0.03125, %v1461_v20  ;;  %v1463_v22 = vmul.f32 %v1444_v19, %v1444_v19  ;;  %v1473_v23 = vsub.f32 %v1427_v60, %v1444_v19  ;;  %v1472_v24 = vsub.f32 %v5931_v55, %v1444_v19  ;;  %v5290_v60 = vld [vmem:[%s5911_s13 + $0x58] sm:$0xff]  }
 0x4af   :  { %v1470_v25 = vsub.f32 %v5917_v43, %v1444_v19  ;;  %v1471_v26 = vsub.f32 %v5921_v46, %v1444_v19  ;;  %v5286_v46 = vld [vmem:[%s5911_s13 + $0x50] sm:$0xff]   ;;  %v1588_v55 = vadd.f32 %v5904_v37, %v4623_v41  ;;  %v5291_v37 = vld [vmem:[%s5911_s13 + $0xd8] sm:$0xff]  }
 0x4b0   :  { %v1464_v27 = vsub.f32 %v1462_v21, %v1463_v22  ;;  %4888 = vmatprep.subr.bf16.mxu0 %v5286_v46  ;;  %4918 = vmatprep.subr.bf16.mxu1 %v5291_v37 }
 0x4b1   :  { %4889 = vmatpush3.bf16.msra.mxu0 %v5288_v48  ;;  %4919 = vmatpush3.bf16.msra.mxu1 %v5293_v2  ;;  %v5299_v48 = vld [vmem:[%s5911_s13 + $0xe8] sm:$0xff]   ;;  %v5305_v2 = vld [vmem:[%s5911_s13 + $0xb0] sm:$0xff]  }
 0x4b2   :  { %v1465_v28 = vmax.f32 %v1464_v27, 0.0  ;;  %4890 = vmatprep.subr.bf16.mxu0 %v5290_v60  ;;  %4920 = vmatprep.subr.bf16.mxu1 %v5295_v34  ;;  %v5303_v60 = vld [vmem:[%s5911_s13 + $0xf0] sm:$0xff]  }
 0x4b4   :  { %v1467_v29 = vadd.f32 1e-05, %v1465_v28 }
 0x4b5   :  { %4891 = vmatpush3.bf16.msra.mxu0 %v5292_v1  ;;  %v5304_v1 = vld [vmem:[%s5911_s13 + $0x30] sm:$0xff]  }
 0x4b6   :  { %5418 = vrsqrt.f32 %v1467_v29  ;;  %4892 = vmatprep.subr.bf16.mxu0 %v5294_v33 }
 0x4b9   :  { %4893 = vmatpush3.bf16.msra.mxu0 %v5296_v42 }
 0x4ba   :  { %4894 = vmatprep.subr.bf16.mxu0 %v5298_v47 }
 0x4c0   :  { %v5419_v32 = vpop.eup %5418 }
 0x4c1   :  { %v1469_v40 = vmul.f32 %v5419_v32, %v1466_v30 }
 0x4c3   :  { %v1478_v43 = vrot.slane %v1469_v40, %v5728_v15 }
 0x4c5   :  { %v1483_v49 = vmul.f32 %v1478_v43, %v1473_v23  ;;  %v1482_v50 = vmul.f32 %v1478_v43, %v1472_v24  ;;  %v1480_v51 = vmul.f32 %v1478_v43, %v1470_v25  ;;  %v1481_v52 = vmul.f32 %v1478_v43, %v1471_v26  ;;  %v5297_v43 = vld [vmem:[%s5911_s13 + $0xa0] sm:$0xff]  }
 0x4c6   :  { %4921 = vmatpush3.bf16.msra.mxu1 %v5297_v43 }
 0x4c7   :  { %v1493_v35 = vadd.f32 %v4622_v44, %v1482_v50  ;;  %v1491_v57 = vadd.f32 %v4622_v44, %v1480_v51  ;;  %v1494_v58 = vadd.f32 %v4622_v44, %v1483_v49  ;;  %v1492_v59 = vadd.f32 %v4622_v44, %v1481_v52  ;;  %4922 = vmatprep.subr.bf16.mxu1 %v5299_v48 }
 0x4c9   :  { %v1593_v61 = vadd.f32 %v1585_v45, %v1493_v35  ;;  %v1591_v62 = vadd.f32 %v1577_v54, %v1491_v57  ;;  %v1594_v63 = vadd.f32 %v1588_v55, %v1494_v58  ;;  %v1592_v36 = vadd.f32 %v1580_v56, %v1492_v59  ;;  %v5300_v56 = vld [vmem:[%s5911_s13 + $0x28] sm:$0xff]   ;;  %v5302_v59 = vld [vmem:[%s5911_s13 + $0x70] sm:$0xff]  }
 0x4ca   :  { %v5301_v35 = vld [vmem:[%s5911_s13 + $0xa8] sm:$0xff]   ;;  %4895 = vmatpush3.bf16.msra.mxu0 %v5300_v56 }
 0x4cb   :  { %v5969_v38 = vmax.f32 %v1593_v61, 0.0  ;;  %v5971_v4 = vmax.f32 %v1591_v62, 0.0  ;;  %v5973_v5 = vmax.f32 %v1594_v63, 0.0  ;;  %v5975_v6 = vmax.f32 %v1592_v36, 0.0  ;;  %4923 = vmatpush3.bf16.msra.mxu1 %v5301_v35  ;;  %4896 = vmatprep.subr.bf16.mxu0 %v5302_v59  ;;  %v5310_v35 = vld [vmem:[%s6152_s29 + $0x80] sm:$0xff]   ;;  %v5313_v59 = vld [vmem:[%s6152_s29 + $0x98] sm:$0xff]  }
 0x4cc   :  { %4924 = vmatprep.subr.bf16.mxu1 %v5303_v60  ;;  %v6164_v60 = vld [vmem:[%s6161_s3] sm:$0xff]  }
 0x4cd   :  { %1661 = vrot.lane.b32.xlu1 %v5975_v6, %s5438_s10  ;;  %1659 = vrot.lane.b32.xlu0 %v5971_v4, %s5438_s10  ;;  %v1734_v8 = vrot.slane %v5975_v6, 4  ;;  %v1621_v9 = vrot.slane %v5971_v4, 6  ;;  %v1694_v10 = vrot.slane %v5975_v6, 2  ;;  %v1624_v11 = vrot.slane %v5969_v38, 6 }
 0x4ce   :  { %v1737_v12 = vrot.slane %v5973_v5, 4  ;;  %v1733_v13 = vrot.slane %v5971_v4, 4  ;;  %v1693_v14 = vrot.slane %v5971_v4, 2  ;;  %v1622_v16 = vrot.slane %v5975_v6, 6  ;;  %4897 = vmatpush3.bf16.msra.mxu0 %v5304_v1  ;;  %v5321_v1 = vld [vmem:[%s6152_s29 + $0x8] sm:$0xff]  }
 0x4cf   :  { %v1736_v17 = vrot.slane %v5969_v38, 4  ;;  %v1625_v18 = vrot.slane %v5973_v5, 6  ;;  %v1696_v7 = vrot.slane %v5969_v38, 2  ;;  %v1697_v19 = vrot.slane %v5973_v5, 2  ;;  %4925 = vmatpush3.bf16.msra.mxu1 %v5305_v2  ;;  %v5322_v2 = vld [vmem:[%s6152_s29 + $0x50] sm:$0xff]  }
 0x4d0   :  { %v5994_v20 = vsel %vm301_vm4, %v1733_v13, %v1734_v8  ;;  %v5999_v21 = vsel %vm255_vm6, %v1693_v14, %v1694_v10  ;;  %v6002_v22 = vsel %vm174_vm5, %v1621_v9, %v1622_v16  ;;  %v1645_v23 = vrot.slane %v5971_v4, 7  ;;  %v5309_v13 = vld [vmem:[%s5911_s13 + $0xb8] sm:$0xff]  }
 0x4d1   :  { %1665 = vrot.lane.b32.xlu1 %v5973_v5, %s5438_s10  ;;  %1663 = vrot.lane.b32.xlu0 %v5969_v38, %s5438_s10  ;;  %v6012_v24 = vsel %vm301_vm4, %v1736_v17, %v1737_v12  ;;  %v6017_v25 = vsel %vm174_vm5, %v1624_v11, %v1625_v18  ;;  %v6022_v26 = vsel %vm255_vm6, %v1696_v7, %v1697_v19  ;;  %v1646_v27 = vrot.slane %v5975_v6, 7 }
 0x4d2   :  { %1655 = vst.msk [vmem:[#allocation2 + $0x8] sm:$0xfe] %vm213_vm7, %v1645_v23  ;;  %v1648_v28 = vrot.slane %v5969_v38, 7  ;;  %v1649_v29 = vrot.slane %v5973_v5, 7  ;;  %v1718_v30 = vrot.slane %v5975_v6, 3  ;;  %v1605_v32 = vrot.slane %v5971_v4, 5 }
 0x4d3   :  { %v1647_v39 = vsel %vm202_vm11, %v1645_v23, %v1646_v27  ;;  %v1678_v40 = vrot.slane %v5975_v6, 1  ;;  %v1608_v41 = vrot.slane %v5969_v38, 5  ;;  %v1721_v44 = vrot.slane %v5973_v5, 3 }
 0x4d4   :  { %1656 = vst.msk [vmem:[#allocation2 + $0x28] sm:$0xff] %vm167_vm10, %v1647_v39  ;;  %v1650_v45 = vsel %vm202_vm11, %v1648_v28, %v1649_v29  ;;  %v1717_v46 = vrot.slane %v5971_v4, 3  ;;  %v1677_v49 = vrot.slane %v5971_v4, 1  ;;  %v1606_v50 = vrot.slane %v5975_v6, 5 }
 0x4d5   :  { %1657 = vst.msk [vmem:[#allocation2 + $0x48] sm:$0xfe] %vm213_vm7, %v1648_v28  ;;  %1741 = vrot.lane.b32.xlu1 %v1734_v8, %s5438_s10  ;;  %1627 = vrot.lane.b32.xlu0 %v1621_v9, %s5438_s10  ;;  %v1720_v51 = vrot.slane %v5969_v38, 3  ;;  %v1609_v52 = vrot.slane %v5973_v5, 5  ;;  %v1680_v53 = vrot.slane %v5969_v38, 1  ;;  %v1681_v54 = vrot.slane %v5973_v5, 1 }
 0x4d6   :  { %1728 = vst.msk [vmem:[#allocation2 + $0x38] sm:$0x1f] %vm294_vm8, %v1718_v30  ;;  %1730 = vst.msk [vmem:[#allocation2 + $0x78] sm:$0x1f] %vm294_vm8, %v1721_v44  ;;  %v1679_v57 = vsel %vm236_vm15, %v1677_v49, %v1678_v40  ;;  %v2918_v36 = vpack.c.bf16 %v5975_v6, %v5971_v4  ;;  %v2919_v37 = vpack.c.bf16 %v5973_v5, %v5969_v38  ;;  %v5306_v8 = vld [vmem:[%s5911_s13 + $0x78] sm:$0xff]  }
 0x4d7   :  { %1615 = vst.msk [vmem:[#allocation2] sm:$0xf8] %vm6871_vm0, %v1605_v32  ;;  %vm6875_vm0 = vmmov %vm6872_vm1  ;;  %v1682_v63 = vsel %vm236_vm15, %v1680_v53, %v1681_v54  ;;  %v5307_v9 = vld [vmem:[%s5911_s13 + $0xf8] sm:$0xff]   ;;  %4898 = vmatprep.subr.bf16.mxu0 %v5306_v8  ;;  %v5323_v8 = vld [vmem:[%s6152_s29 + $0x10] sm:$0xff]  }
 0x4d8   :  { %1658 = vst.msk [vmem:[#allocation2 + $0x68] sm:$0xff] %vm167_vm10, %v1650_v45  ;;  %1687 = vst.msk [vmem:[#allocation2 + $0x10] sm:$0xff] %vm167_vm10, %v1679_v57  ;;  %4926 = vmatprep.subr.bf16.mxu1 %v5307_v9  ;;  %v5311_v57 = vld [vmem:[%s6152_s29 + $0x88] sm:$0xff]   ;;  %v5324_v9 = vld [vmem:[%s6152_s29 + $0x58] sm:$0xff]  }
 0x4d9   :  { %1731 = vst.msk [vmem:[#allocation2 + $0x38] sm:$0xf0] %vm6872_vm1, %v5437_v0  ;;  %vm6876_vm1 = vcmask 1044480   ;;  %1701 = vrot.lane.b32.xlu1 %v1694_v10, %s5438_s10  ;;  %1631 = vrot.lane.b32.xlu0 %v1624_v11, %s5438_s10  ;;  %v5308_v10 = vld [vmem:[%s5911_s13 + $0x38] sm:$0xff]   ;;  %s5455_s13 = smov 18  }
 0x4da   :  { %1688 = vst.msk [vmem:[#allocation2 + $0x30] sm:$0x7f] %vm248_vm3, %v1678_v40  ;;  %v1719_v55 = vsel %vm6876_vm1, %v1717_v46, %v1718_v30  ;;  %1690 = vst.msk [vmem:[#allocation2 + $0x70] sm:$0x7f] %vm248_vm3, %v1681_v54  ;;  %4899 = vmatpush3.bf16.msra.mxu0 %v5308_v10  ;;  %4927 = vmatpush3.bf16.msra.mxu1 %v5309_v13  ;;  %v5325_v10 = vld [vmem:[%s6152_s29 + $0x18] sm:$0xff]   ;;  %v5326_v13 = vld [vmem:[%s6152_s29 + $0x60] sm:$0xff]   ;;  %s6297_s16 = sld [smem:[%s6848_s0 + %s5455_s13]]  }
 0x4db   :  { %1617 = vst.msk [vmem:[#allocation2 + $0x40] sm:$0xf8] %vm6873_vm9, %v1608_v41  ;;  %vm6877_vm9 = vcmask 1042432   ;;  %5105 = vmatprep.subr.bf16.mxu1 %v5310_v35 }
 0x4dc   :  { %1691 = vst.msk [vmem:[#allocation2 + $0x30] sm:$0xc0] %vm6874_vm13, %v5437_v0  ;;  %v1607_v58 = vsel %vm6877_vm9, %v1605_v32, %v1606_v50  ;;  %vm6878_vm13 = vmmov %vm6876_vm1  ;;  %vm6880_vm1 = vcmask 1048070  }
 0x4dd   :  { %1732 = vst.msk [vmem:[#allocation2 + $0x78] sm:$0xf0] %vm6875_vm0, %v5437_v0  ;;  %v1722_v61 = vsel %vm6878_vm13, %v1720_v51, %v1721_v44  ;;  %vm6879_vm0 = vmmov %vm6877_vm9  ;;  %1745 = vrot.lane.b32.xlu1 %v1737_v12, %s5438_s10  ;;  %1739 = vrot.lane.b32.xlu0 %v5994_v20, %s5438_s10  ;;  %vm6881_vm9 = vcmask 1046016   ;;  %vm6882_vm13 = vcmask 523269  }
 0x4de   :  { %1727 = vst.msk [vmem:[#allocation2 + $0x18] sm:$0xff] %vm167_vm10, %v1719_v55  ;;  %1616 = vst.msk [vmem:[#allocation2 + $0x20] sm:$0xff] %vm167_vm10, %v1607_v58  ;;  %v1610_v62 = vsel %vm6879_vm0, %v1608_v41, %v1609_v52  ;;  %vm6883_vm0 = vcmask 517120   ;;  %v5312_v58 = vld [vmem:[%s6152_s29 + $0x90] sm:$0xff]  }
 0x4df   :  { %1729 = vst.msk [vmem:[#allocation2 + $0x58] sm:$0xff] %vm167_vm10, %v1722_v61  ;;  %1618 = vst.msk [vmem:[#allocation2 + $0x60] sm:$0xff] %vm167_vm10, %v1610_v62  ;;  %v5318_v61 = vld [vmem:[%s6152_s29 + $0x40] sm:$0xff]  }
 0x4e0   :  { %1689 = vst.msk [vmem:[#allocation2 + $0x50] sm:$0xff] %vm167_vm10, %v1682_v63  ;;  %v5319_v62 = vld [vmem:[%s6152_s29] sm:$0xff]   ;;  %v5320_v63 = vld [vmem:[%s6152_s29 + $0x48] sm:$0xff]   ;;  %4940 = vmatprep.subr.bf16.mxu0 %v5318_v61 }
 0x4e1   :  { %1692 = vst.msk [vmem:[#allocation2 + $0x70] sm:$0xc0] %vm6880_vm1, %v5437_v0  ;;  %1699 = vrot.lane.b32.xlu0 %v5999_v21, %s5438_s10  ;;  %1629 = vrot.lane.b32.xlu1 %v6002_v22, %s5438_s10  ;;  %vm6884_vm1 = vcmask 1040896  }
 0x4e5   :  { %1743 = vrot.lane.b32.xlu0 %v6012_v24, %s5438_s10  ;;  %1633 = vrot.lane.b32.xlu1 %v6017_v25, %s5438_s10 }
 0x4e9   :  { %1703 = vrot.lane.b32.xlu0 %v6022_v26, %s5438_s10  ;;  %1705 = vrot.lane.b32.xlu1 %v1697_v19, %s5438_s10 }
 0x53f   :  { %v1662_v11 = vpop.permute.xlu1 %1661  ;;  %v1660_v12 = vpop.permute.xlu0 %1659 }
 0x540   :  { %1672 = vst.msk [vmem:[#allocation2 + $0x28] sm:$0xff] %vm195_vm14, %v1662_v11  ;;  %1671 = vst.msk [vmem:[#allocation2 + $0x8] sm:$0xff] %vm195_vm14, %v1660_v12 }
 0x543   :  { %v1666_v14 = vpop.permute.xlu1 %1665  ;;  %v1664_v16 = vpop.permute.xlu0 %1663 }
 0x544   :  { %1674 = vst.msk [vmem:[#allocation2 + $0x68] sm:$0xff] %vm195_vm14, %v1666_v14  ;;  %1673 = vst.msk [vmem:[#allocation2 + $0x48] sm:$0xff] %vm195_vm14, %v1664_v16 }
 0x547   :  { %v1742_v17 = vpop.permute.xlu1 %1741  ;;  %v1628_v18 = vpop.permute.xlu0 %1627  ;;  %v1756_v7 = vld [vmem:[#allocation2 + $0x8] sm:$0xff] }
 0x548   :  { %v1760_v20 = vld [vmem:[#allocation2 + $0x28] sm:$0xff]  ;;  %1752 = vst.msk [vmem:[#allocation2 + $0x38] sm:$0xf] %vm321_vm12, %v1742_v17 }
 0x549   :  { %1639 = vst.msk [vmem:[#allocation2] sm:$0xfc] %vm6866_vm2, %v1628_v18  ;;  %v1772_v19 = vpack.c.bf16 %v1760_v20, %v1756_v7 }
 0x54b   :  { %2067 = vmatprep.mubr.bf16.mxu0 %v1772_v19  ;;  %v1702_v21 = vpop.permute.xlu1 %1701  ;;  %v1632_v22 = vpop.permute.xlu0 %1631  ;;  %v1764_v41 = vld [vmem:[#allocation2 + $0x48] sm:$0xff] }
 0x54c   :  { %1712 = vst.msk [vmem:[#allocation2 + $0x30] sm:$0x3f] %vm6881_vm9, %v1702_v21  ;;  %vm6885_vm9 = vcmask 523270   ;;  %v1768_v42 = vld [vmem:[#allocation2 + $0x68] sm:$0xff] }
 0x54d   :  { %1641 = vst.msk [vmem:[#allocation2 + $0x40] sm:$0xfc] %vm6866_vm2, %v1632_v22  ;;  %vm6886_vm2 = vmmov %vm6883_vm0  ;;  %v1776_v49 = vpack.c.bf16 %v1768_v42, %v1764_v41 }
 0x54f   :  { %v1746_v23 = vpop.permute.xlu1 %1745  ;;  %v1740_v24 = vpop.permute.xlu0 %1739  ;;  %v1762_v25 = vld [vmem:[#allocation2 + $0x38] sm:$0xff] }
 0x550   :  { %v1755_v26 = vld [vmem:[#allocation2] sm:$0xff]  ;;  %1754 = vst.msk [vmem:[#allocation2 + $0x78] sm:$0xf] %vm321_vm12, %v1746_v23 }
 0x551   :  { %1751 = vst.msk [vmem:[#allocation2 + $0x18] sm:$0xff] %vm195_vm14, %v1740_v24 }
 0x552   :  { %3138 = vst.msk [vmem:[#allocation2 + $0x38] sm:$0xe0] %vm6882_vm13, %v5437_v0  ;;  %vm6887_vm13 = vmmov %vm6884_vm1 }
 0x553   :  { %2201 = vst.msk [vmem:[#allocation2] sm:$0x3] %vm6883_vm0, %v5437_v0  ;;  %v1761_v27 = vld [vmem:[#allocation2 + $0x30] sm:$0xff]  ;;  %v1700_v28 = vpop.permute.xlu0 %1699  ;;  %v1630_v29 = vpop.permute.xlu1 %1629  ;;  %vm6888_vm0 = vcmask 523269  }
 0x554   :  { %2221 = vst.msk [vmem:[#allocation2] sm:$0x1] %vm6884_vm1, %v5437_v0  ;;  %v1763_v30 = vld [vmem:[#allocation2 + $0x40] sm:$0xff]  ;;  %vm6890_vm1 = vmmov %vm6885_vm9 }
 0x555   :  { %2273 = vst.msk [vmem:[#allocation2 + $0x30] sm:$0xc0] %vm6885_vm9, %v5437_v0  ;;  %vm6891_vm9 = vmmov %vm6887_vm13 }
 0x556   :  { %1711 = vst.msk [vmem:[#allocation2 + $0x10] sm:$0xff] %vm195_vm14, %v1700_v28  ;;  %1640 = vst.msk [vmem:[#allocation2 + $0x20] sm:$0xff] %vm195_vm14, %v1630_v29 }
 0x557   :  { %2202 = vst.msk [vmem:[#allocation2 + $0x40] sm:$0x3] %vm6886_vm2, %v5437_v0  ;;  %v1744_v32 = vpop.permute.xlu0 %1743  ;;  %v1634_v33 = vpop.permute.xlu1 %1633  ;;  %v1770_v39 = vld [vmem:[#allocation2 + $0x78] sm:$0xff]  ;;  %vm6889_vm2 = vcmask 1046016  }
 0x558   :  { %2222 = vst.msk [vmem:[#allocation2 + $0x40] sm:$0x1] %vm6887_vm13, %v5437_v0  ;;  %v1758_v34 = vld [vmem:[#allocation2 + $0x18] sm:$0xff]  ;;  %vm6892_vm13 = vmmov %vm6891_vm9 }
 0x559   :  { %1753 = vst.msk [vmem:[#allocation2 + $0x58] sm:$0xff] %vm195_vm14, %v1744_v32  ;;  %1642 = vst.msk [vmem:[#allocation2 + $0x60] sm:$0xff] %vm195_vm14, %v1634_v33  ;;  %v1774_v40 = vpack.c.bf16 %v1762_v25, %v1758_v34 }
 0x55a   :  { %3139 = vst.msk [vmem:[#allocation2 + $0x78] sm:$0xe0] %vm6888_vm0, %v5437_v0  ;;  %vm6893_vm0 = vcmask 521216  }
 0x55b   :  { %2116 = vmatprep.mubr.bf16.mxu1 %v1774_v40  ;;  %v1704_v43 = vpop.permute.xlu0 %1703  ;;  %v1706_v44 = vpop.permute.xlu1 %1705 }
 0x55c   :  { %1713 = vst.msk [vmem:[#allocation2 + $0x50] sm:$0xff] %vm195_vm14, %v1704_v43 }
 0x55d   :  { %v1759_v45 = vld [vmem:[#allocation2 + $0x20] sm:$0xff]  ;;  %v1757_v46 = vld [vmem:[#allocation2 + $0x10] sm:$0xff]  ;;  %1714 = vst.msk [vmem:[#allocation2 + $0x70] sm:$0x3f] %vm6889_vm2, %v1706_v44  ;;  %vm6894_vm2 = vmmov %vm6893_vm0 }
 0x55e   :  { %v1771_v47 = vpack.c.bf16 %v1759_v45, %v1755_v26  ;;  %v1773_v48 = vpack.c.bf16 %v1761_v27, %v1757_v46 }
 0x560   :  { %2068 = vmatmul.mubr.bf16.vlgmr.msra.gmra.mrb[20].mxu0 %v1771_v47  ;;  %2117 = vmatmul.mubr.bf16.vlgmr.msra.gmra.mrb[20].mxu1 %v1773_v48  ;;  %v1766_v50 = vld [vmem:[#allocation2 + $0x58] sm:$0xff]  ;;  %v1767_v52 = vld [vmem:[#allocation2 + $0x60] sm:$0xff] }
 0x561   :  { %2075 = vmatprep.mubr.bf16.mxu0 %v1776_v49  ;;  %v1778_v51 = vpack.c.bf16 %v1770_v39, %v1766_v50  ;;  %v1775_v55 = vpack.c.bf16 %v1767_v52, %v1763_v30  ;;  %5106 = vmatpush3.bf16.msra.mxu1 %v5310_v35 }
 0x562   :  { %5107 = vmatprep.subr.bf16.mxu1 %v5311_v57  ;;  %4941 = vmatpush3.bf16.msra.mxu0 %v5319_v62 }
 0x563   :  { %2124 = vmatprep.mubr.bf16.mxu1 %v1778_v51  ;;  %v1765_v53 = vld [vmem:[#allocation2 + $0x50] sm:$0xff]  ;;  %4942 = vmatprep.subr.bf16.mxu0 %v5320_v63 }
 0x564   :  { %v1769_v54 = vld [vmem:[#allocation2 + $0x70] sm:$0xff] }
 0x565   :  { %v1777_v56 = vpack.c.bf16 %v1769_v54, %v1765_v53  ;;  %2274 = vst.msk [vmem:[#allocation2 + $0x70] sm:$0xc0] %vm6890_vm1, %v5437_v0  ;;  %5108 = vmatpush3.bf16.msra.mxu1 %v5311_v57  ;;  %vm6895_vm1 = vcmask 523266  }
 0x566   :  { %5109 = vmatprep.subr.bf16.mxu1 %v5312_v58  ;;  %4943 = vmatpush3.bf16.msra.mxu0 %v5321_v1 }
 0x567   :  { %4944 = vmatprep.subr.bf16.mxu0 %v5322_v2 }
 0x568   :  { %2076 = vmatmul.mubr.bf16.gmra.mrb[24].mxu0 %v1775_v55  ;;  %2125 = vmatmul.mubr.bf16.gmra.mrb[24].mxu1 %v1777_v56 }
 0x569   :  { %5110 = vmatpush3.bf16.msra.mxu1 %v5312_v58 }
 0x56a   :  { %5111 = vmatprep.subr.bf16.mxu1 %v5313_v59  ;;  %4945 = vmatpush3.bf16.msra.mxu0 %v5323_v8 }
 0x56b   :  { %4946 = vmatprep.subr.bf16.mxu0 %v5324_v9 }
 0x56d   :  { %5112 = vmatpush3.bf16.msra.mxu1 %v5313_v59 }
 0x56e   :  { %5117 = vmatprep.subr.bf16.mxu1 %v6164_v60  ;;  %4947 = vmatpush3.bf16.msra.mxu0 %v5325_v10 }
 0x56f   :  { %4948 = vmatprep.subr.bf16.mxu0 %v5326_v13 }
 0x633   :  { %v4900_v11 = vpop.f32.mrb[20].mxu0  ;;  %v4928_v12 = vpop.f32.mrb[20].mxu1 }
 0x634   :  { %v4901_v14 = vpop.f32.mrb[21].mxu0  ;;  %v4929_v16 = vpop.f32.mrb[21].mxu1 }
 0x635   :  { %v4902_v17 = vadd.f32 %v4901_v14, %v4900_v11  ;;  %v4930_v18 = vadd.f32 %v4929_v16, %v4928_v12  ;;  %v4903_v7 = vpop.f32.mrb[22].mxu0  ;;  %v4931_v20 = vpop.f32.mrb[22].mxu1 }
 0x636   :  { %v4904_v19 = vpop.f32.mrb[23].mxu0  ;;  %v4932_v21 = vpop.f32.mrb[23].mxu1 }
 0x637   :  { %v6176_v22 = vadd.f32 %v4930_v18, %v4902_v17  ;;  %v4905_v23 = vadd.f32 %v4904_v19, %v4903_v7  ;;  %v4933_v24 = vadd.f32 %v4932_v21, %v4931_v20 }
 0x639   :  { %v2147_v25 = vmul.f32 %v6176_v22, %v6176_v22  ;;  %v6180_v26 = vadd.f32 %v4933_v24, %v4905_v23  ;;  %v2133_v27 = vsel %vm167_vm10, %v6176_v22, 0.0 }
 0x63b   :  { %v2134_v28 = vsel %vm167_vm10, %v6180_v26, 0.0  ;;  %v2148_v29 = vmul.f32 %v6180_v26, %v6180_v26  ;;  %v4906_v30 = vpop.f32.mrb[24].mxu0  ;;  %v4934_v32 = vpop.f32.mrb[24].mxu1  ;;  %v2151_v40 = vsel %vm167_vm10, %v2147_v25, 0.0 }
 0x63c   :  { %v2135_v33 = vadd.f32 %v2134_v28, %v2133_v27  ;;  %v4907_v34 = vpop.f32.mrb[25].mxu0  ;;  %v4935_v39 = vpop.f32.mrb[25].mxu1 }
 0x63d   :  { %v2152_v41 = vsel %vm167_vm10, %v2148_v29, 0.0  ;;  %v4908_v42 = vadd.f32 %v4907_v34, %v4906_v30  ;;  %v4936_v43 = vadd.f32 %v4935_v39, %v4934_v32  ;;  %v4909_v44 = vpop.f32.mrb[26].mxu0  ;;  %v4937_v45 = vpop.f32.mrb[26].mxu1  ;;  %v5327_v30 = vld [vmem:[%s6152_s29 + $0x20] sm:$0xff]   ;;  %v5328_v32 = vld [vmem:[%s6152_s29 + $0x68] sm:$0xff]  }
 0x63e   :  { %v2153_v46 = vadd.f32 %v2152_v41, %v2151_v40  ;;  %v4910_v47 = vpop.f32.mrb[27].mxu0  ;;  %v4938_v48 = vpop.f32.mrb[27].mxu1  ;;  %4949 = vmatpush3.bf16.msra.mxu0 %v5327_v30  ;;  %v4662_v34 = vld [vmem:[%s4531_s12] ss:$0 sm:$0xff]  ;;  %v5329_v39 = vld [vmem:[%s6152_s29 + $0x28] sm:$0xff]   ;;  %v5316_v30 = vld [vmem:[%s6161_s3 + $0x10] sm:$0xff]  }
 0x63f   :  { %v2127_v49 = vadd.f32 %v4936_v43, %v4908_v42  ;;  %v4911_v50 = vadd.f32 %v4910_v47, %v4909_v44  ;;  %v4939_v51 = vadd.f32 %v4938_v48, %v4937_v45  ;;  %4950 = vmatprep.subr.bf16.mxu0 %v5328_v32  ;;  %v5330_v44 = vld [vmem:[%s6152_s29 + $0x70] sm:$0xff]   ;;  %s5462_s12 = smov 26  }
 0x640   :  { %s6618_s15 = sld [smem:[%s6848_s0 + %s5462_s12]]  }
 0x641   :  { %v2136_v52 = vsel %vm167_vm10, %v2127_v49, 0.0  ;;  %v2149_v53 = vmul.f32 %v2127_v49, %v2127_v49  ;;  %v2130_v54 = vadd.f32 %v4939_v51, %v4911_v50 }
 0x642   :  { %v2137_v55 = vadd.f32 %v2136_v52, %v2135_v33  ;;  %4951 = vmatpush3.bf16.msra.mxu0 %v5329_v39 }
 0x643   :  { %v2154_v56 = vsel %vm167_vm10, %v2149_v53, 0.0  ;;  %v2138_v35 = vsel %vm167_vm10, %v2130_v54, 0.0  ;;  %v2150_v57 = vmul.f32 %v2130_v54, %v2130_v54  ;;  %4952 = vmatprep.subr.bf16.mxu0 %v5330_v44 }
 0x644   :  { %v2155_v58 = vadd.f32 %v2154_v56, %v2153_v46  ;;  %v2139_v59 = vadd.f32 %v2138_v35, %v2137_v55 }
 0x645   :  { %v2156_v61 = vsel %vm167_vm10, %v2150_v57, 0.0 }
 0x646   :  { %v2140_v62 = vrot.slane %v2139_v59, 4  ;;  %v2157_v63 = vadd.f32 %v2156_v61, %v2155_v58 }
 0x648   :  { %v2141_v1 = vadd.f32 %v2140_v62, %v2139_v59  ;;  %v2158_v2 = vrot.slane %v2157_v63, 4 }
 0x64a   :  { %v2142_v8 = vrot.slane %v2141_v1, 2  ;;  %v2159_v9 = vadd.f32 %v2158_v2, %v2157_v63  ;;  %v5333_v63 = vld [vmem:[%s6152_s29 + $0x38] sm:$0xff]  }
 0x64c   :  { %v2143_v10 = vadd.f32 %v2142_v8, %v2141_v1  ;;  %v2160_v13 = vrot.slane %v2159_v9, 2 }
 0x64e   :  { %v2144_v11 = vrot.slane %v2143_v10, 1  ;;  %v2161_v12 = vadd.f32 %v2160_v13, %v2159_v9 }
 0x650   :  { %v2145_v14 = vadd.f32 %v2144_v11, %v2143_v10  ;;  %v2162_v16 = vrot.slane %v2161_v12, 1 }
 0x652   :  { %v2146_v17 = vmul.f32 0.03125, %v2145_v14  ;;  %v2163_v18 = vadd.f32 %v2162_v16, %v2161_v12 }
 0x654   :  { %v2164_v7 = vmul.f32 0.03125, %v2163_v18  ;;  %v2165_v20 = vmul.f32 %v2146_v17, %v2146_v17  ;;  %v2172_v19 = vsub.f32 %v6176_v22, %v2146_v17  ;;  %v2174_v21 = vsub.f32 %v2127_v49, %v2146_v17  ;;  %v2168_v22 = vld [vmem:[%s4530_s8] sm:$0x1]  ;;  %v5331_v49 = vld [vmem:[%s6152_s29 + $0x30] sm:$0xff]   ;;  %s5461_s8 = smov 20  }
 0x655   :  { %v2175_v23 = vsub.f32 %v2130_v54, %v2146_v17  ;;  %v2173_v24 = vsub.f32 %v6180_v26, %v2146_v17  ;;  %v5332_v54 = vld [vmem:[%s6152_s29 + $0x78] sm:$0xff]   ;;  %4953 = vmatpush3.bf16.msra.mxu0 %v5331_v49  ;;  %s5459_s29 = smov 19   ;;  %s4537_s11 = sld [smem:[%s6848_s0 + %s5461_s8]]  }
 0x656   :  { %v2166_v25 = vsub.f32 %v2164_v7, %v2165_v20  ;;  %4954 = vmatprep.subr.bf16.mxu0 %v5332_v54  ;;  %s4536_s2 = sld [smem:[%s6848_s0 + %s5459_s29]]  }
 0x658   :  { %v2167_v27 = vmax.f32 %v2166_v25, 0.0 }
 0x659   :  { %4955 = vmatpush3.bf16.msra.mxu0 %v5333_v63  ;;  %v5340_v63 = vld [vmem:[%s6297_s16 + $0x30] sm:$0xff]  }
 0x65a   :  { %v2169_v28 = vadd.f32 1e-05, %v2167_v27  ;;  %2805 = vmatprep.subr.bf16.mxu0 %v5442_v31 }
 0x65c   :  { %5420 = vrsqrt.f32 %v2169_v28 }
 0x666   :  { %v5421_v29 = vpop.eup %5420 }
 0x667   :  { %v2171_v26 = vmul.f32 %v5421_v29, %v2168_v22  ;;  %v5315_v29 = vld [vmem:[%s6161_s3 + $0x8] sm:$0xff]  }
 0x669   :  { %v2180_v33 = vrot.slane %v2171_v26, %v5728_v15  ;;  %v5317_v26 = vld [vmem:[%s6161_s3 + $0x18] sm:$0xff]   ;;  %s5460_s3 = smov 22  }
 0x66a   :  { %s4539_s7 = sld [smem:[%s6848_s0 + %s5460_s3]]  }
 0x66b   :  { %v2182_v40 = vmul.f32 %v2180_v33, %v2172_v19  ;;  %v2184_v41 = vmul.f32 %v2180_v33, %v2174_v21  ;;  %v2185_v42 = vmul.f32 %v2180_v33, %v2175_v23  ;;  %v2183_v43 = vmul.f32 %v2180_v33, %v2173_v24 }
 0x66d   :  { %v2193_v45 = vadd.f32 %v4662_v34, %v2182_v40  ;;  %v2195_v46 = vadd.f32 %v4662_v34, %v2184_v41  ;;  %v2196_v47 = vadd.f32 %v4662_v34, %v2185_v42  ;;  %v2194_v48 = vadd.f32 %v4662_v34, %v2183_v43 }
 0x66f   :  { %v2200_v50 = vmax.f32 %v2196_v47, 0.0  ;;  %v2198_v51 = vmax.f32 %v2194_v48, 0.0  ;;  %v2197_v52 = vmax.f32 %v2193_v45, 0.0  ;;  %v6208_v53 = vmax.f32 %v2195_v46, 0.0 }
 0x671   :  { %v2279_v55 = vrot.slane %v2200_v50, 2  ;;  %2248 = vst.msk [vmem:[#allocation2 + $0x68] sm:$0xff] %vm167_vm10, %v2200_v50  ;;  %v2252_v56 = vrot.slane %v2198_v51, 1  ;;  %v2276_v35 = vrot.slane %v2198_v51, 2  ;;  %2246 = vst.msk [vmem:[#allocation2 + $0x28] sm:$0xff] %vm167_vm10, %v2198_v51  ;;  %v2251_v57 = vrot.slane %v2197_v52, 1 }
 0x672   :  { %2245 = vst.msk [vmem:[#allocation2 + $0x8] sm:$0xff] %vm167_vm10, %v2197_v52  ;;  %2247 = vst.msk [vmem:[#allocation2 + $0x48] sm:$0xff] %vm167_vm10, %v6208_v53  ;;  %v2275_v58 = vrot.slane %v2197_v52, 2  ;;  %v2223_v59 = vrot.slane %v2197_v52, 7  ;;  %v2224_v61 = vrot.slane %v2198_v51, 7  ;;  %v2255_v62 = vrot.slane %v2200_v50, 1 }
 0x673   :  { %2250 = vst.msk [vmem:[#allocation2 + $0x6f] sm:$0x1] %vm6891_vm9, %v5437_v0  ;;  %2259 = vrot.lane.b32.xlu1 %v2252_v56, %s5438_s10  ;;  %v2253_v1 = vsel %vm236_vm15, %v2251_v57, %v2252_v56  ;;  %v2254_v2 = vrot.slane %v6208_v53, 1  ;;  %v2278_v8 = vrot.slane %v6208_v53, 2  ;;  %v2226_v9 = vrot.slane %v6208_v53, 7  ;;  %vm6896_vm9 = vmmov %vm6895_vm1  ;;  %v5335_v57 = vld [vmem:[%s6297_s16 + $0x8] sm:$0xff]  }
 0x674   :  { %2249 = vst.msk [vmem:[#allocation2 + $0x2f] sm:$0x1] %vm6892_vm13, %v5437_v0  ;;  %v2277_v10 = vsel %vm255_vm6, %v2275_v58, %v2276_v35  ;;  %2257 = vrot.lane.b32.xlu0 %v2253_v1, %s5438_s10  ;;  %v2225_v13 = vsel %vm202_vm11, %v2223_v59, %v2224_v61  ;;  %v2227_v11 = vrot.slane %v2200_v50, 7  ;;  %v2208_v12 = vrot.slane %v2198_v51, 6  ;;  %v5336_v58 = vld [vmem:[%s6297_s16 + $0x10] sm:$0xff]   ;;  %v5338_v61 = vld [vmem:[%s6297_s16 + $0x20] sm:$0xff]  }
 0x675   :  { %2288 = vst.msk [vmem:[#allocation2 + $0x70] sm:$0x3f] %vm6893_vm0, %v2279_v55  ;;  %v2256_v14 = vsel %vm236_vm15, %v2254_v2, %v2255_v62  ;;  %v2280_v16 = vsel %vm255_vm6, %v2278_v8, %v2279_v55  ;;  %v2207_v17 = vrot.slane %v2197_v52, 6  ;;  %v2210_v18 = vrot.slane %v6208_v53, 6  ;;  %v5341_v1 = vld [vmem:[%s6297_s16 + $0x38] sm:$0xff]   ;;  %v5342_v2 = vld [vmem:[%s6297_s16 + $0x40] sm:$0xff]  }
 0x676   :  { %2286 = vst.msk [vmem:[#allocation2 + $0x30] sm:$0x3f] %vm6894_vm2, %v2276_v35  ;;  %v2228_v7 = vsel %vm202_vm11, %v2226_v9, %v2227_v11  ;;  %v2211_v20 = vrot.slane %v2200_v50, 6  ;;  %vm6897_vm13 = vcmask 516096   ;;  %vm6899_vm2 = vcmask 1047040   ;;  %v5334_v35 = vld [vmem:[%s6297_s16] sm:$0xff]  }
 0x677   :  { %2285 = vst.msk [vmem:[#allocation2 + $0x10] sm:$0xff] %vm167_vm10, %v2277_v10  ;;  %2287 = vst.msk [vmem:[#allocation2 + $0x50] sm:$0xff] %vm167_vm10, %v2280_v16  ;;  %2231 = vrot.lane.b32.xlu1 %v2225_v13, %s5438_s10  ;;  %v2209_v19 = vsel %vm174_vm5, %v2207_v17, %v2208_v12  ;;  %v5343_v8 = vld [vmem:[%s6297_s16 + $0x48] sm:$0xff]  }
 0x678   :  { %2217 = vst.msk [vmem:[#allocation2] sm:$0xfc] %vm6895_vm1, %v2207_v17  ;;  %2229 = vrot.lane.b32.xlu0 %v2223_v59, %s5438_s10  ;;  %v2212_v21 = vsel %vm174_vm5, %v2210_v18, %v2211_v20  ;;  %vm6898_vm0 = vmmov %vm6897_vm13  ;;  %vm6900_vm1 = vcmask 1048065   ;;  %v5337_v59 = vld [vmem:[%s6297_s16 + $0x18] sm:$0xff]  }
 0x679   :  { %2219 = vst.msk [vmem:[#allocation2 + $0x40] sm:$0xfc] %vm6896_vm9, %v2210_v18  ;;  %vm6901_vm9 = vmmov %vm6899_vm2 }
 0x67a   :  { %2218 = vst.msk [vmem:[#allocation2 + $0x20] sm:$0xff] %vm167_vm10, %v2209_v19  ;;  %2220 = vst.msk [vmem:[#allocation2 + $0x60] sm:$0xff] %vm167_vm10, %v2212_v21 }
 0x67b   :  { %2263 = vrot.lane.b32.xlu1 %v2255_v62, %s5438_s10  ;;  %v5339_v62 = vld [vmem:[%s6297_s16 + $0x28] sm:$0xff]  }
 0x67c   :  { %v2300_v24 = vld [vmem:[#allocation2 + $0x70] sm:$0xff]  ;;  %2261 = vrot.lane.b32.xlu0 %v2256_v14, %s5438_s10 }
 0x67d   :  { %v2294_v23 = vld [vmem:[#allocation2 + $0x30] sm:$0xff]  ;;  %3099 = vst.msk [vmem:[#allocation2 + $0x77] sm:$0x1] %vm6898_vm0, %v5437_v0 }
 0x67e   :  { %3098 = vst.msk [vmem:[#allocation2 + $0x37] sm:$0x1] %vm6897_vm13, %v5437_v0  ;;  %v2291_v25 = vld [vmem:[#allocation2 + $0x10] sm:$0xff]  ;;  %vm6902_vm13 = vmmov %vm6898_vm0 }
 0x67f   :  { %v2303_v27 = vpack.c.bf16 %v2294_v23, %v2291_v25  ;;  %v2297_v28 = vld [vmem:[#allocation2 + $0x50] sm:$0xff]  ;;  %2235 = vrot.lane.b32.xlu1 %v2228_v7, %s5438_s10  ;;  %vm6903_vm0 = vmmov %vm6900_vm1 }
 0x680   :  { %v2306_v22 = vpack.c.bf16 %v2300_v24, %v2297_v28  ;;  %2233 = vrot.lane.b32.xlu0 %v2226_v9, %s5438_s10 }
 0x681   :  { %5113 = vmatprep.mubr.msk.bf16.mxu1 %vm167_vm10, %v2303_v27 }
 0x682   :  { %5114 = vmatmul.mubr.msk.bf16.vlgmr.msra.gmra.mrb[28].mxu1 %vm167_vm10, %v2306_v22 }
 0x683   :  { %5118 = vmatpush3.bf16.msra.mxu1 %v6164_v60  ;;  %5125 = vmatprep.mubr.msk.bf16.mxu1 %vm167_vm10, %v2918_v36 }
 0x684   :  { %5119 = vmatprep.subr.bf16.mxu1 %v5315_v29 }
 0x687   :  { %5120 = vmatpush3.bf16.msra.mxu1 %v5315_v29 }
 0x688   :  { %5121 = vmatprep.subr.bf16.mxu1 %v5316_v30 }
 0x68b   :  { %5122 = vmatpush3.bf16.msra.mxu1 %v5316_v30 }
 0x68c   :  { %5123 = vmatprep.subr.bf16.mxu1 %v5317_v26 }
 0x68f   :  { %5124 = vmatpush3.bf16.msra.mxu1 %v5317_v26 }
 0x692   :  { %5126 = vmatmul.mubr.msk.bf16.vlgmr.msra.gmra.mrb[32].mxu1 %vm167_vm10, %v2919_v37 }
 0x6e5   :  { %v2260_v32 = vpop.permute.xlu1 %2259 }
 0x6e6   :  { %2270 = vst.msk [vmem:[#allocation2 + $0x28] sm:$0x7f] %vm6899_vm2, %v2260_v32  ;;  %v2258_v60 = vpop.permute.xlu0 %2257  ;;  %vm6904_vm2 = vmmov %vm6902_vm13 }
 0x6e7   :  { %2269 = vst.msk [vmem:[#allocation2 + $0x8] sm:$0xff] %vm195_vm14, %v2258_v60 }
 0x6e9   :  { %v2232_v4 = vpop.permute.xlu1 %2231 }
 0x6ea   :  { %2242 = vst.msk [vmem:[#allocation2 + $0x20] sm:$0xff] %vm195_vm14, %v2232_v4  ;;  %v2230_v6 = vpop.permute.xlu0 %2229 }
 0x6eb   :  { %2241 = vst.msk [vmem:[#allocation2] sm:$0xfe] %vm6900_vm1, %v2230_v6  ;;  %vm6905_vm1 = vmmov %vm6904_vm2 }
 0x6ed   :  { %v2264_v36 = vpop.permute.xlu1 %2263  ;;  %v2293_v33 = vld [vmem:[#allocation2 + $0x28] sm:$0xff] }
 0x6ee   :  { %2272 = vst.msk [vmem:[#allocation2 + $0x68] sm:$0x7f] %vm6901_vm9, %v2264_v36  ;;  %v2262_v34 = vpop.permute.xlu0 %2261  ;;  %v2290_v38 = vld [vmem:[#allocation2 + $0x8] sm:$0xff]  ;;  %vm6906_vm9 = vmmov %vm6905_vm1 }
 0x6ef   :  { %2675 = vst.msk [vmem:[#allocation2 + $0x2f] sm:$0x1] %vm6902_vm13, %v5437_v0  ;;  %v2302_v5 = vpack.c.bf16 %v2293_v33, %v2290_v38  ;;  %vm6907_vm13 = vmmov %vm6905_vm1 }
 0x6f0   :  { %2271 = vst.msk [vmem:[#allocation2 + $0x48] sm:$0xff] %vm195_vm14, %v2262_v34 }
 0x6f1   :  { %2505 = vmatprep.mubr.bf16.mxu0 %v2302_v5  ;;  %v2236_v37 = vpop.permute.xlu1 %2235  ;;  %v2292_v39 = vld [vmem:[#allocation2 + $0x20] sm:$0xff] }
 0x6f2   :  { %2244 = vst.msk [vmem:[#allocation2 + $0x60] sm:$0xff] %vm195_vm14, %v2236_v37  ;;  %v2234_v40 = vpop.permute.xlu0 %2233  ;;  %v2289_v41 = vld [vmem:[#allocation2] sm:$0xff] }
 0x6f3   :  { %2243 = vst.msk [vmem:[#allocation2 + $0x40] sm:$0xfe] %vm6903_vm0, %v2234_v40  ;;  %v2301_v42 = vpack.c.bf16 %v2292_v39, %v2289_v41  ;;  %vm6908_vm0 = vmmov %vm6905_vm1 }
 0x6f4   :  { %2639 = vst.msk [vmem:[#allocation2] sm:$0x1] %vm6904_vm2, %v5437_v0  ;;  %vm6909_vm2 = vcmask 518144  }
 0x6f5   :  { %2506 = vmatmul.mubr.bf16.vlgmr.msra.gmra.mrb[28].mxu0 %v2301_v42  ;;  %v2299_v43 = vld [vmem:[#allocation2 + $0x68] sm:$0xff] }
 0x6f6   :  { %2676 = vst.msk [vmem:[#allocation2 + $0x6f] sm:$0x1] %vm6905_vm1, %v5437_v0  ;;  %2806 = vmatpush1.bf16.msra.mxu0 %v5334_v35  ;;  %vm6910_vm1 = vcmask 1041920  }
 0x6f7   :  { %v2296_v44 = vld [vmem:[#allocation2 + $0x48] sm:$0xff]  ;;  %2807 = vmatprep.subr.bf16.mxu0 %v5442_v31 }
 0x6f8   :  { %v2305_v45 = vpack.c.bf16 %v2299_v43, %v2296_v44 }
 0x6f9   :  { %v2298_v46 = vld [vmem:[#allocation2 + $0x60] sm:$0xff] }
 0x6fa   :  { %2513 = vmatprep.mubr.bf16.mxu0 %v2305_v45  ;;  %v2295_v47 = vld [vmem:[#allocation2 + $0x40] sm:$0xff]  ;;  %2808 = vmatpush1.bf16.msra.mxu0 %v5335_v57 }
 0x6fb   :  { %v2304_v48 = vpack.c.bf16 %v2298_v46, %v2295_v47  ;;  %2640 = vst.msk [vmem:[#allocation2 + $0x40] sm:$0x1] %vm6906_vm9, %v5437_v0  ;;  %2809 = vmatprep.subr.bf16.mxu0 %v5442_v31  ;;  %vm6911_vm9 = vmmov %vm6909_vm2 }
 0x6fd   :  { %2514 = vmatmul.mubr.bf16.gmra.mrb[32].mxu0 %v2304_v48 }
 0x6fe   :  { %2810 = vmatpush1.bf16.msra.mxu0 %v5336_v58 }
 0x6ff   :  { %2811 = vmatprep.subr.bf16.mxu0 %v5442_v31 }
 0x702   :  { %2812 = vmatpush1.bf16.msra.mxu0 %v5337_v59 }
 0x703   :  { %2813 = vmatprep.subr.bf16.mxu0 %v5442_v31 }
 0x706   :  { %2814 = vmatpush1.bf16.msra.mxu0 %v5338_v61 }
 0x707   :  { %2815 = vmatprep.subr.bf16.mxu0 %v5442_v31 }
 0x70a   :  { %2816 = vmatpush1.bf16.msra.mxu0 %v5339_v62 }
 0x70b   :  { %2817 = vmatprep.subr.bf16.mxu0 %v5442_v31 }
 0x70e   :  { %2818 = vmatpush1.bf16.msra.mxu0 %v5340_v63 }
 0x70f   :  { %2819 = vmatprep.subr.bf16.mxu0 %v5442_v31 }
 0x712   :  { %2820 = vmatpush1.bf16.msra.mxu0 %v5341_v1 }
 0x713   :  { %2821 = vmatprep.subr.bf16.mxu0 %v5442_v31 }
 0x716   :  { %2822 = vmatpush1.bf16.msra.mxu0 %v5342_v2 }
 0x717   :  { %2823 = vmatprep.subr.bf16.mxu0 %v5442_v31 }
 0x71a   :  { %2824 = vmatpush1.bf16.msra.mxu0 %v5343_v8 }
 0x71b   :  { %2825 = vmatprep.subr.bf16.mxu0 %v5442_v31 }
 0x755   :  { %v5115_v49 = vpop.f32.mrb[28].mxu1 }
 0x756   :  { %v2556_v50 = vpop.f32.mrb[29].mxu1 }
 0x757   :  { %v6284_v51 = vpop.f32.mrb[30].mxu1 }
 0x758   :  { %v2559_v52 = vpop.f32.mrb[31].mxu1 }
 0x765   :  { %v6286_v53 = vpop.f32.mrb[32].mxu1 }
 0x766   :  { %v6288_v54 = vpop.f32.mrb[33].mxu1 }
 0x767   :  { %v6290_v55 = vpop.f32.mrb[34].mxu1 }
 0x768   :  { %v6292_v56 = vpop.f32.mrb[35].mxu1 }
 0x7c8   :  { %v4956_v9 = vpop.f32.mrb[28].mxu0 }
 0x7c9   :  { %v4957_v10 = vpop.f32.mrb[29].mxu0 }
 0x7ca   :  { %v4958_v13 = vadd.f32 %v4957_v10, %v4956_v9  ;;  %v4959_v11 = vpop.f32.mrb[30].mxu0  ;;  %v2606_v9 = vld [vmem:[%s4533_s20] sm:$0x1]  ;;  %s5464_s20 = smov 24  }
 0x7cb   :  { %v4960_v12 = vpop.f32.mrb[31].mxu0  ;;  %s4541_s23 = sld [smem:[%s6848_s0 + %s5464_s20]]  }
 0x7cc   :  { %v6319_v14 = vadd.f32 %v4958_v13, %v2556_v50  ;;  %v4961_v16 = vadd.f32 %v4960_v12, %v4959_v11  ;;  %v4685_v12 = vld [vmem:[%s4534_s24] ss:$0 sm:$0xff]  ;;  %s5465_s24 = smov 25  }
 0x7cd   :  { %s4542_s27 = sld [smem:[%s6848_s0 + %s5465_s24]]  }
 0x7ce   :  { %v2585_v17 = vmul.f32 %v6319_v14, %v6319_v14  ;;  %v2560_v18 = vadd.f32 %v4961_v16, %v2559_v52  ;;  %v2571_v7 = vsel %vm167_vm10, %v6319_v14, 0.0 }
 0x7d0   :  { %v2572_v20 = vsel %vm167_vm10, %v2560_v18, 0.0  ;;  %v2586_v19 = vmul.f32 %v2560_v18, %v2560_v18  ;;  %v4962_v21 = vpop.f32.mrb[32].mxu0  ;;  %v2589_v25 = vsel %vm167_vm10, %v2585_v17, 0.0 }
 0x7d1   :  { %v2573_v23 = vadd.f32 %v2572_v20, %v2571_v7  ;;  %v4963_v24 = vpop.f32.mrb[33].mxu0 }
 0x7d2   :  { %v2590_v27 = vsel %vm167_vm10, %v2586_v19, 0.0  ;;  %v4964_v28 = vadd.f32 %v4963_v24, %v4962_v21  ;;  %v4965_v22 = vpop.f32.mrb[34].mxu0 }
 0x7d3   :  { %v2591_v29 = vadd.f32 %v2590_v27, %v2589_v25  ;;  %v4966_v30 = vpop.f32.mrb[35].mxu0 }
 0x7d4   :  { %v2565_v26 = vadd.f32 %v5115_v49, %v4964_v28  ;;  %v4967_v32 = vadd.f32 %v4966_v30, %v4965_v22  ;;  %v5345_v22 = vld [vmem:[%s6297_s16 + $0x58] sm:$0xff]  }
 0x7d6   :  { %v2574_v60 = vsel %vm167_vm10, %v2565_v26, 0.0  ;;  %v2587_v4 = vmul.f32 %v2565_v26, %v2565_v26  ;;  %v2568_v6 = vadd.f32 %v6284_v51, %v4967_v32 }
 0x7d7   :  { %v2575_v36 = vadd.f32 %v2574_v60, %v2573_v23  ;;  %v5344_v23 = vld [vmem:[%s6297_s16 + $0x50] sm:$0xff]   ;;  %s5463_s16 = smov 32  }
 0x7d8   :  { %v2592_v33 = vsel %vm167_vm10, %v2587_v4, 0.0  ;;  %v2576_v34 = vsel %vm167_vm10, %v2568_v6, 0.0  ;;  %v2588_v38 = vmul.f32 %v2568_v6, %v2568_v6  ;;  %2826 = vmatpush1.bf16.msra.mxu0 %v5344_v23  ;;  %s6627_s19 = sld [smem:[%s6848_s0 + %s5463_s16]]  }
 0x7d9   :  { %v2593_v5 = vadd.f32 %v2592_v33, %v2591_v29  ;;  %v2577_v37 = vadd.f32 %v2576_v34, %v2575_v36  ;;  %2827 = vmatprep.subr.bf16.mxu0 %v5442_v31 }
 0x7da   :  { %v2594_v39 = vsel %vm167_vm10, %v2588_v38, 0.0 }
 0x7db   :  { %v2578_v40 = vrot.slane %v2577_v37, 4  ;;  %v2595_v41 = vadd.f32 %v2594_v39, %v2593_v5 }
 0x7dc   :  { %2828 = vmatpush1.bf16.msra.mxu0 %v5345_v22 }
 0x7dd   :  { %v2579_v42 = vadd.f32 %v2578_v40, %v2577_v37  ;;  %v2596_v43 = vrot.slane %v2595_v41, 4 }
 0x7df   :  { %v2580_v44 = vrot.slane %v2579_v42, 2  ;;  %v2597_v45 = vadd.f32 %v2596_v43, %v2595_v41 }
 0x7e1   :  { %v2581_v46 = vadd.f32 %v2580_v44, %v2579_v42  ;;  %v2598_v47 = vrot.slane %v2597_v45, 2 }
 0x7e3   :  { %v2582_v48 = vrot.slane %v2581_v46, 1  ;;  %v2599_v49 = vadd.f32 %v2598_v47, %v2597_v45 }
 0x7e5   :  { %v2583_v50 = vadd.f32 %v2582_v48, %v2581_v46  ;;  %v2600_v51 = vrot.slane %v2599_v49, 1 }
 0x7e7   :  { %v2584_v52 = vmul.f32 0.03125, %v2583_v50  ;;  %v2601_v35 = vadd.f32 %v2600_v51, %v2599_v49 }
 0x7e9   :  { %v2602_v57 = vmul.f32 0.03125, %v2601_v35  ;;  %v2603_v58 = vmul.f32 %v2584_v52, %v2584_v52  ;;  %v2613_v59 = vsub.f32 %v2568_v6, %v2584_v52  ;;  %v2611_v61 = vsub.f32 %v2560_v18, %v2584_v52 }
 0x7ea   :  { %v2610_v62 = vsub.f32 %v6319_v14, %v2584_v52  ;;  %v2612_v63 = vsub.f32 %v2565_v26, %v2584_v52 }
 0x7eb   :  { %v2604_v1 = vsub.f32 %v2602_v57, %v2603_v58  ;;  %v5346_v57 = vld [vmem:[%s6381_s28 + $0x40] sm:$0xff]  }
 0x7ec   :  { %v5347_v58 = vld [vmem:[%s6381_s28 + $0xc0] sm:$0xff]   ;;  %4980 = vmatprep.subr.bf16.mxu1 %v5346_v57  ;;  %v5352_v57 = vld [vmem:[%s6381_s28 + $0x8] sm:$0xff]  }
 0x7ed   :  { %v2605_v2 = vmax.f32 %v2604_v1, 0.0  ;;  %5008 = vmatprep.subr.bf16.mxu0 %v5347_v58  ;;  %v4701_v58 = vld [vmem:[%s4539_s7] ss:$0 sm:$0xff]  ;;  %s5468_s7 = smov 28  }
 0x7ee   :  { %s4545_s5 = sld [smem:[%s6848_s0 + %s5468_s7]]  }
 0x7ef   :  { %v2607_v8 = vadd.f32 1e-05, %v2605_v2 }
 0x7f1   :  { %5422 = vrsqrt.f32 %v2607_v8 }
 0x7fb   :  { %v5423_v10 = vpop.eup %5422 }
 0x7fc   :  { %v2609_v13 = vmul.f32 %v5423_v10, %v2606_v9 }
 0x7fe   :  { %v2618_v11 = vrot.slane %v2609_v13, %v5728_v15 }
 0x800   :  { %v2621_v14 = vmul.f32 %v2618_v11, %v2611_v61  ;;  %v2620_v16 = vmul.f32 %v2618_v11, %v2610_v62  ;;  %v2623_v17 = vmul.f32 %v2618_v11, %v2613_v59  ;;  %v2622_v18 = vmul.f32 %v2618_v11, %v2612_v63  ;;  %v5348_v59 = vld [vmem:[%s6381_s28] sm:$0xff]  }
 0x801   :  { %v5349_v61 = vld [vmem:[%s6381_s28 + $0x80] sm:$0xff]   ;;  %4981 = vmatpush3.bf16.msra.mxu1 %v5348_v59 }
 0x802   :  { %v2632_v7 = vadd.f32 %v4685_v12, %v2621_v14  ;;  %v2631_v20 = vadd.f32 %v4685_v12, %v2620_v16  ;;  %v2634_v19 = vadd.f32 %v4685_v12, %v2623_v17  ;;  %v2633_v21 = vadd.f32 %v4685_v12, %v2622_v18 }
 0x804   :  { %v2636_v24 = vmax.f32 %v2632_v7, 0.0  ;;  %v2635_v25 = vmax.f32 %v2631_v20, 0.0  ;;  %v2638_v27 = vmax.f32 %v2634_v19, 0.0  ;;  %v2637_v28 = vmax.f32 %v2633_v21, 0.0 }
 0x806   :  { %2661 = vrot.lane.b32.xlu1 %v2636_v24, %s5438_s10  ;;  %v2646_v29 = vrot.slane %v2636_v24, 7  ;;  %v2678_v30 = vrot.slane %v2636_v24, 1  ;;  %2659 = vrot.lane.b32.xlu0 %v2635_v25, %s5438_s10  ;;  %v2645_v26 = vrot.slane %v2635_v25, 7  ;;  %v2677_v32 = vrot.slane %v2635_v25, 1 }
 0x807   :  { %v2649_v60 = vrot.slane %v2638_v27, 7  ;;  %v2681_v4 = vrot.slane %v2638_v27, 1  ;;  %v2648_v6 = vrot.slane %v2637_v28, 7  ;;  %v2680_v36 = vrot.slane %v2637_v28, 1 }
 0x808   :  { %2688 = vst.msk [vmem:[#allocation2 + $0x28] sm:$0x7f] %vm248_vm3, %v2678_v30  ;;  %v2679_v33 = vsel %vm236_vm15, %v2677_v32, %v2678_v30  ;;  %v2647_v34 = vsel %vm202_vm11, %v2645_v26, %v2646_v29 }
 0x809   :  { %2655 = vst.msk [vmem:[#allocation2] sm:$0xfe] %vm213_vm7, %v2645_v26  ;;  %v2682_v38 = vsel %vm236_vm15, %v2680_v36, %v2681_v4  ;;  %2657 = vst.msk [vmem:[#allocation2 + $0x40] sm:$0xfe] %vm213_vm7, %v2648_v6  ;;  %v2650_v5 = vsel %vm202_vm11, %v2648_v6, %v2649_v60 }
 0x80a   :  { %2687 = vst.msk [vmem:[#allocation2 + $0x8] sm:$0xff] %vm167_vm10, %v2679_v33  ;;  %2656 = vst.msk [vmem:[#allocation2 + $0x20] sm:$0xff] %vm167_vm10, %v2647_v34  ;;  %2665 = vrot.lane.b32.xlu1 %v2638_v27, %s5438_s10  ;;  %2663 = vrot.lane.b32.xlu0 %v2637_v28, %s5438_s10 }
 0x80b   :  { %2690 = vst.msk [vmem:[#allocation2 + $0x68] sm:$0x7f] %vm248_vm3, %v2681_v4 }
 0x80c   :  { %2689 = vst.msk [vmem:[#allocation2 + $0x48] sm:$0xff] %vm167_vm10, %v2682_v38  ;;  %2658 = vst.msk [vmem:[#allocation2 + $0x60] sm:$0xff] %vm167_vm10, %v2650_v5 }
 0x80f   :  { %v2694_v37 = vld [vmem:[#allocation2 + $0x28] sm:$0xff] }
 0x811   :  { %v2692_v39 = vld [vmem:[#allocation2 + $0x8] sm:$0xff] }
 0x812   :  { %v2700_v40 = vpack.c.bf16 %v2694_v37, %v2692_v39  ;;  %3066 = vst.msk [vmem:[#allocation2 + $0x8] sm:$0x1] %vm6907_vm13, %v5437_v0  ;;  %v2698_v46 = vld [vmem:[#allocation2 + $0x68] sm:$0xff]  ;;  %vm6912_vm13 = vmmov %vm6910_vm1 }
 0x813   :  { %v2696_v41 = vld [vmem:[#allocation2 + $0x48] sm:$0xff] }
 0x814   :  { %3067 = vst.msk [vmem:[#allocation2 + $0x48] sm:$0x1] %vm6908_vm0, %v5437_v0  ;;  %4698 = vmatprep.mubr.msk.bf16.mxu0 %vm167_vm10, %v2700_v40  ;;  %v2702_v50 = vpack.c.bf16 %v2698_v46, %v2696_v41  ;;  %vm6914_vm0 = vcmask 1048068  }
 0x878   :  { %v2662_v42 = vpop.permute.xlu1 %2661  ;;  %v2660_v43 = vpop.permute.xlu0 %2659 }
 0x879   :  { %2672 = vst.msk [vmem:[#allocation2 + $0x20] sm:$0xff] %vm195_vm14, %v2662_v42  ;;  %2671 = vst.msk [vmem:[#allocation2] sm:$0xff] %vm195_vm14, %v2660_v43 }
 0x87c   :  { %v2666_v44 = vpop.permute.xlu1 %2665  ;;  %v2664_v45 = vpop.permute.xlu0 %2663 }
 0x87d   :  { %2674 = vst.msk [vmem:[#allocation2 + $0x60] sm:$0xff] %vm195_vm14, %v2666_v44  ;;  %2673 = vst.msk [vmem:[#allocation2 + $0x40] sm:$0xff] %vm195_vm14, %v2664_v45 }
 0x880   :  { %v2691_v47 = vld [vmem:[#allocation2] sm:$0xff] }
 0x881   :  { %v2693_v48 = vld [vmem:[#allocation2 + $0x20] sm:$0xff]  ;;  %3022 = vst.msk [vmem:[#allocation2] sm:$0x7] %vm6909_vm2, %v5437_v0 }
 0x882   :  { %v2699_v49 = vpack.c.bf16 %v2693_v48, %v2691_v47  ;;  %3042 = vst.msk [vmem:[#allocation2] sm:$0x3] %vm6910_vm1, %v5437_v0  ;;  %vm6916_vm1 = vcmask 1048070  }
 0x884   :  { %2838 = vmatmul.mubr.bf16.vlgmr.msra.gmra.mrb[36].mxu0 %v2699_v49  ;;  %v2695_v51 = vld [vmem:[#allocation2 + $0x40] sm:$0xff] }
 0x885   :  { %4699 = vmatprep.mubr.msk.bf16.mxu0 %vm167_vm10, %v2702_v50  ;;  %3023 = vst.msk [vmem:[#allocation2 + $0x40] sm:$0x7] %vm6911_vm9, %v5437_v0  ;;  %v2697_v52 = vld [vmem:[#allocation2 + $0x60] sm:$0xff]  ;;  %5009 = vmatpush3.bf16.msra.mxu0 %v5349_v61  ;;  %v5353_v61 = vld [vmem:[%s6381_s28 + $0x88] sm:$0xff]   ;;  %vm6917_vm9 = vmmov %vm6914_vm0 }
 0x886   :  { %3043 = vst.msk [vmem:[#allocation2 + $0x40] sm:$0x3] %vm6912_vm13, %v5437_v0  ;;  %v2701_v35 = vpack.c.bf16 %v2697_v52, %v2695_v51  ;;  %v2889_v50 = vld [vmem:[%s4536_s2] sm:$0x1]  ;;  %v5350_v52 = vld [vmem:[%s6381_s28 + $0x48] sm:$0xff]   ;;  %vm6918_vm13 = vcmask 1044480  }
 0x887   :  { %4982 = vmatprep.subr.bf16.mxu1 %v5350_v52  ;;  %s5467_s2 = smov 27  }
 0x888   :  { %4983 = vmatpush3.bf16.msra.mxu1 %v5352_v57  ;;  %s4544_s6 = sld [smem:[%s6848_s0 + %s5467_s2]]  }
 0x88c   :  { %2846 = vmatmul.mubr.bf16.gmra.mrb[40].mxu0 %v2701_v35  ;;  %v5351_v35 = vld [vmem:[%s6381_s28 + $0xc8] sm:$0xff]  }
 0x88d   :  { %5010 = vmatprep.subr.bf16.mxu0 %v5351_v35 }
 0x88e   :  { %5011 = vmatpush3.bf16.msra.mxu0 %v5353_v61 }
 0x957   :  { %v6387_v62 = vpop.f32.mrb[36].mxu0 }
 0x958   :  { %v2868_v63 = vmul.f32 %v6387_v62, %v6387_v62  ;;  %v2841_v1 = vpop.f32.mrb[37].mxu0  ;;  %v2854_v8 = vsel %vm167_vm10, %v6387_v62, 0.0 }
 0x959   :  { %v6391_v2 = vpop.f32.mrb[38].mxu0  ;;  %v3008_v1 = vadd.f32 %v6286_v53, %v4701_v58 }
 0x95a   :  { %v2855_v9 = vsel %vm167_vm10, %v6391_v2, 0.0  ;;  %v2869_v10 = vmul.f32 %v6391_v2, %v6391_v2  ;;  %v2844_v13 = vpop.f32.mrb[39].mxu0  ;;  %v2872_v12 = vsel %vm167_vm10, %v2868_v63, 0.0  ;;  %v4700_v63 = vld [vmem:[%s4537_s11] ss:$0 sm:$0xff] }
 0x95b   :  { %v2856_v11 = vadd.f32 %v2855_v9, %v2854_v8  ;;  %v5355_v8 = vld [vmem:[%s6381_s28 + $0xd0] sm:$0xff]  }
 0x95c   :  { %v2873_v14 = vsel %vm167_vm10, %v2869_v10, 0.0  ;;  %v5356_v9 = vld [vmem:[%s6381_s28 + $0x10] sm:$0xff]   ;;  %5012 = vmatprep.subr.bf16.mxu0 %v5355_v8 }
 0x95d   :  { %v2874_v16 = vadd.f32 %v2873_v14, %v2872_v12  ;;  %v5357_v14 = vld [vmem:[%s6381_s28 + $0x90] sm:$0xff]  }
 0x95e   :  { %5013 = vmatpush3.bf16.msra.mxu0 %v5357_v14  ;;  %v5370_v14 = vld [vmem:[%s6381_s28 + $0x70] sm:$0xff]  }
 0x95f   :  { %v6401_v17 = vpop.f32.mrb[40].mxu0 }
 0x960   :  { %v2857_v18 = vsel %vm167_vm10, %v6401_v17, 0.0  ;;  %v2870_v7 = vmul.f32 %v6401_v17, %v6401_v17  ;;  %v2849_v20 = vpop.f32.mrb[41].mxu0 }
 0x961   :  { %v2858_v19 = vadd.f32 %v2857_v18, %v2856_v11  ;;  %v2850_v21 = vpop.f32.mrb[42].mxu0  ;;  %v3003_v18 = vadd.f32 %v4701_v58, %v6292_v56  ;;  %v5359_v56 = vld [vmem:[%s6381_s28 + $0xd8] sm:$0xff]  }
 0x962   :  { %v2875_v23 = vsel %vm167_vm10, %v2870_v7, 0.0  ;;  %v2859_v24 = vsel %vm167_vm10, %v2850_v21, 0.0  ;;  %v2871_v25 = vmul.f32 %v2850_v21, %v2850_v21  ;;  %v2852_v27 = vpop.f32.mrb[43].mxu0  ;;  %5014 = vmatprep.subr.bf16.mxu0 %v5359_v56 }
 0x963   :  { %v2876_v28 = vadd.f32 %v2875_v23, %v2874_v16  ;;  %v2860_v22 = vadd.f32 %v2859_v24, %v2858_v19  ;;  %v3000_v16 = vadd.f32 %v4701_v58, %v6288_v54  ;;  %v5361_v27 = vld [vmem:[%s6381_s28 + $0x98] sm:$0xff]  }
 0x964   :  { %v2877_v29 = vsel %vm167_vm10, %v2871_v25, 0.0  ;;  %v5360_v25 = vld [vmem:[%s6381_s28 + $0x18] sm:$0xff]   ;;  %5015 = vmatpush3.bf16.msra.mxu0 %v5361_v27 }
 0x965   :  { %v2861_v30 = vrot.slane %v2860_v22, 4  ;;  %v2878_v26 = vadd.f32 %v2877_v29, %v2876_v28  ;;  %v5374_v27 = vld [vmem:[%s6381_s28 + $0x78] sm:$0xff]  }
 0x967   :  { %v2862_v32 = vadd.f32 %v2861_v30, %v2860_v22  ;;  %v2879_v60 = vrot.slane %v2878_v26, 4 }
 0x969   :  { %v2863_v4 = vrot.slane %v2862_v32, 2  ;;  %v2880_v6 = vadd.f32 %v2879_v60, %v2878_v26  ;;  %v5362_v26 = vld [vmem:[%s6381_s28 + $0x60] sm:$0xff]  }
 0x96a   :  { %v5364_v60 = vld [vmem:[%s6381_s28 + $0x20] sm:$0xff]  }
 0x96b   :  { %v2864_v36 = vadd.f32 %v2863_v4, %v2862_v32  ;;  %v2881_v33 = vrot.slane %v2880_v6, 2  ;;  %v5363_v32 = vld [vmem:[%s6381_s28 + $0xe0] sm:$0xff]  }
 0x96c   :  { %5016 = vmatprep.subr.bf16.mxu0 %v5363_v32 }
 0x96d   :  { %v2865_v34 = vrot.slane %v2864_v36, 1  ;;  %v2882_v38 = vadd.f32 %v2881_v33, %v2880_v6 }
 0x96f   :  { %v2866_v5 = vadd.f32 %v2865_v34, %v2864_v36  ;;  %v2883_v37 = vrot.slane %v2882_v38, 1 }
 0x971   :  { %v2867_v39 = vmul.f32 0.03125, %v2866_v5  ;;  %v2884_v40 = vadd.f32 %v2883_v37, %v2882_v38 }
 0x973   :  { %v2885_v41 = vmul.f32 0.03125, %v2884_v40  ;;  %v2886_v42 = vmul.f32 %v2867_v39, %v2867_v39  ;;  %v2893_v43 = vsub.f32 %v6387_v62, %v2867_v39  ;;  %v2894_v44 = vsub.f32 %v6391_v2, %v2867_v39  ;;  %v5354_v2 = vld [vmem:[%s6381_s28 + $0x50] sm:$0xff]  }
 0x974   :  { %v2895_v45 = vsub.f32 %v6401_v17, %v2867_v39  ;;  %v2896_v46 = vsub.f32 %v2850_v21, %v2867_v39  ;;  %v3011_v17 = vadd.f32 %v6290_v55, %v4701_v58  ;;  %4984 = vmatprep.subr.bf16.mxu1 %v5354_v2  ;;  %v5358_v21 = vld [vmem:[%s6381_s28 + $0x58] sm:$0xff]   ;;  %v5365_v39 = vld [vmem:[%s6381_s28 + $0xa0] sm:$0xff]  }
 0x975   :  { %v2887_v47 = vsub.f32 %v2885_v41, %v2886_v42  ;;  %4985 = vmatpush3.bf16.msra.mxu1 %v5356_v9  ;;  %5017 = vmatpush3.bf16.msra.mxu0 %v5365_v39 }
 0x976   :  { %4986 = vmatprep.subr.bf16.mxu1 %v5358_v21 }
 0x977   :  { %v2888_v48 = vmax.f32 %v2887_v47, 0.0 }
 0x979   :  { %v2890_v49 = vadd.f32 1e-05, %v2888_v48  ;;  %4987 = vmatpush3.bf16.msra.mxu1 %v5360_v25  ;;  %v5366_v48 = vld [vmem:[%s6381_s28 + $0x68] sm:$0xff]  }
 0x97a   :  { %4988 = vmatprep.subr.bf16.mxu1 %v5362_v26  ;;  %v5375_v26 = vld [vmem:[%s6381_s28 + $0xf8] sm:$0xff]  }
 0x97b   :  { %5424 = vrsqrt.f32 %v2890_v49  ;;  %v5367_v49 = vld [vmem:[%s6381_s28 + $0xe8] sm:$0xff]  }
 0x97c   :  { %5018 = vmatprep.subr.bf16.mxu0 %v5367_v49 }
 0x97d   :  { %4989 = vmatpush3.bf16.msra.mxu1 %v5364_v60  ;;  %v5376_v60 = vld [vmem:[%s6381_s28 + $0x38] sm:$0xff]  }
 0x97e   :  { %4990 = vmatprep.subr.bf16.mxu1 %v5366_v48 }
 0x985   :  { %v5425_v51 = vpop.eup %5424 }
 0x986   :  { %v2892_v59 = vmul.f32 %v5425_v51, %v2889_v50  ;;  %v5368_v50 = vld [vmem:[%s6381_s28 + $0x28] sm:$0xff]  }
 0x987   :  { %4991 = vmatpush3.bf16.msra.mxu1 %v5368_v50 }
 0x988   :  { %v2901_v62 = vrot.slane %v2892_v59, %v5728_v15  ;;  %4992 = vmatprep.subr.bf16.mxu1 %v5370_v14 }
 0x98a   :  { %v2903_v10 = vmul.f32 %v2901_v62, %v2893_v43  ;;  %v2904_v13 = vmul.f32 %v2901_v62, %v2894_v44  ;;  %v2905_v11 = vmul.f32 %v2901_v62, %v2895_v45  ;;  %v2906_v12 = vmul.f32 %v2901_v62, %v2896_v46 }
 0x98c   :  { %v2914_v53 = vadd.f32 %v4700_v63, %v2903_v10  ;;  %v2915_v7 = vadd.f32 %v4700_v63, %v2904_v13  ;;  %v2916_v20 = vadd.f32 %v4700_v63, %v2905_v11  ;;  %v2917_v19 = vadd.f32 %v4700_v63, %v2906_v12  ;;  %v5369_v63 = vld [vmem:[%s6381_s28 + $0xa8] sm:$0xff]  }
 0x98d   :  { %5019 = vmatpush3.bf16.msra.mxu0 %v5369_v63 }
 0x98e   :  { %v3014_v23 = vadd.f32 %v3000_v16, %v2914_v53  ;;  %v3015_v54 = vadd.f32 %v3003_v18, %v2915_v7  ;;  %v3016_v55 = vadd.f32 %v3008_v1, %v2916_v20  ;;  %v3017_v24 = vadd.f32 %v3011_v17, %v2917_v19  ;;  %v5371_v16 = vld [vmem:[%s6381_s28 + $0xf0] sm:$0xff]  }
 0x98f   :  { %v5372_v17 = vld [vmem:[%s6381_s28 + $0x30] sm:$0xff]   ;;  %5020 = vmatprep.subr.bf16.mxu0 %v5371_v16 }
 0x990   :  { %v6439_v28 = vmax.f32 %v3014_v23, 0.0  ;;  %v6441_v22 = vmax.f32 %v3015_v54, 0.0  ;;  %v6443_v29 = vmax.f32 %v3016_v55, 0.0  ;;  %v6445_v30 = vmax.f32 %v3017_v24, 0.0  ;;  %v5373_v54 = vld [vmem:[%s6381_s28 + $0xb0] sm:$0xff]   ;;  %4993 = vmatpush3.bf16.msra.mxu1 %v5372_v17 }
 0x991   :  { %5021 = vmatpush3.bf16.msra.mxu0 %v5373_v54  ;;  %4994 = vmatprep.subr.bf16.mxu1 %v5374_v27  ;;  %v5387_v54 = vld [vmem:[%s6618_s15] sm:$0xff]   ;;  %v5391_v27 = vld [vmem:[%s6618_s15 + $0x10] sm:$0xff]  }
 0x992   :  { %3084 = vrot.lane.b32.xlu1 %v6441_v22, %s5438_s10  ;;  %3082 = vrot.lane.b32.xlu0 %v6439_v28, %s5438_s10  ;;  %v3157_v4 = vrot.slane %v6441_v22, 4  ;;  %v3044_v6 = vrot.slane %v6439_v28, 6  ;;  %v3117_v36 = vrot.slane %v6441_v22, 2  ;;  %v3047_v33 = vrot.slane %v6443_v29, 6 }
 0x993   :  { %v3160_v34 = vrot.slane %v6445_v30, 4  ;;  %v3156_v38 = vrot.slane %v6439_v28, 4  ;;  %v3116_v5 = vrot.slane %v6439_v28, 2  ;;  %v3045_v37 = vrot.slane %v6441_v22, 6  ;;  %5022 = vmatprep.subr.bf16.mxu0 %v5375_v26  ;;  %v5392_v26 = vld [vmem:[%s6618_s15 + $0x58] sm:$0xff]  }
 0x994   :  { %v3159_v40 = vrot.slane %v6443_v29, 4  ;;  %v3048_v41 = vrot.slane %v6445_v30, 6  ;;  %v3119_v42 = vrot.slane %v6443_v29, 2  ;;  %v3120_v43 = vrot.slane %v6445_v30, 2  ;;  %4995 = vmatpush3.bf16.msra.mxu1 %v5376_v60  ;;  %v5393_v60 = vld [vmem:[%s6618_s15 + $0x18] sm:$0xff]  }
 0x995   :  { %v6468_v44 = vsel %vm301_vm4, %v3156_v38, %v3157_v4  ;;  %v6473_v45 = vsel %vm255_vm6, %v3116_v5, %v3117_v36  ;;  %v6476_v46 = vsel %vm174_vm5, %v3044_v6, %v3045_v37  ;;  %v3068_v47 = vrot.slane %v6439_v28, 7 }
 0x996   :  { %3088 = vrot.lane.b32.xlu1 %v6445_v30, %s5438_s10  ;;  %3086 = vrot.lane.b32.xlu0 %v6443_v29, %s5438_s10  ;;  %v6489_v51 = vsel %vm301_vm4, %v3159_v40, %v3160_v34  ;;  %v6494_v52 = vsel %vm174_vm5, %v3047_v33, %v3048_v41  ;;  %v6499_v35 = vsel %vm255_vm6, %v3119_v42, %v3120_v43  ;;  %v3069_v57 = vrot.slane %v6441_v22, 7 }
 0x997   :  { %3078 = vst.msk [vmem:[#allocation2 + $0x8] sm:$0xfe] %vm213_vm7, %v3068_v47  ;;  %v3071_v58 = vrot.slane %v6443_v29, 7  ;;  %v3072_v59 = vrot.slane %v6445_v30, 7  ;;  %v3141_v61 = vrot.slane %v6441_v22, 3  ;;  %v3028_v62 = vrot.slane %v6439_v28, 5 }
 0x998   :  { %v3070_v1 = vsel %vm202_vm11, %v3068_v47, %v3069_v57  ;;  %v3101_v2 = vrot.slane %v6441_v22, 1  ;;  %v3031_v8 = vrot.slane %v6443_v29, 5  ;;  %v3144_v9 = vrot.slane %v6445_v30, 3 }
 0x999   :  { %3079 = vst.msk [vmem:[#allocation2 + $0x28] sm:$0xff] %vm167_vm10, %v3070_v1  ;;  %v3073_v10 = vsel %vm202_vm11, %v3071_v58, %v3072_v59  ;;  %vm6913_vm4 = vcmask 523267   ;;  %v3140_v13 = vrot.slane %v6439_v28, 3  ;;  %v3100_v11 = vrot.slane %v6439_v28, 1 }
 0x99a   :  { %3080 = vst.msk [vmem:[#allocation2 + $0x48] sm:$0xfe] %vm213_vm7, %v3071_v58  ;;  %v3029_v12 = vrot.slane %v6441_v22, 5  ;;  %3164 = vrot.lane.b32.xlu1 %v3157_v4, %s5438_s10  ;;  %3050 = vrot.lane.b32.xlu0 %v3044_v6, %s5438_s10  ;;  %vm6915_vm2 = vmmov %vm6913_vm4  ;;  %v3143_v18 = vrot.slane %v6443_v29, 3  ;;  %v3032_v53 = vrot.slane %v6445_v30, 5  ;;  %v3103_v7 = vrot.slane %v6443_v29, 1 }
 0x99b   :  { %3151 = vst.msk [vmem:[#allocation2 + $0x38] sm:$0x1f] %vm294_vm8, %v3141_v61  ;;  %3153 = vst.msk [vmem:[#allocation2 + $0x78] sm:$0x1f] %vm294_vm8, %v3144_v9  ;;  %v3104_v20 = vrot.slane %v6445_v30, 1  ;;  %v3142_v19 = vsel %vm6918_vm13, %v3140_v13, %v3141_v61  ;;  %v3102_v21 = vsel %vm236_vm15, %v3100_v11, %v3101_v2  ;;  %vm6919_vm8 = vcmask 1042432  }
 0x99c   :  { %3038 = vst.msk [vmem:[#allocation2] sm:$0xf8] %vm6913_vm4, %v3028_v62  ;;  %v3030_v23 = vsel %vm6919_vm8, %v3028_v62, %v3029_v12  ;;  %vm6920_vm4 = vmmov %vm6918_vm13  ;;  %v4333_v25 = vpack.c.bf16 %v6441_v22, %v6439_v28  ;;  %v4334_v32 = vpack.c.bf16 %v6445_v30, %v6443_v29  ;;  %v5377_v4 = vld [vmem:[%s6381_s28 + $0xb8] sm:$0xff]   ;;  %s5466_s28 = smov 29  }
 0x99d   :  { %3081 = vst.msk [vmem:[#allocation2 + $0x68] sm:$0xff] %vm167_vm10, %v3073_v10  ;;  %3150 = vst.msk [vmem:[#allocation2 + $0x18] sm:$0xff] %vm167_vm10, %v3142_v19  ;;  %v3145_v55 = vsel %vm6920_vm4, %v3143_v18, %v3144_v9  ;;  %v3105_v56 = vsel %vm236_vm15, %v3103_v7, %v3104_v20  ;;  %5023 = vmatpush3.bf16.msra.mxu0 %v5377_v4  ;;  %vm6927_vm4 = vcmask 1040896   ;;  %v5379_v7 = vld [vmem:[%s6618_s15 + $0x88] sm:$0xff]   ;;  %v5381_v19 = vld [vmem:[%s6618_s15 + $0x98] sm:$0xff]   ;;  %s6752_s1 = sld [smem:[%s6848_s0 + %s5466_s28]]  }
 0x99e   :  { %3154 = vst.msk [vmem:[#allocation2 + $0x38] sm:$0xf0] %vm6914_vm0, %v5437_v0  ;;  %vm6921_vm0 = vmmov %vm6919_vm8  ;;  %3124 = vrot.lane.b32.xlu1 %v3117_v36, %s5438_s10  ;;  %3054 = vrot.lane.b32.xlu0 %v3047_v33, %s5438_s10  ;;  %vm6926_vm8 = vcmask 517120   ;;  %v5394_v4 = vld [vmem:[%s6618_s15 + $0x60] sm:$0xff]  }
 0x99f   :  { %3111 = vst.msk [vmem:[#allocation2 + $0x30] sm:$0x7f] %vm248_vm3, %v3101_v2  ;;  %v3033_v24 = vsel %vm6921_vm0, %v3031_v8, %v3032_v53  ;;  %3113 = vst.msk [vmem:[#allocation2 + $0x70] sm:$0x7f] %vm248_vm3, %v3104_v20  ;;  %vm6928_vm0 = vcmask 523270   ;;  %v5378_v53 = vld [vmem:[%s6618_s15 + $0x80] sm:$0xff]  }
 0x9a0   :  { %3040 = vst.msk [vmem:[#allocation2 + $0x40] sm:$0xf8] %vm6915_vm2, %v3031_v8  ;;  %vm6922_vm2 = vmmov %vm6916_vm1  ;;  %5129 = vmatprep.subr.bf16.mxu0 %v5378_v53  ;;  %v5380_v20 = vld [vmem:[%s6618_s15 + $0x90] sm:$0xff]  }
 0x9a1   :  { %3114 = vst.msk [vmem:[#allocation2 + $0x30] sm:$0xc0] %vm6916_vm1, %v5437_v0  ;;  %vm6923_vm1 = vcmask 1048066  }
 0x9a2   :  { %3155 = vst.msk [vmem:[#allocation2 + $0x78] sm:$0xf0] %vm6917_vm9, %v5437_v0  ;;  %3168 = vrot.lane.b32.xlu1 %v3160_v34, %s5438_s10  ;;  %3162 = vrot.lane.b32.xlu0 %v6468_v44, %s5438_s10  ;;  %vm6924_vm9 = vcmask 1046016   ;;  %vm6925_vm13 = vmmov %vm6923_vm1 }
 0x9a3   :  { %3110 = vst.msk [vmem:[#allocation2 + $0x10] sm:$0xff] %vm167_vm10, %v3102_v21  ;;  %3039 = vst.msk [vmem:[#allocation2 + $0x20] sm:$0xff] %vm167_vm10, %v3030_v23  ;;  %v6630_v21 = vld [vmem:[%s6627_s19] sm:$0xff]  }
 0x9a4   :  { %3152 = vst.msk [vmem:[#allocation2 + $0x58] sm:$0xff] %vm167_vm10, %v3145_v55  ;;  %3041 = vst.msk [vmem:[#allocation2 + $0x60] sm:$0xff] %vm167_vm10, %v3033_v24  ;;  %v5386_v23 = vld [vmem:[%s6618_s15 + $0x40] sm:$0xff]   ;;  %v5388_v55 = vld [vmem:[%s6618_s15 + $0x48] sm:$0xff]  }
 0x9a5   :  { %3112 = vst.msk [vmem:[#allocation2 + $0x50] sm:$0xff] %vm167_vm10, %v3105_v56  ;;  %5036 = vmatprep.subr.bf16.mxu1 %v5386_v23  ;;  %v5389_v24 = vld [vmem:[%s6618_s15 + $0x8] sm:$0xff]   ;;  %v5390_v56 = vld [vmem:[%s6618_s15 + $0x50] sm:$0xff]  }
 0x9a6   :  { %3115 = vst.msk [vmem:[#allocation2 + $0x70] sm:$0xc0] %vm6922_vm2, %v5437_v0  ;;  %3122 = vrot.lane.b32.xlu0 %v6473_v45, %s5438_s10  ;;  %3052 = vrot.lane.b32.xlu1 %v6476_v46, %s5438_s10  ;;  %vm6930_vm2 = vmmov %vm6927_vm4 }
 0x9aa   :  { %3166 = vrot.lane.b32.xlu0 %v6489_v51, %s5438_s10  ;;  %3056 = vrot.lane.b32.xlu1 %v6494_v52, %s5438_s10 }
 0x9ae   :  { %3126 = vrot.lane.b32.xlu0 %v6499_v35, %s5438_s10  ;;  %3128 = vrot.lane.b32.xlu1 %v3120_v43, %s5438_s10 }
 0xa04   :  { %v3085_v6 = vpop.permute.xlu1 %3084  ;;  %v3083_v36 = vpop.permute.xlu0 %3082 }
 0xa05   :  { %3095 = vst.msk [vmem:[#allocation2 + $0x28] sm:$0xff] %vm195_vm14, %v3085_v6  ;;  %3094 = vst.msk [vmem:[#allocation2 + $0x8] sm:$0xff] %vm195_vm14, %v3083_v36 }
 0xa08   :  { %v3089_v33 = vpop.permute.xlu1 %3088  ;;  %v3087_v34 = vpop.permute.xlu0 %3086 }
 0xa09   :  { %3097 = vst.msk [vmem:[#allocation2 + $0x68] sm:$0xff] %vm195_vm14, %v3089_v33  ;;  %3096 = vst.msk [vmem:[#allocation2 + $0x48] sm:$0xff] %vm195_vm14, %v3087_v34 }
 0xa0c   :  { %v3165_v38 = vpop.permute.xlu1 %3164  ;;  %v3051_v5 = vpop.permute.xlu0 %3050  ;;  %v3179_v37 = vld [vmem:[#allocation2 + $0x8] sm:$0xff] }
 0xa0d   :  { %v3183_v39 = vld [vmem:[#allocation2 + $0x28] sm:$0xff]  ;;  %3175 = vst.msk [vmem:[#allocation2 + $0x38] sm:$0xf] %vm321_vm12, %v3165_v38 }
 0xa0e   :  { %3062 = vst.msk [vmem:[#allocation2] sm:$0xfc] %vm6923_vm1, %v3051_v5  ;;  %v3195_v40 = vpack.c.bf16 %v3183_v39, %v3179_v37  ;;  %vm6931_vm1 = vmmov %vm6924_vm9 }
 0xa10   :  { %3490 = vmatprep.mubr.bf16.mxu1 %v3195_v40  ;;  %v3125_v41 = vpop.permute.xlu1 %3124  ;;  %v3055_v42 = vpop.permute.xlu0 %3054  ;;  %v3187_v58 = vld [vmem:[#allocation2 + $0x48] sm:$0xff] }
 0xa11   :  { %3135 = vst.msk [vmem:[#allocation2 + $0x30] sm:$0x3f] %vm6924_vm9, %v3125_v41  ;;  %v3191_v59 = vld [vmem:[#allocation2 + $0x68] sm:$0xff]  ;;  %vm6932_vm9 = vmmov %vm6928_vm0 }
 0xa12   :  { %3064 = vst.msk [vmem:[#allocation2 + $0x40] sm:$0xfc] %vm6925_vm13, %v3055_v42  ;;  %v3199_v9 = vpack.c.bf16 %v3191_v59, %v3187_v58  ;;  %vm6933_vm13 = vmmov %vm6930_vm2 }
 0xa14   :  { %v3169_v43 = vpop.permute.xlu1 %3168  ;;  %v3163_v44 = vpop.permute.xlu0 %3162  ;;  %v3185_v35 = vld [vmem:[#allocation2 + $0x38] sm:$0xff] }
 0xa15   :  { %v3178_v45 = vld [vmem:[#allocation2] sm:$0xff]  ;;  %3177 = vst.msk [vmem:[#allocation2 + $0x78] sm:$0xf] %vm321_vm12, %v3169_v43  ;;  %vm6929_vm12 = vmmov %vm6926_vm8 }
 0xa16   :  { %3174 = vst.msk [vmem:[#allocation2 + $0x18] sm:$0xff] %vm195_vm14, %v3163_v44 }
 0xa17   :  { %3624 = vst.msk [vmem:[#allocation2] sm:$0x3] %vm6926_vm8, %v5437_v0  ;;  %vm6934_vm8 = vmmov %vm6930_vm2 }
 0xa18   :  { %3644 = vst.msk [vmem:[#allocation2] sm:$0x1] %vm6927_vm4, %v5437_v0  ;;  %v3123_v46 = vpop.permute.xlu0 %3122  ;;  %v3053_v47 = vpop.permute.xlu1 %3052  ;;  %v3184_v48 = vld [vmem:[#allocation2 + $0x30] sm:$0xff]  ;;  %vm6935_vm4 = vcmask 521216  }
 0xa19   :  { %v3186_v49 = vld [vmem:[#allocation2 + $0x40] sm:$0xff]  ;;  %3134 = vst.msk [vmem:[#allocation2 + $0x10] sm:$0xff] %vm195_vm14, %v3123_v46  ;;  %3063 = vst.msk [vmem:[#allocation2 + $0x20] sm:$0xff] %vm195_vm14, %v3053_v47 }
 0xa1a   :  { %3696 = vst.msk [vmem:[#allocation2 + $0x30] sm:$0xc0] %vm6928_vm0, %v5437_v0  ;;  %vm6936_vm0 = vmmov %vm6935_vm4 }
 0xa1b   :  { %3625 = vst.msk [vmem:[#allocation2 + $0x40] sm:$0x3] %vm6929_vm12, %v5437_v0  ;;  %vm6937_vm12 = vcmask 523266  }
 0xa1c   :  { %3645 = vst.msk [vmem:[#allocation2 + $0x40] sm:$0x1] %vm6930_vm2, %v5437_v0  ;;  %v3167_v50 = vpop.permute.xlu0 %3166  ;;  %v3057_v51 = vpop.permute.xlu1 %3056  ;;  %v3193_v13 = vld [vmem:[#allocation2 + $0x78] sm:$0xff]  ;;  %vm6938_vm2 = vmmov %vm6937_vm12 }
 0xa1d   :  { %v3181_v52 = vld [vmem:[#allocation2 + $0x18] sm:$0xff]  ;;  %3176 = vst.msk [vmem:[#allocation2 + $0x58] sm:$0xff] %vm195_vm14, %v3167_v50  ;;  %3065 = vst.msk [vmem:[#allocation2 + $0x60] sm:$0xff] %vm195_vm14, %v3057_v51 }
 0xa1e   :  { %v3197_v57 = vpack.c.bf16 %v3185_v35, %v3181_v52 }
 0xa20   :  { %3539 = vmatprep.mubr.bf16.mxu0 %v3197_v57  ;;  %v3127_v61 = vpop.permute.xlu0 %3126  ;;  %v3129_v62 = vpop.permute.xlu1 %3128  ;;  %v3182_v63 = vld [vmem:[#allocation2 + $0x20] sm:$0xff]  ;;  %v3180_v1 = vld [vmem:[#allocation2 + $0x10] sm:$0xff] }
 0xa21   :  { %3136 = vst.msk [vmem:[#allocation2 + $0x50] sm:$0xff] %vm195_vm14, %v3127_v61  ;;  %v3194_v2 = vpack.c.bf16 %v3182_v63, %v3178_v45  ;;  %v3196_v8 = vpack.c.bf16 %v3184_v48, %v3180_v1 }
 0xa22   :  { %3137 = vst.msk [vmem:[#allocation2 + $0x70] sm:$0x3f] %vm6931_vm1, %v3129_v62 }
 0xa23   :  { %3491 = vmatmul.mubr.bf16.vlgmr.msra.gmra.mrb[36].mxu1 %v3194_v2  ;;  %3540 = vmatmul.mubr.bf16.vlgmr.msra.gmra.mrb[44].mxu0 %v3196_v8 }
 0xa24   :  { %3498 = vmatprep.mubr.bf16.mxu1 %v3199_v9  ;;  %v3189_v10 = vld [vmem:[#allocation2 + $0x58] sm:$0xff]  ;;  %v3190_v12 = vld [vmem:[#allocation2 + $0x60] sm:$0xff]  ;;  %5130 = vmatpush3.bf16.msra.mxu0 %v5378_v53 }
 0xa25   :  { %v3201_v11 = vpack.c.bf16 %v3193_v13, %v3189_v10  ;;  %v3198_v17 = vpack.c.bf16 %v3190_v12, %v3186_v49  ;;  %5131 = vmatprep.subr.bf16.mxu0 %v5379_v7  ;;  %5037 = vmatpush3.bf16.msra.mxu1 %v5387_v54 }
 0xa26   :  { %5038 = vmatprep.subr.bf16.mxu1 %v5388_v55 }
 0xa27   :  { %3547 = vmatprep.mubr.bf16.mxu0 %v3201_v11 }
 0xa28   :  { %v3188_v14 = vld [vmem:[#allocation2 + $0x50] sm:$0xff]  ;;  %5132 = vmatpush3.bf16.msra.mxu0 %v5379_v7 }
 0xa29   :  { %v3192_v16 = vld [vmem:[#allocation2 + $0x70] sm:$0xff]  ;;  %5133 = vmatprep.subr.bf16.mxu0 %v5380_v20  ;;  %5039 = vmatpush3.bf16.msra.mxu1 %v5389_v24 }
 0xa2a   :  { %v3200_v18 = vpack.c.bf16 %v3192_v16, %v3188_v14  ;;  %3697 = vst.msk [vmem:[#allocation2 + $0x70] sm:$0xc0] %vm6932_vm9, %v5437_v0  ;;  %5040 = vmatprep.subr.bf16.mxu1 %v5390_v56  ;;  %vm6942_vm9 = vcmask 516096  }
 0xa2b   :  { %3499 = vmatmul.mubr.bf16.gmra.mrb[40].mxu1 %v3198_v17 }
 0xa2c   :  { %3548 = vmatmul.mubr.bf16.gmra.mrb[48].mxu0 %v3200_v18 }
 0xa2d   :  { %5134 = vmatpush3.bf16.msra.mxu0 %v5380_v20  ;;  %5041 = vmatpush3.bf16.msra.mxu1 %v5391_v27 }
 0xa2e   :  { %5135 = vmatprep.subr.bf16.mxu0 %v5381_v19  ;;  %5042 = vmatprep.subr.bf16.mxu1 %v5392_v26 }
 0xa31   :  { %5136 = vmatpush3.bf16.msra.mxu0 %v5381_v19  ;;  %5043 = vmatpush3.bf16.msra.mxu1 %v5393_v60 }
 0xa32   :  { %5141 = vmatprep.subr.bf16.mxu0 %v6630_v21  ;;  %5044 = vmatprep.subr.bf16.mxu1 %v5394_v4 }
 0xaf6   :  { %v4996_v6 = vpop.f32.mrb[36].mxu1  ;;  %v5024_v36 = vpop.f32.mrb[44].mxu0 }
 0xaf7   :  { %v4997_v33 = vpop.f32.mrb[37].mxu1  ;;  %v5025_v34 = vpop.f32.mrb[45].mxu0 }
 0xaf8   :  { %v4998_v38 = vadd.f32 %v4997_v33, %v4996_v6  ;;  %v5026_v5 = vadd.f32 %v5025_v34, %v5024_v36  ;;  %v4999_v37 = vpop.f32.mrb[38].mxu1  ;;  %v5027_v39 = vpop.f32.mrb[46].mxu0 }
 0xaf9   :  { %v5000_v40 = vpop.f32.mrb[39].mxu1  ;;  %v5028_v41 = vpop.f32.mrb[47].mxu0 }
 0xafa   :  { %v6642_v42 = vadd.f32 %v5026_v5, %v4998_v38  ;;  %v5001_v43 = vadd.f32 %v5000_v40, %v4999_v37  ;;  %v5029_v44 = vadd.f32 %v5028_v41, %v5027_v39 }
 0xafc   :  { %v3570_v45 = vmul.f32 %v6642_v42, %v6642_v42  ;;  %v6646_v46 = vadd.f32 %v5029_v44, %v5001_v43  ;;  %v3556_v47 = vsel %vm167_vm10, %v6642_v42, 0.0 }
 0xafe   :  { %v3557_v48 = vsel %vm167_vm10, %v6646_v46, 0.0  ;;  %v3571_v49 = vmul.f32 %v6646_v46, %v6646_v46  ;;  %v5002_v50 = vpop.f32.mrb[40].mxu1  ;;  %v3574_v58 = vsel %vm167_vm10, %v3570_v45, 0.0 }
 0xaff   :  { %v5030_v51 = vpop.f32.mrb[48].mxu0  ;;  %v3558_v52 = vadd.f32 %v3557_v48, %v3556_v47  ;;  %v5003_v35 = vpop.f32.mrb[41].mxu1 }
 0xb00   :  { %v5031_v57 = vpop.f32.mrb[49].mxu0  ;;  %v3575_v59 = vsel %vm167_vm10, %v3571_v49, 0.0  ;;  %v5004_v61 = vadd.f32 %v5003_v35, %v5002_v50  ;;  %v5005_v63 = vpop.f32.mrb[42].mxu1  ;;  %v5395_v50 = vld [vmem:[%s6618_s15 + $0x20] sm:$0xff]  }
 0xb01   :  { %v5032_v62 = vadd.f32 %v5031_v57, %v5030_v51  ;;  %v5033_v1 = vpop.f32.mrb[50].mxu0  ;;  %v3576_v2 = vadd.f32 %v3575_v59, %v3574_v58  ;;  %v5006_v8 = vpop.f32.mrb[43].mxu1  ;;  %v5396_v51 = vld [vmem:[%s6618_s15 + $0x68] sm:$0xff]   ;;  %5045 = vmatpush3.bf16.msra.mxu1 %v5395_v50  ;;  %v4740_v35 = vld [vmem:[%s4542_s27] ss:$0 sm:$0xff]  ;;  %v5384_v50 = vld [vmem:[%s6627_s19 + $0x10] sm:$0xff]  }
 0xb02   :  { %v5034_v9 = vpop.f32.mrb[51].mxu0  ;;  %v5007_v13 = vadd.f32 %v5006_v8, %v5005_v63  ;;  %5046 = vmatprep.subr.bf16.mxu1 %v5396_v51  ;;  %v5397_v57 = vld [vmem:[%s6618_s15 + $0x28] sm:$0xff]   ;;  %v5398_v63 = vld [vmem:[%s6618_s15 + $0x70] sm:$0xff]  }
 0xb03   :  { %v3550_v10 = vadd.f32 %v5032_v62, %v5004_v61  ;;  %v5035_v11 = vadd.f32 %v5034_v9, %v5033_v1 }
 0xb05   :  { %v3559_v12 = vsel %vm167_vm10, %v3550_v10, 0.0  ;;  %v3572_v14 = vmul.f32 %v3550_v10, %v3550_v10  ;;  %v3553_v16 = vadd.f32 %v5035_v11, %v5007_v13  ;;  %5047 = vmatpush3.bf16.msra.mxu1 %v5397_v57 }
 0xb06   :  { %v3560_v17 = vadd.f32 %v3559_v12, %v3558_v52  ;;  %5048 = vmatprep.subr.bf16.mxu1 %v5398_v63 }
 0xb07   :  { %v3577_v18 = vsel %vm167_vm10, %v3572_v14, 0.0  ;;  %v3561_v53 = vsel %vm167_vm10, %v3553_v16, 0.0  ;;  %v3573_v7 = vmul.f32 %v3553_v16, %v3553_v16 }
 0xb08   :  { %v3578_v20 = vadd.f32 %v3577_v18, %v3576_v2  ;;  %v3562_v19 = vadd.f32 %v3561_v53, %v3560_v17 }
 0xb09   :  { %v3579_v23 = vsel %vm167_vm10, %v3573_v7, 0.0 }
 0xb0a   :  { %v3563_v54 = vrot.slane %v3562_v19, 4  ;;  %v3580_v55 = vadd.f32 %v3579_v23, %v3578_v20 }
 0xb0c   :  { %v3564_v24 = vadd.f32 %v3563_v54, %v3562_v19  ;;  %v3581_v56 = vrot.slane %v3580_v55, 4 }
 0xb0e   :  { %v3565_v27 = vrot.slane %v3564_v24, 2  ;;  %v3582_v26 = vadd.f32 %v3581_v56, %v3580_v55  ;;  %v5401_v55 = vld [vmem:[%s6618_s15 + $0x38] sm:$0xff]  }
 0xb10   :  { %v3566_v60 = vadd.f32 %v3565_v27, %v3564_v24  ;;  %v3583_v4 = vrot.slane %v3582_v26, 2 }
 0xb12   :  { %v3567_v6 = vrot.slane %v3566_v60, 1  ;;  %v3584_v36 = vadd.f32 %v3583_v4, %v3582_v26 }
 0xb14   :  { %v3568_v33 = vadd.f32 %v3567_v6, %v3566_v60  ;;  %v3585_v34 = vrot.slane %v3584_v36, 1 }
 0xb16   :  { %v3569_v38 = vmul.f32 0.03125, %v3568_v33  ;;  %v3586_v5 = vadd.f32 %v3585_v34, %v3584_v36 }
 0xb18   :  { %v3587_v37 = vmul.f32 0.03125, %v3586_v5  ;;  %v3588_v39 = vmul.f32 %v3569_v38, %v3569_v38  ;;  %v3595_v40 = vsub.f32 %v6642_v42, %v3569_v38  ;;  %v3597_v41 = vsub.f32 %v3550_v10, %v3569_v38  ;;  %v3591_v42 = vld [vmem:[%s4541_s23] sm:$0x1]  ;;  %v5399_v10 = vld [vmem:[%s6618_s15 + $0x30] sm:$0xff]  }
 0xb19   :  { %v3598_v43 = vsub.f32 %v3553_v16, %v3569_v38  ;;  %v3596_v44 = vsub.f32 %v6646_v46, %v3569_v38  ;;  %v5400_v16 = vld [vmem:[%s6618_s15 + $0x78] sm:$0xff]   ;;  %5049 = vmatpush3.bf16.msra.mxu1 %v5399_v10 }
 0xb1a   :  { %v3589_v45 = vsub.f32 %v3587_v37, %v3588_v39  ;;  %5050 = vmatprep.subr.bf16.mxu1 %v5400_v16 }
 0xb1c   :  { %v3590_v47 = vmax.f32 %v3589_v45, 0.0 }
 0xb1d   :  { %5051 = vmatpush3.bf16.msra.mxu1 %v5401_v55  ;;  %v5408_v55 = vld [vmem:[%s6752_s1 + $0x30] sm:$0xff]  }
 0xb1e   :  { %v3592_v48 = vadd.f32 1e-05, %v3590_v47  ;;  %4228 = vmatprep.subr.bf16.mxu1 %v5442_v31 }
 0xb20   :  { %5426 = vrsqrt.f32 %v3592_v48 }
 0xb2a   :  { %v5427_v49 = vpop.eup %5426 }
 0xb2b   :  { %v3594_v46 = vmul.f32 %v5427_v49, %v3591_v42  ;;  %v5383_v49 = vld [vmem:[%s6627_s19 + $0x8] sm:$0xff]  }
 0xb2d   :  { %v3603_v52 = vrot.slane %v3594_v46, %v5728_v15  ;;  %v5385_v46 = vld [vmem:[%s6627_s19 + $0x18] sm:$0xff]  }
 0xb2f   :  { %v3605_v58 = vmul.f32 %v3603_v52, %v3595_v40  ;;  %v3607_v59 = vmul.f32 %v3603_v52, %v3597_v41  ;;  %v3608_v61 = vmul.f32 %v3603_v52, %v3598_v43  ;;  %v3606_v62 = vmul.f32 %v3603_v52, %v3596_v44 }
 0xb31   :  { %v3616_v1 = vadd.f32 %v4740_v35, %v3605_v58  ;;  %v3618_v2 = vadd.f32 %v4740_v35, %v3607_v59  ;;  %v3619_v8 = vadd.f32 %v4740_v35, %v3608_v61  ;;  %v3617_v9 = vadd.f32 %v4740_v35, %v3606_v62 }
 0xb33   :  { %v3623_v13 = vmax.f32 %v3619_v8, 0.0  ;;  %v3621_v11 = vmax.f32 %v3617_v9, 0.0  ;;  %v3620_v12 = vmax.f32 %v3616_v1, 0.0  ;;  %v3622_v14 = vmax.f32 %v3618_v2, 0.0 }
 0xb35   :  { %v3702_v17 = vrot.slane %v3623_v13, 2  ;;  %3671 = vst.msk [vmem:[#allocation2 + $0x68] sm:$0xff] %vm167_vm10, %v3623_v13  ;;  %v3675_v18 = vrot.slane %v3621_v11, 1  ;;  %v3699_v53 = vrot.slane %v3621_v11, 2  ;;  %3669 = vst.msk [vmem:[#allocation2 + $0x28] sm:$0xff] %vm167_vm10, %v3621_v11  ;;  %v3674_v7 = vrot.slane %v3620_v12, 1 }
 0xb36   :  { %3668 = vst.msk [vmem:[#allocation2 + $0x8] sm:$0xff] %vm167_vm10, %v3620_v12  ;;  %3670 = vst.msk [vmem:[#allocation2 + $0x48] sm:$0xff] %vm167_vm10, %v3622_v14  ;;  %v3698_v20 = vrot.slane %v3620_v12, 2  ;;  %v3646_v19 = vrot.slane %v3620_v12, 7  ;;  %v3647_v23 = vrot.slane %v3621_v11, 7  ;;  %v3678_v54 = vrot.slane %v3623_v13, 1 }
 0xb37   :  { %3673 = vst.msk [vmem:[#allocation2 + $0x6f] sm:$0x1] %vm6933_vm13, %v5437_v0  ;;  %3682 = vrot.lane.b32.xlu1 %v3675_v18, %s5438_s10  ;;  %v3676_v24 = vsel %vm236_vm15, %v3674_v7, %v3675_v18  ;;  %v3677_v56 = vrot.slane %v3622_v14, 1  ;;  %v3701_v27 = vrot.slane %v3622_v14, 2  ;;  %v3649_v26 = vrot.slane %v3622_v14, 7  ;;  %v5403_v7 = vld [vmem:[%s6752_s1 + $0x8] sm:$0xff]  }
 0xb38   :  { %3672 = vst.msk [vmem:[#allocation2 + $0x2f] sm:$0x1] %vm6934_vm8, %v5437_v0  ;;  %v3700_v60 = vsel %vm255_vm6, %v3698_v20, %v3699_v53  ;;  %3680 = vrot.lane.b32.xlu0 %v3676_v24, %s5438_s10  ;;  %v3648_v4 = vsel %vm202_vm11, %v3646_v19, %v3647_v23  ;;  %v3650_v6 = vrot.slane %v3623_v13, 7  ;;  %v3631_v36 = vrot.slane %v3621_v11, 6  ;;  %vm6944_vm8 = vmmov %vm6942_vm9  ;;  %v5404_v20 = vld [vmem:[%s6752_s1 + $0x10] sm:$0xff]   ;;  %v5406_v23 = vld [vmem:[%s6752_s1 + $0x20] sm:$0xff]  }
 0xb39   :  { %3711 = vst.msk [vmem:[#allocation2 + $0x70] sm:$0x3f] %vm6935_vm4, %v3702_v17  ;;  %v3679_v33 = vsel %vm236_vm15, %v3677_v56, %v3678_v54  ;;  %v3703_v34 = vsel %vm255_vm6, %v3701_v27, %v3702_v17  ;;  %v3630_v38 = vrot.slane %v3620_v12, 6  ;;  %v3633_v5 = vrot.slane %v3622_v14, 6  ;;  %vm6945_vm4 = vmmov %vm6944_vm8  ;;  %v5409_v24 = vld [vmem:[%s6752_s1 + $0x38] sm:$0xff]   ;;  %v5410_v56 = vld [vmem:[%s6752_s1 + $0x40] sm:$0xff]  }
 0xb3a   :  { %3709 = vst.msk [vmem:[#allocation2 + $0x30] sm:$0x3f] %vm6936_vm0, %v3699_v53  ;;  %v3651_v37 = vsel %vm202_vm11, %v3649_v26, %v3650_v6  ;;  %v3634_v39 = vrot.slane %v3623_v13, 6  ;;  %vm6940_vm6 = vcmask 1048065   ;;  %vm6946_vm0 = vmmov %vm6945_vm4  ;;  %v5402_v53 = vld [vmem:[%s6752_s1] sm:$0xff]   ;;  %v5411_v27 = vld [vmem:[%s6752_s1 + $0x48] sm:$0xff]  }
 0xb3b   :  { %3708 = vst.msk [vmem:[#allocation2 + $0x10] sm:$0xff] %vm167_vm10, %v3700_v60  ;;  %3710 = vst.msk [vmem:[#allocation2 + $0x50] sm:$0xff] %vm167_vm10, %v3703_v34  ;;  %3654 = vrot.lane.b32.xlu1 %v3648_v4, %s5438_s10  ;;  %v3632_v40 = vsel %vm174_vm5, %v3630_v38, %v3631_v36 }
 0xb3c   :  { %3640 = vst.msk [vmem:[#allocation2] sm:$0xfc] %vm6937_vm12, %v3630_v38  ;;  %3652 = vrot.lane.b32.xlu0 %v3646_v19, %s5438_s10  ;;  %v3635_v41 = vsel %vm174_vm5, %v3633_v5, %v3634_v39  ;;  %vm6939_vm5 = vcmask 1047040   ;;  %vm6943_vm13 = vmmov %vm6940_vm6  ;;  %v5405_v19 = vld [vmem:[%s6752_s1 + $0x18] sm:$0xff]  }
 0xb3d   :  { %3642 = vst.msk [vmem:[#allocation2 + $0x40] sm:$0xfc] %vm6938_vm2, %v3633_v5  ;;  %vm6941_vm1 = vmmov %vm6939_vm5 }
 0xb3e   :  { %3641 = vst.msk [vmem:[#allocation2 + $0x20] sm:$0xff] %vm167_vm10, %v3632_v40  ;;  %3643 = vst.msk [vmem:[#allocation2 + $0x60] sm:$0xff] %vm167_vm10, %v3635_v41 }
 0xb3f   :  { %3686 = vrot.lane.b32.xlu1 %v3678_v54, %s5438_s10  ;;  %v5407_v54 = vld [vmem:[%s6752_s1 + $0x28] sm:$0xff]  }
 0xb40   :  { %v3723_v44 = vld [vmem:[#allocation2 + $0x70] sm:$0xff]  ;;  %3684 = vrot.lane.b32.xlu0 %v3679_v33, %s5438_s10 }
 0xb41   :  { %v3717_v43 = vld [vmem:[#allocation2 + $0x30] sm:$0xff] }
 0xb42   :  { %v3714_v45 = vld [vmem:[#allocation2 + $0x10] sm:$0xff] }
 0xb43   :  { %v3726_v47 = vpack.c.bf16 %v3717_v43, %v3714_v45  ;;  %v3720_v48 = vld [vmem:[#allocation2 + $0x50] sm:$0xff]  ;;  %3658 = vrot.lane.b32.xlu1 %v3651_v37, %s5438_s10 }
 0xb44   :  { %v3729_v42 = vpack.c.bf16 %v3723_v44, %v3720_v48  ;;  %3656 = vrot.lane.b32.xlu0 %v3649_v26, %s5438_s10 }
 0xb45   :  { %5137 = vmatprep.mubr.msk.bf16.mxu0 %vm167_vm10, %v3726_v47 }
 0xb46   :  { %5138 = vmatmul.mubr.msk.bf16.vlgmr.msra.gmra.mrb[52].mxu0 %vm167_vm10, %v3729_v42 }
 0xb47   :  { %5142 = vmatpush3.bf16.msra.mxu0 %v6630_v21  ;;  %5149 = vmatprep.mubr.msk.bf16.mxu0 %vm167_vm10, %v4333_v25 }
 0xb48   :  { %5143 = vmatprep.subr.bf16.mxu0 %v5383_v49 }
 0xb4b   :  { %5144 = vmatpush3.bf16.msra.mxu0 %v5383_v49 }
 0xb4c   :  { %5145 = vmatprep.subr.bf16.mxu0 %v5384_v50 }
 0xb4f   :  { %5146 = vmatpush3.bf16.msra.mxu0 %v5384_v50 }
 0xb50   :  { %5147 = vmatprep.subr.bf16.mxu0 %v5385_v46 }
 0xb53   :  { %5148 = vmatpush3.bf16.msra.mxu0 %v5385_v46 }
 0xb56   :  { %5150 = vmatmul.mubr.msk.bf16.vlgmr.msra.gmra.mrb[56].mxu0 %vm167_vm10, %v4334_v32 }
 0xba9   :  { %v3683_v51 = vpop.permute.xlu1 %3682 }
 0xbaa   :  { %3693 = vst.msk [vmem:[#allocation2 + $0x28] sm:$0x7f] %vm6939_vm5, %v3683_v51  ;;  %v3681_v21 = vpop.permute.xlu0 %3680 }
 0xbab   :  { %3692 = vst.msk [vmem:[#allocation2 + $0x8] sm:$0xff] %vm195_vm14, %v3681_v21 }
 0xbad   :  { %v3655_v28 = vpop.permute.xlu1 %3654 }
 0xbae   :  { %3665 = vst.msk [vmem:[#allocation2 + $0x20] sm:$0xff] %vm195_vm14, %v3655_v28  ;;  %v3653_v22 = vpop.permute.xlu0 %3652 }
 0xbaf   :  { %3664 = vst.msk [vmem:[#allocation2] sm:$0xfe] %vm6940_vm6, %v3653_v22 }
 0xbb1   :  { %v3687_v25 = vpop.permute.xlu1 %3686  ;;  %v3716_v52 = vld [vmem:[#allocation2 + $0x28] sm:$0xff] }
 0xbb2   :  { %3695 = vst.msk [vmem:[#allocation2 + $0x68] sm:$0x7f] %vm6941_vm1, %v3687_v25  ;;  %v3685_v35 = vpop.permute.xlu0 %3684  ;;  %v3713_v29 = vld [vmem:[#allocation2 + $0x8] sm:$0xff] }
 0xbb3   :  { %4098 = vst.msk [vmem:[#allocation2 + $0x2f] sm:$0x1] %vm6942_vm9, %v5437_v0  ;;  %v3725_v30 = vpack.c.bf16 %v3716_v52, %v3713_v29 }
 0xbb4   :  { %3694 = vst.msk [vmem:[#allocation2 + $0x48] sm:$0xff] %vm195_vm14, %v3685_v35 }
 0xbb5   :  { %3928 = vmatprep.mubr.bf16.mxu1 %v3725_v30  ;;  %v3659_v32 = vpop.permute.xlu1 %3658  ;;  %v3715_v57 = vld [vmem:[#allocation2 + $0x20] sm:$0xff] }
 0xbb6   :  { %3667 = vst.msk [vmem:[#allocation2 + $0x60] sm:$0xff] %vm195_vm14, %v3659_v32  ;;  %v3657_v58 = vpop.permute.xlu0 %3656  ;;  %v3712_v59 = vld [vmem:[#allocation2] sm:$0xff] }
 0xbb7   :  { %3666 = vst.msk [vmem:[#allocation2 + $0x40] sm:$0xfe] %vm6943_vm13, %v3657_v58  ;;  %v3724_v61 = vpack.c.bf16 %v3715_v57, %v3712_v59 }
 0xbb8   :  { %4062 = vst.msk [vmem:[#allocation2] sm:$0x1] %vm6944_vm8, %v5437_v0 }
 0xbb9   :  { %3929 = vmatmul.mubr.bf16.vlgmr.msra.gmra.mrb[44].mxu1 %v3724_v61  ;;  %v3722_v62 = vld [vmem:[#allocation2 + $0x68] sm:$0xff] }
 0xbba   :  { %4099 = vst.msk [vmem:[#allocation2 + $0x6f] sm:$0x1] %vm6945_vm4, %v5437_v0  ;;  %4229 = vmatpush1.bf16.msra.mxu1 %v5402_v53 }
 0xbbb   :  { %v3719_v63 = vld [vmem:[#allocation2 + $0x48] sm:$0xff]  ;;  %4230 = vmatprep.subr.bf16.mxu1 %v5442_v31 }
 0xbbc   :  { %v3728_v1 = vpack.c.bf16 %v3722_v62, %v3719_v63 }
 0xbbd   :  { %v3721_v2 = vld [vmem:[#allocation2 + $0x60] sm:$0xff] }
 0xbbe   :  { %3936 = vmatprep.mubr.bf16.mxu1 %v3728_v1  ;;  %v3718_v8 = vld [vmem:[#allocation2 + $0x40] sm:$0xff]  ;;  %4231 = vmatpush1.bf16.msra.mxu1 %v5403_v7 }
 0xbbf   :  { %v3727_v9 = vpack.c.bf16 %v3721_v2, %v3718_v8  ;;  %4063 = vst.msk [vmem:[#allocation2 + $0x40] sm:$0x1] %vm6946_vm0, %v5437_v0  ;;  %4232 = vmatprep.subr.bf16.mxu1 %v5442_v31 }
 0xbc1   :  { %3937 = vmatmul.mubr.bf16.gmra.mrb[48].mxu1 %v3727_v9 }
 0xbc2   :  { %4233 = vmatpush1.bf16.msra.mxu1 %v5404_v20 }
 0xbc3   :  { %4234 = vmatprep.subr.bf16.mxu1 %v5442_v31 }
 0xbc6   :  { %4235 = vmatpush1.bf16.msra.mxu1 %v5405_v19 }
 0xbc7   :  { %4236 = vmatprep.subr.bf16.mxu1 %v5442_v31 }
 0xbca   :  { %4237 = vmatpush1.bf16.msra.mxu1 %v5406_v23 }
 0xbcb   :  { %4238 = vmatprep.subr.bf16.mxu1 %v5442_v31 }
 0xbce   :  { %4239 = vmatpush1.bf16.msra.mxu1 %v5407_v54 }
 0xbcf   :  { %4240 = vmatprep.subr.bf16.mxu1 %v5442_v31 }
 0xbd2   :  { %4241 = vmatpush1.bf16.msra.mxu1 %v5408_v55 }
 0xbd3   :  { %4242 = vmatprep.subr.bf16.mxu1 %v5442_v31 }
 0xbd6   :  { %4243 = vmatpush1.bf16.msra.mxu1 %v5409_v24 }
 0xbd7   :  { %4244 = vmatprep.subr.bf16.mxu1 %v5442_v31 }
 0xbda   :  { %4245 = vmatpush1.bf16.msra.mxu1 %v5410_v56 }
 0xbdb   :  { %4246 = vmatprep.subr.bf16.mxu1 %v5442_v31 }
 0xbde   :  { %4247 = vmatpush1.bf16.msra.mxu1 %v5411_v27 }
 0xbdf   :  { %4248 = vmatprep.subr.bf16.mxu1 %v5442_v31 }
 0xc19   :  { %v5139_v10 = vpop.f32.mrb[52].mxu0 }
 0xc1a   :  { %v3979_v13 = vpop.f32.mrb[53].mxu0 }
 0xc1b   :  { %v6739_v11 = vpop.f32.mrb[54].mxu0 }
 0xc1c   :  { %v3982_v12 = vpop.f32.mrb[55].mxu0 }
 0xc29   :  { %v6741_v14 = vpop.f32.mrb[56].mxu0 }
 0xc2a   :  { %v6743_v16 = vpop.f32.mrb[57].mxu0 }
 0xc2b   :  { %v6745_v17 = vpop.f32.mrb[58].mxu0 }
 0xc2c   :  { %v6747_v18 = vpop.f32.mrb[59].mxu0 }
 0xc8c   :  { %v5052_v26 = vpop.f32.mrb[44].mxu1 }
 0xc8d   :  { %v5053_v60 = vpop.f32.mrb[45].mxu1 }
 0xc8e   :  { %v5054_v4 = vadd.f32 %v5053_v60, %v5052_v26  ;;  %v5055_v6 = vpop.f32.mrb[46].mxu1  ;;  %v4029_v26 = vld [vmem:[%s4544_s6] sm:$0x1]  ;;  %v5412_v60 = vld [vmem:[%s6752_s1 + $0x50] sm:$0xff]  }
 0xc8f   :  { %v5056_v36 = vpop.f32.mrb[47].mxu1  ;;  %4249 = vmatpush1.bf16.msra.mxu1 %v5412_v60 }
 0xc90   :  { %v6774_v33 = vadd.f32 %v5054_v4, %v3979_v13  ;;  %v5057_v34 = vadd.f32 %v5056_v36, %v5055_v6  ;;  %4250 = vmatprep.subr.bf16.mxu1 %v5442_v31  ;;  %v5413_v36 = vld [vmem:[%s6752_s1 + $0x58] sm:$0xff]  }
 0xc92   :  { %v4008_v38 = vmul.f32 %v6774_v33, %v6774_v33  ;;  %v6778_v5 = vadd.f32 %v5057_v34, %v3982_v12  ;;  %v3994_v37 = vsel %vm167_vm10, %v6774_v33, 0.0  ;;  %v4763_v34 = vld [vmem:[%s4545_s5] ss:$0 sm:$0xff] }
 0xc93   :  { %4251 = vmatpush1.bf16.msra.mxu1 %v5413_v36 }
 0xc94   :  { %v3995_v39 = vsel %vm167_vm10, %v6778_v5, 0.0  ;;  %v4009_v40 = vmul.f32 %v6778_v5, %v6778_v5  ;;  %v5058_v41 = vpop.f32.mrb[48].mxu1  ;;  %v4012_v45 = vsel %vm167_vm10, %v4008_v38, 0.0 }
 0xc95   :  { %v3996_v43 = vadd.f32 %v3995_v39, %v3994_v37  ;;  %v5059_v44 = vpop.f32.mrb[49].mxu1 }
 0xc96   :  { %v4013_v47 = vsel %vm167_vm10, %v4009_v40, 0.0  ;;  %v5060_v48 = vadd.f32 %v5059_v44, %v5058_v41  ;;  %v5061_v42 = vpop.f32.mrb[50].mxu1 }
 0xc97   :  { %v4014_v49 = vadd.f32 %v4013_v47, %v4012_v45  ;;  %v5062_v50 = vpop.f32.mrb[51].mxu1 }
 0xc98   :  { %v3988_v46 = vadd.f32 %v5139_v10, %v5060_v48  ;;  %v5063_v51 = vadd.f32 %v5062_v50, %v5061_v42 }
 0xc9a   :  { %v3997_v21 = vsel %vm167_vm10, %v3988_v46, 0.0  ;;  %v4010_v28 = vmul.f32 %v3988_v46, %v3988_v46  ;;  %v3991_v22 = vadd.f32 %v6739_v11, %v5063_v51 }
 0xc9b   :  { %v3998_v25 = vadd.f32 %v3997_v21, %v3996_v43 }
 0xc9c   :  { %v4015_v52 = vsel %vm167_vm10, %v4010_v28, 0.0  ;;  %v3999_v35 = vsel %vm167_vm10, %v3991_v22, 0.0  ;;  %v4011_v29 = vmul.f32 %v3991_v22, %v3991_v22 }
 0xc9d   :  { %v4016_v30 = vadd.f32 %v4015_v52, %v4014_v49  ;;  %v4000_v32 = vadd.f32 %v3999_v35, %v3998_v25 }
 0xc9e   :  { %v4017_v57 = vsel %vm167_vm10, %v4011_v29, 0.0 }
 0xc9f   :  { %v4001_v58 = vrot.slane %v4000_v32, 4  ;;  %v4018_v59 = vadd.f32 %v4017_v57, %v4016_v30 }
 0xca1   :  { %v4002_v61 = vadd.f32 %v4001_v58, %v4000_v32  ;;  %v4019_v62 = vrot.slane %v4018_v59, 4 }
 0xca3   :  { %v4003_v63 = vrot.slane %v4002_v61, 2  ;;  %v4020_v1 = vadd.f32 %v4019_v62, %v4018_v59 }
 0xca5   :  { %v4004_v2 = vadd.f32 %v4003_v63, %v4002_v61  ;;  %v4021_v8 = vrot.slane %v4020_v1, 2 }
 0xca7   :  { %v4005_v9 = vrot.slane %v4004_v2, 1  ;;  %v4022_v10 = vadd.f32 %v4021_v8, %v4020_v1 }
 0xca9   :  { %v4006_v13 = vadd.f32 %v4005_v9, %v4004_v2  ;;  %v4023_v11 = vrot.slane %v4022_v10, 1 }
 0xcab   :  { %v4007_v12 = vmul.f32 0.03125, %v4006_v13  ;;  %v4024_v53 = vadd.f32 %v4023_v11, %v4022_v10 }
 0xcad   :  { %v4025_v7 = vmul.f32 0.03125, %v4024_v53  ;;  %v4026_v20 = vmul.f32 %v4007_v12, %v4007_v12  ;;  %v4036_v19 = vsub.f32 %v3991_v22, %v4007_v12  ;;  %v4034_v23 = vsub.f32 %v6778_v5, %v4007_v12 }
 0xcae   :  { %v4033_v54 = vsub.f32 %v6774_v33, %v4007_v12  ;;  %v4035_v55 = vsub.f32 %v3988_v46, %v4007_v12  ;;  %v5469_v53 = vmov 0.0|0.0  }
 0xcaf   :  { %v4027_v24 = vsub.f32 %v4025_v7, %v4026_v20  ;;  %5164 = vmatprep.subr.bf16.mxu0 %v5469_v53 }
 0xcb1   :  { %v4028_v56 = vmax.f32 %v4027_v24, 0.0 }
 0xcb3   :  { %v4030_v27 = vadd.f32 1e-05, %v4028_v56 }
 0xcb5   :  { %5428 = vrsqrt.f32 %v4030_v27 }
 0xcbf   :  { %v5429_v4 = vpop.eup %5428 }
 0xcc0   :  { %v4032_v6 = vmul.f32 %v5429_v4, %v4029_v26 }
 0xcc2   :  { %v4041_v33 = vrot.slane %v4032_v6, %v5728_v15 }
 0xcc4   :  { %v4044_v38 = vmul.f32 %v4041_v33, %v4034_v23  ;;  %v4043_v5 = vmul.f32 %v4041_v33, %v4033_v54  ;;  %v4046_v37 = vmul.f32 %v4041_v33, %v4036_v19  ;;  %v4045_v39 = vmul.f32 %v4041_v33, %v4035_v55 }
 0xcc6   :  { %v4055_v40 = vadd.f32 %v4763_v34, %v4044_v38  ;;  %v4054_v41 = vadd.f32 %v4763_v34, %v4043_v5  ;;  %v4057_v43 = vadd.f32 %v4763_v34, %v4046_v37  ;;  %v4056_v44 = vadd.f32 %v4763_v34, %v4045_v39 }
 0xcc8   :  { %v4059_v45 = vmax.f32 %v4055_v40, 0.0  ;;  %v4058_v47 = vmax.f32 %v4054_v41, 0.0  ;;  %v4061_v48 = vmax.f32 %v4057_v43, 0.0  ;;  %v4060_v42 = vmax.f32 %v4056_v44, 0.0 }
 0xcca   :  { %4084 = vrot.lane.b32.xlu1 %v4059_v45, %s5438_s10  ;;  %v4069_v31 = vrot.slane %v4059_v45, 7  ;;  %v4101_v49 = vrot.slane %v4059_v45, 1  ;;  %4082 = vrot.lane.b32.xlu0 %v4058_v47, %s5438_s10  ;;  %v4068_v50 = vrot.slane %v4058_v47, 7  ;;  %v4100_v46 = vrot.slane %v4058_v47, 1 }
 0xccb   :  { %v4072_v51 = vrot.slane %v4061_v48, 7  ;;  %v4104_v21 = vrot.slane %v4061_v48, 1  ;;  %v4071_v28 = vrot.slane %v4060_v42, 7  ;;  %v4103_v22 = vrot.slane %v4060_v42, 1 }
 0xccc   :  { %4111 = vst.msk [vmem:[#allocation2 + $0x28] sm:$0x7f] %vm248_vm3, %v4101_v49  ;;  %v4102_v25 = vsel %vm236_vm15, %v4100_v46, %v4101_v49  ;;  %v4070_v52 = vsel %vm202_vm11, %v4068_v50, %v4069_v31 }
 0xccd   :  { %4078 = vst.msk [vmem:[#allocation2] sm:$0xfe] %vm213_vm7, %v4068_v50  ;;  %v4105_v35 = vsel %vm236_vm15, %v4103_v22, %v4104_v21  ;;  %4080 = vst.msk [vmem:[#allocation2 + $0x40] sm:$0xfe] %vm213_vm7, %v4071_v28  ;;  %v4073_v29 = vsel %vm202_vm11, %v4071_v28, %v4072_v51 }
 0xcce   :  { %4110 = vst.msk [vmem:[#allocation2 + $0x8] sm:$0xff] %vm167_vm10, %v4102_v25  ;;  %4079 = vst.msk [vmem:[#allocation2 + $0x20] sm:$0xff] %vm167_vm10, %v4070_v52  ;;  %4088 = vrot.lane.b32.xlu1 %v4061_v48, %s5438_s10  ;;  %4086 = vrot.lane.b32.xlu0 %v4060_v42, %s5438_s10  ;;  %s5471_s10 = smov 30  }
 0xccf   :  { %4113 = vst.msk [vmem:[#allocation2 + $0x68] sm:$0x7f] %vm248_vm3, %v4104_v21  ;;  %vm5470_vm3 = vmmov 0   ;;  %s4547_s13 = sld [smem:[%s6848_s0 + %s5471_s10]]  }
 0xcd0   :  { %4112 = vst.msk [vmem:[#allocation2 + $0x48] sm:$0xff] %vm167_vm10, %v4105_v35  ;;  %4081 = vst.msk [vmem:[#allocation2 + $0x60] sm:$0xff] %vm167_vm10, %v4073_v29  ;;  %5161 = vmatprep.mubr.msk.f32.mxu0 %vm5470_vm3, %v5437_v0 }
 0xcd3   :  { %v4117_v30 = vld [vmem:[#allocation2 + $0x28] sm:$0xff] }
 0xcd5   :  { %v4115_v32 = vld [vmem:[#allocation2 + $0x8] sm:$0xff]  ;;  %v4304_v29 = vld [vmem:[%s4547_s13] sm:$0x1] }
 0xcd6   :  { %v4123_v57 = vpack.c.bf16 %v4117_v30, %v4115_v32  ;;  %v4121_v1 = vld [vmem:[#allocation2 + $0x68] sm:$0xff] }
 0xcd7   :  { %v4119_v63 = vld [vmem:[#allocation2 + $0x48] sm:$0xff] }
 0xcd8   :  { %4776 = vmatprep.mubr.msk.bf16.mxu1 %vm167_vm10, %v4123_v57  ;;  %v4125_v10 = vpack.c.bf16 %v4121_v1, %v4119_v63  ;;  %v4779_v57 = vld [vmem:[%s4550_s17] ss:$0 sm:$0xff] }
 0xd3c   :  { %v4085_v58 = vpop.permute.xlu1 %4084  ;;  %v4083_v59 = vpop.permute.xlu0 %4082 }
 0xd3d   :  { %4095 = vst.msk [vmem:[#allocation2 + $0x20] sm:$0xff] %vm195_vm14, %v4085_v58  ;;  %4094 = vst.msk [vmem:[#allocation2] sm:$0xff] %vm195_vm14, %v4083_v59  ;;  %v4778_v59 = vld [vmem:[%s4548_s21] ss:$0 sm:$0xff] }
 0xd40   :  { %v4089_v61 = vpop.permute.xlu1 %4088  ;;  %v4087_v62 = vpop.permute.xlu0 %4086 }
 0xd41   :  { %4097 = vst.msk [vmem:[#allocation2 + $0x60] sm:$0xff] %vm195_vm14, %v4089_v61  ;;  %4096 = vst.msk [vmem:[#allocation2 + $0x40] sm:$0xff] %vm195_vm14, %v4087_v62 }
 0xd44   :  { %v4114_v2 = vld [vmem:[#allocation2] sm:$0xff] }
 0xd45   :  { %v4116_v8 = vld [vmem:[#allocation2 + $0x20] sm:$0xff] }
 0xd46   :  { %v4122_v9 = vpack.c.bf16 %v4116_v8, %v4114_v2  ;;  %v4423_v2 = vadd.f32 %v6741_v14, %v4779_v57  ;;  %v4415_v8 = vadd.f32 %v4779_v57, %v6743_v16  ;;  %v4438_v16 = vand.u32 127, %v747_v3 }
 0xd48   :  { %4261 = vmatmul.mubr.bf16.vlgmr.msra.gmra.mrb[52].mxu1 %v4122_v9  ;;  %v4118_v13 = vld [vmem:[#allocation2 + $0x40] sm:$0xff]  ;;  %v4426_v9 = vadd.f32 %v6745_v17, %v4779_v57  ;;  %vm4439_vm7 = vcmp.eq.s32.totalorder %v4438_v16, 0  ;;  %v5474_v17 = vmov 1.0  }
 0xd49   :  { %4777 = vmatprep.mubr.msk.bf16.mxu1 %vm167_vm10, %v4125_v10  ;;  %v4120_v11 = vld [vmem:[#allocation2 + $0x60] sm:$0xff]  ;;  %v4418_v10 = vadd.f32 %v4779_v57, %v6747_v18  ;;  %vm4512_vm10 = vcmask 253952  }
 0xd4a   :  { %v4124_v12 = vpack.c.bf16 %v4120_v11, %v4118_v13 }
 0xd50   :  { %4269 = vmatmul.mubr.bf16.gmra.mrb[56].mxu1 %v4124_v12 }
 0xe1b   :  { %v4262_v7 = vpop.f32.mrb[52].mxu1 }
 0xe1c   :  { %v4264_v20 = vpop.f32.mrb[53].mxu1  ;;  %v4287_v23 = vmul.f32 %v4262_v7, %v4262_v7 }
 0xe1d   :  { %v4265_v19 = vpop.f32.mrb[54].mxu1 }
 0xe1e   :  { %v4277_v54 = vadd.f32 %v4265_v19, %v4262_v7  ;;  %v4288_v55 = vmul.f32 %v4265_v19, %v4265_v19  ;;  %v4267_v24 = vpop.f32.mrb[55].mxu1 }
 0xe20   :  { %v4291_v56 = vadd.f32 %v4288_v55, %v4287_v23 }
 0xe23   :  { %v4270_v27 = vpop.f32.mrb[56].mxu1 }
 0xe24   :  { %v4278_v26 = vadd.f32 %v4277_v54, %v4270_v27  ;;  %v4289_v60 = vmul.f32 %v4270_v27, %v4270_v27  ;;  %v4272_v4 = vpop.f32.mrb[57].mxu1 }
 0xe25   :  { %v4273_v6 = vpop.f32.mrb[58].mxu1 }
 0xe26   :  { %v4292_v36 = vadd.f32 %v4291_v56, %v4289_v60  ;;  %v4279_v33 = vadd.f32 %v4278_v26, %v4273_v6  ;;  %v4290_v34 = vmul.f32 %v4273_v6, %v4273_v6  ;;  %v4275_v38 = vpop.f32.mrb[59].mxu1 }
 0xe28   :  { %v4280_v5 = vrot.slane %v4279_v33, 4  ;;  %v4293_v37 = vadd.f32 %v4292_v36, %v4290_v34 }
 0xe2a   :  { %v4281_v0 = vadd.f32 %v4280_v5, %v4279_v33  ;;  %v4294_v39 = vrot.slane %v4293_v37, 4 }
 0xe2c   :  { %v4282_v40 = vrot.slane %v4281_v0, 2  ;;  %v4295_v41 = vadd.f32 %v4294_v39, %v4293_v37 }
 0xe2e   :  { %v4283_v43 = vadd.f32 %v4282_v40, %v4281_v0  ;;  %v4296_v44 = vrot.slane %v4295_v41, 2 }
 0xe30   :  { %v4284_v45 = vrot.slane %v4283_v43, 1  ;;  %v4297_v47 = vadd.f32 %v4296_v44, %v4295_v41 }
 0xe32   :  { %v4285_v48 = vadd.f32 %v4284_v45, %v4283_v43  ;;  %v4298_v42 = vrot.slane %v4297_v47, 1 }
 0xe34   :  { %v4286_v31 = vmul.f32 0.03125, %v4285_v48  ;;  %v4299_v49 = vadd.f32 %v4298_v42, %v4297_v47 }
 0xe36   :  { %v4300_v50 = vmul.f32 0.03125, %v4299_v49  ;;  %v4301_v46 = vmul.f32 %v4286_v31, %v4286_v31  ;;  %v4311_v51 = vsub.f32 %v4273_v6, %v4286_v31  ;;  %v4308_v21 = vsub.f32 %v4262_v7, %v4286_v31 }
 0xe37   :  { %v4309_v28 = vsub.f32 %v4265_v19, %v4286_v31  ;;  %v4310_v22 = vsub.f32 %v4270_v27, %v4286_v31 }
 0xe38   :  { %v4302_v25 = vsub.f32 %v4300_v50, %v4301_v46 }
 0xe3a   :  { %v4303_v52 = vmax.f32 %v4302_v25, 0.0 }
 0xe3c   :  { %v4305_v35 = vadd.f32 1e-05, %v4303_v52 }
 0xe3e   :  { %5430 = vrsqrt.f32 %v4305_v35 }
 0xe48   :  { %v5431_v30 = vpop.eup %5430 }
 0xe49   :  { %v4307_v32 = vmul.f32 %v5431_v30, %v4304_v29 }
 0xe4b   :  { %v4316_v58 = vrot.slane %v4307_v32, %v5728_v15 }
 0xe4d   :  { %v4321_v61 = vmul.f32 %v4316_v58, %v4311_v51  ;;  %v4318_v62 = vmul.f32 %v4316_v58, %v4308_v21  ;;  %v4319_v63 = vmul.f32 %v4316_v58, %v4309_v28  ;;  %v4320_v1 = vmul.f32 %v4316_v58, %v4310_v22 }
 0xe4f   :  { %v4332_v13 = vadd.f32 %v4778_v59, %v4321_v61  ;;  %v4329_v11 = vadd.f32 %v4778_v59, %v4318_v62  ;;  %v4330_v12 = vadd.f32 %v4778_v59, %v4319_v63  ;;  %v4331_v7 = vadd.f32 %v4778_v59, %v4320_v1 }
 0xe51   :  { %v4432_v20 = vadd.f32 %v4426_v9, %v4332_v13  ;;  %v4429_v19 = vadd.f32 %v4415_v8, %v4329_v11  ;;  %v4430_v15 = vadd.f32 %v4418_v10, %v4330_v12  ;;  %v4431_v23 = vadd.f32 %v4423_v2, %v4331_v7 }
 0xe53   :  { %v4433_v54 = vmax.f32 %v4429_v19, 0.0  ;;  %v4434_v55 = vmax.f32 %v4430_v15, 0.0  ;;  %v4435_v24 = vmax.f32 %v4431_v23, 0.0  ;;  %v4436_v56 = vmax.f32 %v4432_v20, 0.0 }
 0xe55   :  { %v5165_v27 = vpack.c.bf16 %v4434_v55, %v4433_v54  ;;  %v5168_v14 = vpack.c.bf16 %v4436_v56, %v4435_v24 }
 0xe57   :  { %5166 = vmatpush3.bf16.xpose.msra.mxu0 %v5165_v27 }
 0xe58   :  { %5167 = vmatprep.subr.bf16.mxu0 %v5469_v53 }
 0xe5f   :  { %5169 = vmatpush3.bf16.xpose.msra.mxu0 %v5168_v14 }
 0xe66   :  { %5162 = vmatmul.mubr.msk.f32.vlgmr.msra.gmra.mrb[60].mxu0 %vm4439_vm7, %v5474_v17 }
 0xf39   :  { %v4508_v18 = vpop.f32.mrb[60].mxu0 }
 0xf3a   :  { %4513 = vst.msk [vmem:[%s4551_s25] sm:$0x1] %vm4512_vm10, %v4508_v18  ;;  %v5163_v26 = vpop.f32.mrb[61].mxu0 }

</bundles_post_ra>
